<compile_context>
chip_gen: v6e
topology: v6e:2x2x1
jax: 0.10.0
libtpu: 0.0.40
codegen_flags: <defaults>
</compile_context>

<pallas_src>
import functools

import jax
import jax.numpy as jnp
from jax.experimental import pallas as pl
from jax.experimental.pallas import tpu as pltpu


def _round_up(x, m):
    return (x + m - 1) // m * m


# ---------------------------------------------------------------------------
# Pallas kernels
# ---------------------------------------------------------------------------
def _mm_stats_kernel(a_ref, b_ref, o_ref, st_ref):
    # Full K in a single MXU pass: bf16 operands, f32 accumulation.
    y = jnp.dot(a_ref[...], b_ref[...], preferred_element_type=jnp.float32)
    o_ref[...] = y.astype(o_ref.dtype)
    # Fused BatchNorm partial statistics (per-column sum / sum-of-squares),
    # computed while the f32 result is still resident in VMEM.
    s = jnp.sum(y, axis=0, keepdims=True)
    ss = jnp.sum(y * y, axis=0, keepdims=True)
    st_ref[0] = jnp.concatenate([s, ss], axis=0)


def pallas_matmul_stats(a, b, *, out_dtype=jnp.bfloat16):
    """Batched (P, M, K) @ (P, K, N) -> (P, Mp, Np) bf16 plus column stats.

    Also returns per-(batch, M-tile) column sums / sums-of-squares of the f32
    result, shape (P, n_m_tiles, 2, Np), so BatchNorm batch statistics do not
    need a separate HBM pass over y.  Zero-padded rows/columns contribute
    exactly zero to both the result and the statistics.
    """
    P, M, K = a.shape
    _, _, N = b.shape
    Kp = _round_up(K, 128)
    Np = _round_up(N, 128)
    tn = max(d for d in (128, 256, 384, 512) if Np % d == 0)
    tm = min(256, _round_up(M, 32))
    Mp = _round_up(M, tm)
    n_m, n_n = Mp // tm, Np // tn
    a_p = jnp.pad(a.astype(jnp.bfloat16), ((0, 0), (0, Mp - M), (0, Kp - K)))
    b_p = jnp.pad(b.astype(jnp.bfloat16), ((0, 0), (0, Kp - K), (0, Np - N)))
    y, stats = pl.pallas_call(
        _mm_stats_kernel,
        out_shape=(
            jax.ShapeDtypeStruct((P, Mp, Np), out_dtype),
            jax.ShapeDtypeStruct((P, n_m, 2, Np), jnp.float32),
        ),
        grid_spec=pltpu.PrefetchScalarGridSpec(
            num_scalar_prefetch=0,
            grid=(P, n_m, n_n),
            in_specs=[
                pl.BlockSpec((None, tm, Kp), lambda q, i, j: (q, i, 0)),
                pl.BlockSpec((None, Kp, tn), lambda q, i, j: (q, 0, j)),
            ],
            out_specs=[
                pl.BlockSpec((None, tm, tn), lambda q, i, j: (q, i, j)),
                pl.BlockSpec((None, 1, 2, tn), lambda q, i, j: (q, i, 0, j)),
            ],
        ),
        compiler_params=pltpu.CompilerParams(
            dimension_semantics=("parallel", "parallel", "parallel")),
    )(a_p, b_p)
    return y, stats


def _affine_act_kernel(y_ref, s_ref, b_ref, o_ref, *, act):
    y = y_ref[...].astype(jnp.float32) * s_ref[...] + b_ref[...]
    if act == "relu":
        y = jnp.maximum(y, 0.0)
    elif act == "tanh":
        y = jnp.tanh(y)
    o_ref[...] = y.astype(o_ref.dtype)


def pallas_affine_act(y2d, scale_cols, bias_cols, act, *,
                      out_dtype=jnp.bfloat16):
    """Per-column affine (folded BatchNorm) + activation on an (M, C) slab.

    Every call site uses C that is a multiple of 128, so stores are lane-dense
    (no masked vst).  bf16 load/store, f32 compute.
    """
    M, C = y2d.shape
    cap = max(16, ((1 << 20) // (2 * C)) // 16 * 16)   # ~1 MiB per block
    tm = min(512, cap, _round_up(M, 16))
    Mp = _round_up(M, tm)
    y_p = jnp.pad(y2d, ((0, Mp - M), (0, 0)))
    s = scale_cols.astype(jnp.float32).reshape(1, C)
    b = bias_cols.astype(jnp.float32).reshape(1, C)
    out = pl.pallas_call(
        functools.partial(_affine_act_kernel, act=act),
        out_shape=jax.ShapeDtypeStruct((Mp, C), out_dtype),
        grid_spec=pltpu.PrefetchScalarGridSpec(
            num_scalar_prefetch=0,
            grid=(Mp // tm,),
            in_specs=[
                pl.BlockSpec((tm, C), lambda i: (i, 0)),
                pl.BlockSpec((1, C), lambda i: (0, 0)),
                pl.BlockSpec((1, C), lambda i: (0, 0)),
            ],
            out_specs=pl.BlockSpec((tm, C), lambda i: (i, 0)),
        ),
        compiler_params=pltpu.CompilerParams(
            dimension_semantics=("parallel",)),
    )(y_p, s, b)
    return out[:M]


# ---------------------------------------------------------------------------
# ConvTranspose2d lowerings
# ---------------------------------------------------------------------------
def _subpixel_matmul(x, w):
    """Sub-pixel decomposition of ConvTranspose2d(K=4, stride=2, padding=1).

    x: (N, H, W, Cin) NHWC bf16,  w: (Cin, Cout, 4, 4).
    Output phase (ho%2, wo%2) only sees a 2x2 subset of the kernel taps, so
    the deconv becomes 4 batched 2x2-patch matmuls:
        (4, N*H*W, 4*Cin) @ (4, 4*Cin, Cout)
    """
    N, H, W, cin = x.shape
    cout = w.shape[1]
    xp = jnp.pad(x, ((0, 0), (1, 1), (1, 1), (0, 0)))
    a_list, b_list = [], []
    for ph in range(2):
        for pw in range(2):
            taps, wtaps = [], []
            for dy in range(2):
                for dx in range(2):
                    taps.append(
                        xp[:, ph + dy:ph + dy + H, pw + dx:pw + dx + W, :])
                    wtaps.append(w[:, :, 3 - ph - 2 * dy, 3 - pw - 2 * dx])
            a_list.append(jnp.stack(taps, axis=3).reshape(N * H * W, 4 * cin))
            b_list.append(jnp.stack(wtaps, axis=0).reshape(4 * cin, cout))
    a = jnp.stack(a_list, axis=0)                     # (4, M, 4*Cin)
    b = jnp.stack(b_list, axis=0)                     # (4, 4*Cin, Cout)
    return pallas_matmul_stats(a, b)


def _assemble_subpixel(y_phases, N, H, W, cout):
    """(4, Mp, Np) phase-major slab -> (N, 2H, 2W, Cout) NHWC (pixel shuffle)."""
    r = y_phases[:, :N * H * W, :cout].reshape(2, 2, N, H, W, cout)
    r = r.transpose(2, 3, 0, 4, 1, 5)                 # (N, H, ph, W, pw, C)
    return r.reshape(N, 2 * H, 2 * W, cout)


def _first_block(x_nc, w, gamma, beta, eps):
    """ConvTranspose2d(K=4, s=1, p=0) on the 1x1 latent + BatchNorm + ReLU.

    For a 1x1 input:  y[n, co, kh, kw] = x[n, :] @ w[:, co, kh, kw].
    """
    N = x_nc.shape[0]
    cin, cout = w.shape[0], w.shape[1]
    b_mat = w.transpose(0, 2, 3, 1).reshape(cin, 16 * cout)   # cols = (kh, kw, co)
    y, stats = pallas_matmul_stats(x_nc[None], b_mat[None])
    Np = y.shape[-1]
    colsum = stats[0, :, 0, :16 * cout].sum(0).reshape(16, cout).sum(0)
    colsq = stats[0, :, 1, :16 * cout].sum(0).reshape(16, cout).sum(0)
    cnt = float(16 * N)                                        # N * Hout * Wout
    mean = colsum / cnt
    var = jnp.maximum(colsq / cnt - mean * mean, 0.0)
    scale = gamma / jnp.sqrt(var + eps)
    bias = beta - mean * scale
    s_col = jnp.pad(jnp.tile(scale, 16), (0, Np - 16 * cout))
    b_col = jnp.pad(jnp.tile(bias, 16), (0, Np - 16 * cout))
    y_act = pallas_affine_act(y[0], s_col, b_col, act="relu")
    return y_act[:N, :16 * cout].reshape(N, 4, 4, cout)        # NHWC bf16


def _block_s2(x, w, gamma, beta, eps):
    """ConvTranspose2d(K=4, s=2, p=1) + BatchNorm (batch stats) + ReLU."""
    N, H, W, _ = x.shape
    cout = w.shape[1]
    y, stats = _subpixel_matmul(x, w)
    _, Mp, Np = y.shape
    cnt = float(4 * N * H * W)                                 # N * Hout * Wout
    colsum = stats[:, :, 0, :cout].sum((0, 1))
    colsq = stats[:, :, 1, :cout].sum((0, 1))
    mean = colsum / cnt
    var = jnp.maximum(colsq / cnt - mean * mean, 0.0)
    scale = gamma / jnp.sqrt(var + eps)
    bias = beta - mean * scale
    s_col = jnp.pad(scale, (0, Np - cout))
    b_col = jnp.pad(bias, (0, Np - cout))
    y_act = pallas_affine_act(y.reshape(4 * Mp, Np), s_col, b_col, act="relu")
    return _assemble_subpixel(y_act.reshape(4, Mp, Np), N, H, W, cout)


def _final_layer(x, w):
    """Final ConvTranspose2d(K=4, s=2, p=1) + Tanh (no BatchNorm)."""
    N, H, W, _ = x.shape
    cout = w.shape[1]
    y, _ = _subpixel_matmul(x, w)
    pre = _assemble_subpixel(y, N, H, W, cout)                 # (N, 2H, 2W, C) bf16
    flat = pre.reshape(-1)
    lane = 512                                                 # lane-dense tanh slab
    rows = _round_up(flat.shape[0], lane) // lane
    y2 = jnp.pad(flat, (0, rows * lane - flat.shape[0])).reshape(rows, lane)
    t = pallas_affine_act(y2, jnp.ones((lane,), jnp.float32),
                          jnp.zeros((lane,), jnp.float32), act="tanh",
                          out_dtype=jnp.float32)
    return t.reshape(-1)[:flat.shape[0]].reshape(N, 2 * H, 2 * W, cout)


# ---------------------------------------------------------------------------
# Generator: params + forward
# ---------------------------------------------------------------------------
def init_generator_params(key, z_dim, channel_img, feature_g):
    layer_dims = [
        (z_dim, feature_g * 16),
        (feature_g * 16, feature_g * 8),
        (feature_g * 8, feature_g * 4),
        (feature_g * 4, feature_g * 2),
    ]
    blocks = []
    for cin, cout in layer_dims:
        key, sub = jax.random.split(key)
        w = 0.02 * jax.random.normal(sub, (cin, cout, 4, 4), jnp.float32)
        blocks.append(dict(w=w,
                           gamma=jnp.ones((cout,), jnp.float32),
                           beta=jnp.zeros((cout,), jnp.float32)))
    key, sub = jax.random.split(key)
    final_w = 0.02 * jax.random.normal(
        sub, (feature_g * 2, channel_img, 4, 4), jnp.float32)
    return dict(blocks=blocks, final_w=final_w)


def generator_forward(x, params, eps=1e-5):
    """x: (N, z_dim, 1, 1) latent (NCHW), returns (N, C_img, 64, 64) f32."""
    N = x.shape[0]
    assert x.shape[2:] == (1, 1), "Generator expects a (N, z, 1, 1) latent"
    h = x.reshape(N, -1).astype(jnp.bfloat16)
    blk0 = params["blocks"][0]
    h = _first_block(h, blk0["w"], blk0["gamma"], blk0["beta"], eps)
    for blk in params["blocks"][1:]:
        h = _block_s2(h, blk["w"], blk["gamma"], blk["beta"], eps)
    out = _final_layer(h, params["final_w"])                   # NHWC f32
    return out.transpose(0, 3, 1, 2)                           # NCHW


# ---------------------------------------------------------------------------
# Pure-JAX reference (for correctness check only)
# ---------------------------------------------------------------------------
def _ref_conv_transpose(x, w, stride, padding):
    w_conv = jnp.flip(w, (2, 3)).transpose(1, 0, 2, 3)         # (Cout, Cin, K, K)
    p = w.shape[2] - 1 - padding
    return jax.lax.conv_general_dilated(
        x, w_conv, window_strides=(1, 1), padding=[(p, p), (p, p)],
        lhs_dilation=(stride, stride),
        dimension_numbers=("NCHW", "OIHW", "NCHW"),
        precision=jax.lax.Precision.HIGHEST)


def generator_forward_ref(x, params, eps=1e-5):
    h = x
    cfgs = [(1, 0), (2, 1), (2, 1), (2, 1)]
    for blk, (s, p) in zip(params["blocks"], cfgs):
        y = _ref_conv_transpose(h, blk["w"], s, p)
        mean = jnp.mean(y, axis=(0, 2, 3), keepdims=True)
        var = jnp.var(y, axis=(0, 2, 3), keepdims=True)
        g = blk["gamma"].reshape(1, -1, 1, 1)
        b = blk["beta"].reshape(1, -1, 1, 1)
        h = jnp.maximum((y - mean) / jnp.sqrt(var + eps) * g + b, 0.0)
    y = _ref_conv_transpose(h, params["final_w"], 2, 1)
    return jnp.tanh(y)


if __name__ == "__main__":
    key = jax.random.PRNGKey(0)
    k_param, k_x = jax.random.split(key)

    z_dim, channel_img, feature_g, batch = 100, 3, 8, 2
    params = init_generator_params(k_param, z_dim, channel_img, feature_g)
    # Generator input: (N, z_dim, 1, 1), as implied by the DCGAN forward pass.
    x = jax.random.normal(k_x, (batch, z_dim, 1, 1), jnp.float32)

    fwd = jax.jit(generator_forward)
    out = jax.block_until_ready(fwd(x, params))
    assert out.shape == (batch, channel_img, 64, 64), out.shape
    assert bool(jnp.all(jnp.isfinite(out)))

    ref = jax.block_until_ready(generator_forward_ref(x, params))
    max_err = float(jnp.max(jnp.abs(out - ref)))
    # bf16 MXU operands (vs. the f32 HIGHEST-precision reference) loosen the
    # achievable tolerance; any structural bug would show up as O(1) error.
    assert max_err < 5e-2, f"max abs err {max_err}"

    print("KERNEL_OK")
</pallas_src>

<mosaic_0001>
module attributes {stable_mosaic.version = 11 : i64} {
  func.func @_mm_stats_kernel(%arg0: i32, %arg1: i32, %arg2: i32, %arg3: memref<1x32x128xbf16, #tpu.memory_space<vmem>>, %arg4: memref<1x128x512xbf16, #tpu.memory_space<vmem>>, %arg5: memref<1x32x512xbf16, #tpu.memory_space<vmem>>, %arg6: memref<1x1x2x512xf32, #tpu.memory_space<vmem>>) attributes {dimension_semantics = [#tpu.dimension_semantics<parallel>, #tpu.dimension_semantics<parallel>, #tpu.dimension_semantics<parallel>], iteration_bounds = array<i64: 1, 1, 4>, scalar_prefetch = 0 : i64, scratch_operands = 0 : i64, tpu.core_type = #tpu.core_type<tc>, window_params = [{transform_indices = @transform_0, window_bounds = array<i64: 1, 32, 128>}, {transform_indices = @transform_1, window_bounds = array<i64: 1, 128, 512>}, {transform_indices = @transform_2, window_bounds = array<i64: 1, 32, 512>}, {transform_indices = @transform_3, window_bounds = array<i64: 1, 1, 2, 512>}]} {
    %c0 = arith.constant 0 : index
    %c0_0 = arith.constant 0 : index
    %c0_1 = arith.constant 0 : index
    %0 = vector.load %arg3[%c0, %c0_0, %c0_1] : memref<1x32x128xbf16, #tpu.memory_space<vmem>>, vector<1x32x128xbf16>
    %1 = vector.shape_cast %0 : vector<1x32x128xbf16> to vector<32x128xbf16>
    %c0_2 = arith.constant 0 : index
    %c0_3 = arith.constant 0 : index
    %c0_4 = arith.constant 0 : index
    %2 = vector.load %arg4[%c0_2, %c0_3, %c0_4] : memref<1x128x512xbf16, #tpu.memory_space<vmem>>, vector<1x128x512xbf16>
    %3 = vector.shape_cast %2 : vector<1x128x512xbf16> to vector<128x512xbf16>
    %cst = arith.constant dense<0.000000e+00> : vector<32x512xf32>
    %4 = tpu.matmul %1, %3, %cst {dimension_numbers = #tpu.dot_dimension_numbers<[1], [0], [0], [1], [0, 0, 1, 1], [], []>} : vector<32x128xbf16>, vector<128x512xbf16>, vector<32x512xf32> -> vector<32x512xf32>
    %5 = arith.truncf %4 : vector<32x512xf32> to vector<32x512xbf16>
    %c0_5 = arith.constant 0 : index
    %c0_6 = arith.constant 0 : index
    %c0_7 = arith.constant 0 : index
    %6 = vector.load %arg5[%c0_5, %c0_6, %c0_7] : memref<1x32x512xbf16, #tpu.memory_space<vmem>>, vector<1x32x512xbf16>
    %7 = vector.shape_cast %6 : vector<1x32x512xbf16> to vector<32x512xbf16>
    %8 = vector.shape_cast %5 : vector<32x512xbf16> to vector<1x32x512xbf16>
    tpu.vector_store %arg5[%c0_5, %c0_6, %c0_7], %8 {strides = array<i32>} : memref<1x32x512xbf16, #tpu.memory_space<vmem>>, vector<1x32x512xbf16>,
    %cst_8 = arith.constant dense<0.000000e+00> : vector<512xf32>
    %9 = vector.multi_reduction <add>, %4, %cst_8 [0] : vector<32x512xf32> to vector<512xf32>
    %10 = vector.shape_cast %9 : vector<512xf32> to vector<1x512xf32>
    %11 = arith.mulf %4, %4 : vector<32x512xf32>
    %cst_9 = arith.constant dense<0.000000e+00> : vector<512xf32>
    %12 = vector.multi_reduction <add>, %11, %cst_9 [0] : vector<32x512xf32> to vector<512xf32>
    %13 = vector.shape_cast %12 : vector<512xf32> to vector<1x512xf32>
    %14 = tpu.concatenate %10, %13 in 0 : vector<1x512xf32>, vector<1x512xf32> -> vector<2x512xf32>
    %c0_10 = arith.constant 0 : index
    %c0_11 = arith.constant 0 : index
    %c0_12 = arith.constant 0 : index
    %c0_13 = arith.constant 0 : index
    %15 = vector.load %arg6[%c0_10, %c0_11, %c0_12, %c0_13] : memref<1x1x2x512xf32, #tpu.memory_space<vmem>>, vector<1x1x2x512xf32>
    %16 = vector.shape_cast %15 : vector<1x1x2x512xf32> to vector<2x512xf32>
    %17 = vector.shape_cast %14 : vector<2x512xf32> to vector<1x1x2x512xf32>
    tpu.vector_store %arg6[%c0_10, %c0_11, %c0_12, %c0_13], %17 {strides = array<i32>} : memref<1x1x2x512xf32, #tpu.memory_space<vmem>>, vector<1x1x2x512xf32>,
    return
  }
  func.func @transform_0(%arg0: i32, %arg1: i32, %arg2: i32) -> (i32, i32, i32) {
    %c0_i32 = arith.constant 0 : i32
    %c0_i32_0 = arith.constant 0 : i32
    return %arg0, %arg1, %c0_i32 : i32, i32, i32
  }
  func.func @transform_1(%arg0: i32, %arg1: i32, %arg2: i32) -> (i32, i32, i32) {
    %c0_i32 = arith.constant 0 : i32
    %c0_i32_0 = arith.constant 0 : i32
    return %arg0, %c0_i32, %arg2 : i32, i32, i32
  }
  func.func @transform_2(%arg0: i32, %arg1: i32, %arg2: i32) -> (i32, i32, i32) {
    %c0_i32 = arith.constant 0 : i32
    return %arg0, %arg1, %arg2 : i32, i32, i32
  }
  func.func @transform_3(%arg0: i32, %arg1: i32, %arg2: i32) -> (i32, i32, i32, i32) {
    %c0_i32 = arith.constant 0 : i32
    %c0_i32_0 = arith.constant 0 : i32
    return %arg0, %arg1, %c0_i32, %arg2 : i32, i32, i32, i32
  }
}

module attributes {stable_mosaic.version = 11 : i64} {
  func.func @_affine_act_kernel(%arg0: i32, %arg1: memref<32x2048xbf16, #tpu.memory_space<vmem>>, %arg2: memref<1x2048xf32, #tpu.memory_space<vmem>>, %arg3: memref<1x2048xf32, #tpu.memory_space<vmem>>, %arg4: memref<32x2048xbf16, #tpu.memory_space<vmem>>) attributes {dimension_semantics = [#tpu.dimension_semantics<parallel>], iteration_bounds = array<i64: 1>, scalar_prefetch = 0 : i64, scratch_operands = 0 : i64, tpu.core_type = #tpu.core_type<tc>, window_params = [{transform_indices = @transform_0, window_bounds = array<i64: 32, 2048>}, {pipeline_mode = #tpu.pipeline_mode<synchronous>, transform_indices = @transform_1, window_bounds = array<i64: 1, 2048>}, {pipeline_mode = #tpu.pipeline_mode<synchronous>, transform_indices = @transform_2, window_bounds = array<i64: 1, 2048>}, {transform_indices = @transform_3, window_bounds = array<i64: 32, 2048>}]} {
    %c0 = arith.constant 0 : index
    %c0_0 = arith.constant 0 : index
    %0 = vector.load %arg1[%c0, %c0_0] : memref<32x2048xbf16, #tpu.memory_space<vmem>>, vector<32x2048xbf16>
    %1 = arith.extf %0 : vector<32x2048xbf16> to vector<32x2048xf32>
    %c0_1 = arith.constant 0 : index
    %c0_2 = arith.constant 0 : index
    %2 = vector.load %arg2[%c0_1, %c0_2] : memref<1x2048xf32, #tpu.memory_space<vmem>>, vector<1x2048xf32>
    %3 = vector.broadcast %2 : vector<1x2048xf32> to vector<32x2048xf32>
    %4 = arith.mulf %1, %3 : vector<32x2048xf32>
    %c0_3 = arith.constant 0 : index
    %c0_4 = arith.constant 0 : index
    %5 = vector.load %arg3[%c0_3, %c0_4] : memref<1x2048xf32, #tpu.memory_space<vmem>>, vector<1x2048xf32>
    %6 = vector.broadcast %5 : vector<1x2048xf32> to vector<32x2048xf32>
    %7 = arith.addf %4, %6 : vector<32x2048xf32>
    %cst = arith.constant 0.000000e+00 : f32
    %8 = vector.broadcast %cst : f32 to vector<32x2048xf32>
    %9 = arith.maximumf %7, %8 : vector<32x2048xf32>
    %10 = arith.truncf %9 : vector<32x2048xf32> to vector<32x2048xbf16>
    %c0_5 = arith.constant 0 : index
    %c0_6 = arith.constant 0 : index
    %11 = vector.load %arg4[%c0_5, %c0_6] : memref<32x2048xbf16, #tpu.memory_space<vmem>>, vector<32x2048xbf16>
    tpu.vector_store %arg4[%c0_5, %c0_6], %10 {strides = array<i32>} : memref<32x2048xbf16, #tpu.memory_space<vmem>>, vector<32x2048xbf16>,
    return
  }
  func.func @transform_0(%arg0: i32) -> (i32, i32) {
    %c0_i32 = arith.constant 0 : i32
    %c0_i32_0 = arith.constant 0 : i32
    return %arg0, %c0_i32 : i32, i32
  }
  func.func @transform_1(%arg0: i32) -> (i32, i32) {
    %c0_i32 = arith.constant 0 : i32
    %c0_i32_0 = arith.constant 0 : i32
    %c0_i32_1 = arith.constant 0 : i32
    return %c0_i32, %c0_i32_0 : i32, i32
  }
  func.func @transform_2(%arg0: i32) -> (i32, i32) {
    %c0_i32 = arith.constant 0 : i32
    %c0_i32_0 = arith.constant 0 : i32
    %c0_i32_1 = arith.constant 0 : i32
    return %c0_i32, %c0_i32_0 : i32, i32
  }
  func.func @transform_3(%arg0: i32) -> (i32, i32) {
    %c0_i32 = arith.constant 0 : i32
    %c0_i32_0 = arith.constant 0 : i32
    return %arg0, %c0_i32 : i32, i32
  }
}

module attributes {stable_mosaic.version = 11 : i64} {
  func.func @_mm_stats_kernel(%arg0: i32, %arg1: i32, %arg2: i32, %arg3: memref<1x32x512xbf16, #tpu.memory_space<vmem>>, %arg4: memref<1x512x128xbf16, #tpu.memory_space<vmem>>, %arg5: memref<1x32x128xbf16, #tpu.memory_space<vmem>>, %arg6: memref<1x1x2x128xf32, #tpu.memory_space<vmem>>) attributes {dimension_semantics = [#tpu.dimension_semantics<parallel>, #tpu.dimension_semantics<parallel>, #tpu.dimension_semantics<parallel>], iteration_bounds = array<i64: 4, 1, 1>, scalar_prefetch = 0 : i64, scratch_operands = 0 : i64, tpu.core_type = #tpu.core_type<tc>, window_params = [{transform_indices = @transform_0, window_bounds = array<i64: 1, 32, 512>}, {transform_indices = @transform_1, window_bounds = array<i64: 1, 512, 128>}, {transform_indices = @transform_2, window_bounds = array<i64: 1, 32, 128>}, {transform_indices = @transform_3, window_bounds = array<i64: 1, 1, 2, 128>}]} {
    %c0 = arith.constant 0 : index
    %c0_0 = arith.constant 0 : index
    %c0_1 = arith.constant 0 : index
    %0 = vector.load %arg3[%c0, %c0_0, %c0_1] : memref<1x32x512xbf16, #tpu.memory_space<vmem>>, vector<1x32x512xbf16>
    %1 = vector.shape_cast %0 : vector<1x32x512xbf16> to vector<32x512xbf16>
    %c0_2 = arith.constant 0 : index
    %c0_3 = arith.constant 0 : index
    %c0_4 = arith.constant 0 : index
    %2 = vector.load %arg4[%c0_2, %c0_3, %c0_4] : memref<1x512x128xbf16, #tpu.memory_space<vmem>>, vector<1x512x128xbf16>
    %3 = vector.shape_cast %2 : vector<1x512x128xbf16> to vector<512x128xbf16>
    %cst = arith.constant dense<0.000000e+00> : vector<32x128xf32>
    %4 = tpu.matmul %1, %3, %cst {dimension_numbers = #tpu.dot_dimension_numbers<[1], [0], [0], [1], [0, 0, 1, 1], [], []>} : vector<32x512xbf16>, vector<512x128xbf16>, vector<32x128xf32> -> vector<32x128xf32>
    %5 = arith.truncf %4 : vector<32x128xf32> to vector<32x128xbf16>
    %c0_5 = arith.constant 0 : index
    %c0_6 = arith.constant 0 : index
    %c0_7 = arith.constant 0 : index
    %6 = vector.load %arg5[%c0_5, %c0_6, %c0_7] : memref<1x32x128xbf16, #tpu.memory_space<vmem>>, vector<1x32x128xbf16>
    %7 = vector.shape_cast %6 : vector<1x32x128xbf16> to vector<32x128xbf16>
    %8 = vector.shape_cast %5 : vector<32x128xbf16> to vector<1x32x128xbf16>
    tpu.vector_store %arg5[%c0_5, %c0_6, %c0_7], %8 {strides = array<i32>} : memref<1x32x128xbf16, #tpu.memory_space<vmem>>, vector<1x32x128xbf16>,
    %cst_8 = arith.constant dense<0.000000e+00> : vector<128xf32>
    %9 = vector.multi_reduction <add>, %4, %cst_8 [0] : vector<32x128xf32> to vector<128xf32>
    %10 = vector.shape_cast %9 : vector<128xf32> to vector<1x128xf32>
    %11 = arith.mulf %4, %4 : vector<32x128xf32>
    %cst_9 = arith.constant dense<0.000000e+00> : vector<128xf32>
    %12 = vector.multi_reduction <add>, %11, %cst_9 [0] : vector<32x128xf32> to vector<128xf32>
    %13 = vector.shape_cast %12 : vector<128xf32> to vector<1x128xf32>
    %14 = tpu.concatenate %10, %13 in 0 : vector<1x128xf32>, vector<1x128xf32> -> vector<2x128xf32>
    %c0_10 = arith.constant 0 : index
    %c0_11 = arith.constant 0 : index
    %c0_12 = arith.constant 0 : index
    %c0_13 = arith.constant 0 : index
    %15 = vector.load %arg6[%c0_10, %c0_11, %c0_12, %c0_13] : memref<1x1x2x128xf32, #tpu.memory_space<vmem>>, vector<1x1x2x128xf32>
    %16 = vector.shape_cast %15 : vector<1x1x2x128xf32> to vector<2x128xf32>
    %17 = vector.shape_cast %14 : vector<2x128xf32> to vector<1x1x2x128xf32>
    tpu.vector_store %arg6[%c0_10, %c0_11, %c0_12, %c0_13], %17 {strides = array<i32>} : memref<1x1x2x128xf32, #tpu.memory_space<vmem>>, vector<1x1x2x128xf32>,
    return
  }
  func.func @transform_0(%arg0: i32, %arg1: i32, %arg2: i32) -> (i32, i32, i32) {
    %c0_i32 = arith.constant 0 : i32
    %c0_i32_0 = arith.constant 0 : i32
    return %arg0, %arg1, %c0_i32 : i32, i32, i32
  }
  func.func @transform_1(%arg0: i32, %arg1: i32, %arg2: i32) -> (i32, i32, i32) {
    %c0_i32 = arith.constant 0 : i32
    %c0_i32_0 = arith.constant 0 : i32
    return %arg0, %c0_i32, %arg2 : i32, i32, i32
  }
  func.func @transform_2(%arg0: i32, %arg1: i32, %arg2: i32) -> (i32, i32, i32) {
    %c0_i32 = arith.constant 0 : i32
    return %arg0, %arg1, %arg2 : i32, i32, i32
  }
  func.func @transform_3(%arg0: i32, %arg1: i32, %arg2: i32) -> (i32, i32, i32, i32) {
    %c0_i32 = arith.constant 0 : i32
    %c0_i32_0 = arith.constant 0 : i32
    return %arg0, %arg1, %c0_i32, %arg2 : i32, i32, i32, i32
  }
}

module attributes {stable_mosaic.version = 11 : i64} {
  func.func @_affine_act_kernel(%arg0: i32, %arg1: memref<128x128xbf16, #tpu.memory_space<vmem>>, %arg2: memref<1x128xf32, #tpu.memory_space<vmem>>, %arg3: memref<1x128xf32, #tpu.memory_space<vmem>>, %arg4: memref<128x128xbf16, #tpu.memory_space<vmem>>) attributes {dimension_semantics = [#tpu.dimension_semantics<parallel>], iteration_bounds = array<i64: 1>, scalar_prefetch = 0 : i64, scratch_operands = 0 : i64, tpu.core_type = #tpu.core_type<tc>, window_params = [{transform_indices = @transform_0, window_bounds = array<i64: 128, 128>}, {pipeline_mode = #tpu.pipeline_mode<synchronous>, transform_indices = @transform_1, window_bounds = array<i64: 1, 128>}, {pipeline_mode = #tpu.pipeline_mode<synchronous>, transform_indices = @transform_2, window_bounds = array<i64: 1, 128>}, {transform_indices = @transform_3, window_bounds = array<i64: 128, 128>}]} {
    %c0 = arith.constant 0 : index
    %c0_0 = arith.constant 0 : index
    %0 = vector.load %arg1[%c0, %c0_0] : memref<128x128xbf16, #tpu.memory_space<vmem>>, vector<128x128xbf16>
    %1 = arith.extf %0 : vector<128x128xbf16> to vector<128x128xf32>
    %c0_1 = arith.constant 0 : index
    %c0_2 = arith.constant 0 : index
    %2 = vector.load %arg2[%c0_1, %c0_2] : memref<1x128xf32, #tpu.memory_space<vmem>>, vector<1x128xf32>
    %3 = vector.broadcast %2 : vector<1x128xf32> to vector<128x128xf32>
    %4 = arith.mulf %1, %3 : vector<128x128xf32>
    %c0_3 = arith.constant 0 : index
    %c0_4 = arith.constant 0 : index
    %5 = vector.load %arg3[%c0_3, %c0_4] : memref<1x128xf32, #tpu.memory_space<vmem>>, vector<1x128xf32>
    %6 = vector.broadcast %5 : vector<1x128xf32> to vector<128x128xf32>
    %7 = arith.addf %4, %6 : vector<128x128xf32>
    %cst = arith.constant 0.000000e+00 : f32
    %8 = vector.broadcast %cst : f32 to vector<128x128xf32>
    %9 = arith.maximumf %7, %8 : vector<128x128xf32>
    %10 = arith.truncf %9 : vector<128x128xf32> to vector<128x128xbf16>
    %c0_5 = arith.constant 0 : index
    %c0_6 = arith.constant 0 : index
    %11 = vector.load %arg4[%c0_5, %c0_6] : memref<128x128xbf16, #tpu.memory_space<vmem>>, vector<128x128xbf16>
    tpu.vector_store %arg4[%c0_5, %c0_6], %10 {strides = array<i32>} : memref<128x128xbf16, #tpu.memory_space<vmem>>, vector<128x128xbf16>,
    return
  }
  func.func @transform_0(%arg0: i32) -> (i32, i32) {
    %c0_i32 = arith.constant 0 : i32
    %c0_i32_0 = arith.constant 0 : i32
    return %arg0, %c0_i32 : i32, i32
  }
  func.func @transform_1(%arg0: i32) -> (i32, i32) {
    %c0_i32 = arith.constant 0 : i32
    %c0_i32_0 = arith.constant 0 : i32
    %c0_i32_1 = arith.constant 0 : i32
    return %c0_i32, %c0_i32_0 : i32, i32
  }
  func.func @transform_2(%arg0: i32) -> (i32, i32) {
    %c0_i32 = arith.constant 0 : i32
    %c0_i32_0 = arith.constant 0 : i32
    %c0_i32_1 = arith.constant 0 : i32
    return %c0_i32, %c0_i32_0 : i32, i32
  }
  func.func @transform_3(%arg0: i32) -> (i32, i32) {
    %c0_i32 = arith.constant 0 : i32
    %c0_i32_0 = arith.constant 0 : i32
    return %arg0, %c0_i32 : i32, i32
  }
}

module attributes {stable_mosaic.version = 11 : i64} {
  func.func @_mm_stats_kernel(%arg0: i32, %arg1: i32, %arg2: i32, %arg3: memref<1x128x256xbf16, #tpu.memory_space<vmem>>, %arg4: memref<1x256x128xbf16, #tpu.memory_space<vmem>>, %arg5: memref<1x128x128xbf16, #tpu.memory_space<vmem>>, %arg6: memref<1x1x2x128xf32, #tpu.memory_space<vmem>>) attributes {dimension_semantics = [#tpu.dimension_semantics<parallel>, #tpu.dimension_semantics<parallel>, #tpu.dimension_semantics<parallel>], iteration_bounds = array<i64: 4, 1, 1>, scalar_prefetch = 0 : i64, scratch_operands = 0 : i64, tpu.core_type = #tpu.core_type<tc>, window_params = [{transform_indices = @transform_0, window_bounds = array<i64: 1, 128, 256>}, {transform_indices = @transform_1, window_bounds = array<i64: 1, 256, 128>}, {transform_indices = @transform_2, window_bounds = array<i64: 1, 128, 128>}, {transform_indices = @transform_3, window_bounds = array<i64: 1, 1, 2, 128>}]} {
    %c0 = arith.constant 0 : index
    %c0_0 = arith.constant 0 : index
    %c0_1 = arith.constant 0 : index
    %0 = vector.load %arg3[%c0, %c0_0, %c0_1] : memref<1x128x256xbf16, #tpu.memory_space<vmem>>, vector<1x128x256xbf16>
    %1 = vector.shape_cast %0 : vector<1x128x256xbf16> to vector<128x256xbf16>
    %c0_2 = arith.constant 0 : index
    %c0_3 = arith.constant 0 : index
    %c0_4 = arith.constant 0 : index
    %2 = vector.load %arg4[%c0_2, %c0_3, %c0_4] : memref<1x256x128xbf16, #tpu.memory_space<vmem>>, vector<1x256x128xbf16>
    %3 = vector.shape_cast %2 : vector<1x256x128xbf16> to vector<256x128xbf16>
    %cst = arith.constant dense<0.000000e+00> : vector<128x128xf32>
    %4 = tpu.matmul %1, %3, %cst {dimension_numbers = #tpu.dot_dimension_numbers<[1], [0], [0], [1], [0, 0, 1, 1], [], []>} : vector<128x256xbf16>, vector<256x128xbf16>, vector<128x128xf32> -> vector<128x128xf32>
    %5 = arith.truncf %4 : vector<128x128xf32> to vector<128x128xbf16>
    %c0_5 = arith.constant 0 : index
    %c0_6 = arith.constant 0 : index
    %c0_7 = arith.constant 0 : index
    %6 = vector.load %arg5[%c0_5, %c0_6, %c0_7] : memref<1x128x128xbf16, #tpu.memory_space<vmem>>, vector<1x128x128xbf16>
    %7 = vector.shape_cast %6 : vector<1x128x128xbf16> to vector<128x128xbf16>
    %8 = vector.shape_cast %5 : vector<128x128xbf16> to vector<1x128x128xbf16>
    tpu.vector_store %arg5[%c0_5, %c0_6, %c0_7], %8 {strides = array<i32>} : memref<1x128x128xbf16, #tpu.memory_space<vmem>>, vector<1x128x128xbf16>,
    %cst_8 = arith.constant dense<0.000000e+00> : vector<128xf32>
    %9 = vector.multi_reduction <add>, %4, %cst_8 [0] : vector<128x128xf32> to vector<128xf32>
    %10 = vector.shape_cast %9 : vector<128xf32> to vector<1x128xf32>
    %11 = arith.mulf %4, %4 : vector<128x128xf32>
    %cst_9 = arith.constant dense<0.000000e+00> : vector<128xf32>
    %12 = vector.multi_reduction <add>, %11, %cst_9 [0] : vector<128x128xf32> to vector<128xf32>
    %13 = vector.shape_cast %12 : vector<128xf32> to vector<1x128xf32>
    %14 = tpu.concatenate %10, %13 in 0 : vector<1x128xf32>, vector<1x128xf32> -> vector<2x128xf32>
    %c0_10 = arith.constant 0 : index
    %c0_11 = arith.constant 0 : index
    %c0_12 = arith.constant 0 : index
    %c0_13 = arith.constant 0 : index
    %15 = vector.load %arg6[%c0_10, %c0_11, %c0_12, %c0_13] : memref<1x1x2x128xf32, #tpu.memory_space<vmem>>, vector<1x1x2x128xf32>
    %16 = vector.shape_cast %15 : vector<1x1x2x128xf32> to vector<2x128xf32>
    %17 = vector.shape_cast %14 : vector<2x128xf32> to vector<1x1x2x128xf32>
    tpu.vector_store %arg6[%c0_10, %c0_11, %c0_12, %c0_13], %17 {strides = array<i32>} : memref<1x1x2x128xf32, #tpu.memory_space<vmem>>, vector<1x1x2x128xf32>,
    return
  }
  func.func @transform_0(%arg0: i32, %arg1: i32, %arg2: i32) -> (i32, i32, i32) {
    %c0_i32 = arith.constant 0 : i32
    %c0_i32_0 = arith.constant 0 : i32
    return %arg0, %arg1, %c0_i32 : i32, i32, i32
  }
  func.func @transform_1(%arg0: i32, %arg1: i32, %arg2: i32) -> (i32, i32, i32) {
    %c0_i32 = arith.constant 0 : i32
    %c0_i32_0 = arith.constant 0 : i32
    return %arg0, %c0_i32, %arg2 : i32, i32, i32
  }
  func.func @transform_2(%arg0: i32, %arg1: i32, %arg2: i32) -> (i32, i32, i32) {
    %c0_i32 = arith.constant 0 : i32
    return %arg0, %arg1, %arg2 : i32, i32, i32
  }
  func.func @transform_3(%arg0: i32, %arg1: i32, %arg2: i32) -> (i32, i32, i32, i32) {
    %c0_i32 = arith.constant 0 : i32
    %c0_i32_0 = arith.constant 0 : i32
    return %arg0, %arg1, %c0_i32, %arg2 : i32, i32, i32, i32
  }
}

module attributes {stable_mosaic.version = 11 : i64} {
  func.func @_affine_act_kernel(%arg0: i32, %arg1: memref<512x128xbf16, #tpu.memory_space<vmem>>, %arg2: memref<1x128xf32, #tpu.memory_space<vmem>>, %arg3: memref<1x128xf32, #tpu.memory_space<vmem>>, %arg4: memref<512x128xbf16, #tpu.memory_space<vmem>>) attributes {dimension_semantics = [#tpu.dimension_semantics<parallel>], iteration_bounds = array<i64: 1>, scalar_prefetch = 0 : i64, scratch_operands = 0 : i64, tpu.core_type = #tpu.core_type<tc>, window_params = [{transform_indices = @transform_0, window_bounds = array<i64: 512, 128>}, {pipeline_mode = #tpu.pipeline_mode<synchronous>, transform_indices = @transform_1, window_bounds = array<i64: 1, 128>}, {pipeline_mode = #tpu.pipeline_mode<synchronous>, transform_indices = @transform_2, window_bounds = array<i64: 1, 128>}, {transform_indices = @transform_3, window_bounds = array<i64: 512, 128>}]} {
    %c0 = arith.constant 0 : index
    %c0_0 = arith.constant 0 : index
    %0 = vector.load %arg1[%c0, %c0_0] : memref<512x128xbf16, #tpu.memory_space<vmem>>, vector<512x128xbf16>
    %1 = arith.extf %0 : vector<512x128xbf16> to vector<512x128xf32>
    %c0_1 = arith.constant 0 : index
    %c0_2 = arith.constant 0 : index
    %2 = vector.load %arg2[%c0_1, %c0_2] : memref<1x128xf32, #tpu.memory_space<vmem>>, vector<1x128xf32>
    %3 = vector.broadcast %2 : vector<1x128xf32> to vector<512x128xf32>
    %4 = arith.mulf %1, %3 : vector<512x128xf32>
    %c0_3 = arith.constant 0 : index
    %c0_4 = arith.constant 0 : index
    %5 = vector.load %arg3[%c0_3, %c0_4] : memref<1x128xf32, #tpu.memory_space<vmem>>, vector<1x128xf32>
    %6 = vector.broadcast %5 : vector<1x128xf32> to vector<512x128xf32>
    %7 = arith.addf %4, %6 : vector<512x128xf32>
    %cst = arith.constant 0.000000e+00 : f32
    %8 = vector.broadcast %cst : f32 to vector<512x128xf32>
    %9 = arith.maximumf %7, %8 : vector<512x128xf32>
    %10 = arith.truncf %9 : vector<512x128xf32> to vector<512x128xbf16>
    %c0_5 = arith.constant 0 : index
    %c0_6 = arith.constant 0 : index
    %11 = vector.load %arg4[%c0_5, %c0_6] : memref<512x128xbf16, #tpu.memory_space<vmem>>, vector<512x128xbf16>
    tpu.vector_store %arg4[%c0_5, %c0_6], %10 {strides = array<i32>} : memref<512x128xbf16, #tpu.memory_space<vmem>>, vector<512x128xbf16>,
    return
  }
  func.func @transform_0(%arg0: i32) -> (i32, i32) {
    %c0_i32 = arith.constant 0 : i32
    %c0_i32_0 = arith.constant 0 : i32
    return %arg0, %c0_i32 : i32, i32
  }
  func.func @transform_1(%arg0: i32) -> (i32, i32) {
    %c0_i32 = arith.constant 0 : i32
    %c0_i32_0 = arith.constant 0 : i32
    %c0_i32_1 = arith.constant 0 : i32
    return %c0_i32, %c0_i32_0 : i32, i32
  }
  func.func @transform_2(%arg0: i32) -> (i32, i32) {
    %c0_i32 = arith.constant 0 : i32
    %c0_i32_0 = arith.constant 0 : i32
    %c0_i32_1 = arith.constant 0 : i32
    return %c0_i32, %c0_i32_0 : i32, i32
  }
  func.func @transform_3(%arg0: i32) -> (i32, i32) {
    %c0_i32 = arith.constant 0 : i32
    %c0_i32_0 = arith.constant 0 : i32
    return %arg0, %c0_i32 : i32, i32
  }
}

module attributes {stable_mosaic.version = 11 : i64} {
  func.func @_mm_stats_kernel(%arg0: i32, %arg1: i32, %arg2: i32, %arg3: memref<1x256x128xbf16, #tpu.memory_space<vmem>>, %arg4: memref<1x128x128xbf16, #tpu.memory_space<vmem>>, %arg5: memref<1x256x128xbf16, #tpu.memory_space<vmem>>, %arg6: memref<1x1x2x128xf32, #tpu.memory_space<vmem>>) attributes {dimension_semantics = [#tpu.dimension_semantics<parallel>, #tpu.dimension_semantics<parallel>, #tpu.dimension_semantics<parallel>], iteration_bounds = array<i64: 4, 2, 1>, scalar_prefetch = 0 : i64, scratch_operands = 0 : i64, tpu.core_type = #tpu.core_type<tc>, window_params = [{transform_indices = @transform_0, window_bounds = array<i64: 1, 256, 128>}, {transform_indices = @transform_1, window_bounds = array<i64: 1, 128, 128>}, {transform_indices = @transform_2, window_bounds = array<i64: 1, 256, 128>}, {transform_indices = @transform_3, window_bounds = array<i64: 1, 1, 2, 128>}]} {
    %c0 = arith.constant 0 : index
    %c0_0 = arith.constant 0 : index
    %c0_1 = arith.constant 0 : index
    %0 = vector.load %arg3[%c0, %c0_0, %c0_1] : memref<1x256x128xbf16, #tpu.memory_space<vmem>>, vector<1x256x128xbf16>
    %1 = vector.shape_cast %0 : vector<1x256x128xbf16> to vector<256x128xbf16>
    %c0_2 = arith.constant 0 : index
    %c0_3 = arith.constant 0 : index
    %c0_4 = arith.constant 0 : index
    %2 = vector.load %arg4[%c0_2, %c0_3, %c0_4] : memref<1x128x128xbf16, #tpu.memory_space<vmem>>, vector<1x128x128xbf16>
    %3 = vector.shape_cast %2 : vector<1x128x128xbf16> to vector<128x128xbf16>
    %cst = arith.constant dense<0.000000e+00> : vector<256x128xf32>
    %4 = tpu.matmul %1, %3, %cst {dimension_numbers = #tpu.dot_dimension_numbers<[1], [0], [0], [1], [0, 0, 1, 1], [], []>} : vector<256x128xbf16>, vector<128x128xbf16>, vector<256x128xf32> -> vector<256x128xf32>
    %5 = arith.truncf %4 : vector<256x128xf32> to vector<256x128xbf16>
    %c0_5 = arith.constant 0 : index
    %c0_6 = arith.constant 0 : index
    %c0_7 = arith.constant 0 : index
    %6 = vector.load %arg5[%c0_5, %c0_6, %c0_7] : memref<1x256x128xbf16, #tpu.memory_space<vmem>>, vector<1x256x128xbf16>
    %7 = vector.shape_cast %6 : vector<1x256x128xbf16> to vector<256x128xbf16>
    %8 = vector.shape_cast %5 : vector<256x128xbf16> to vector<1x256x128xbf16>
    tpu.vector_store %arg5[%c0_5, %c0_6, %c0_7], %8 {strides = array<i32>} : memref<1x256x128xbf16, #tpu.memory_space<vmem>>, vector<1x256x128xbf16>,
    %cst_8 = arith.constant dense<0.000000e+00> : vector<128xf32>
    %9 = vector.multi_reduction <add>, %4, %cst_8 [0] : vector<256x128xf32> to vector<128xf32>
    %10 = vector.shape_cast %9 : vector<128xf32> to vector<1x128xf32>
    %11 = arith.mulf %4, %4 : vector<256x128xf32>
    %cst_9 = arith.constant dense<0.000000e+00> : vector<128xf32>
    %12 = vector.multi_reduction <add>, %11, %cst_9 [0] : vector<256x128xf32> to vector<128xf32>
    %13 = vector.shape_cast %12 : vector<128xf32> to vector<1x128xf32>
    %14 = tpu.concatenate %10, %13 in 0 : vector<1x128xf32>, vector<1x128xf32> -> vector<2x128xf32>
    %c0_10 = arith.constant 0 : index
    %c0_11 = arith.constant 0 : index
    %c0_12 = arith.constant 0 : index
    %c0_13 = arith.constant 0 : index
    %15 = vector.load %arg6[%c0_10, %c0_11, %c0_12, %c0_13] : memref<1x1x2x128xf32, #tpu.memory_space<vmem>>, vector<1x1x2x128xf32>
    %16 = vector.shape_cast %15 : vector<1x1x2x128xf32> to vector<2x128xf32>
    %17 = vector.shape_cast %14 : vector<2x128xf32> to vector<1x1x2x128xf32>
    tpu.vector_store %arg6[%c0_10, %c0_11, %c0_12, %c0_13], %17 {strides = array<i32>} : memref<1x1x2x128xf32, #tpu.memory_space<vmem>>, vector<1x1x2x128xf32>,
    return
  }
  func.func @transform_0(%arg0: i32, %arg1: i32, %arg2: i32) -> (i32, i32, i32) {
    %c0_i32 = arith.constant 0 : i32
    %c0_i32_0 = arith.constant 0 : i32
    return %arg0, %arg1, %c0_i32 : i32, i32, i32
  }
  func.func @transform_1(%arg0: i32, %arg1: i32, %arg2: i32) -> (i32, i32, i32) {
    %c0_i32 = arith.constant 0 : i32
    %c0_i32_0 = arith.constant 0 : i32
    return %arg0, %c0_i32, %arg2 : i32, i32, i32
  }
  func.func @transform_2(%arg0: i32, %arg1: i32, %arg2: i32) -> (i32, i32, i32) {
    %c0_i32 = arith.constant 0 : i32
    return %arg0, %arg1, %arg2 : i32, i32, i32
  }
  func.func @transform_3(%arg0: i32, %arg1: i32, %arg2: i32) -> (i32, i32, i32, i32) {
    %c0_i32 = arith.constant 0 : i32
    %c0_i32_0 = arith.constant 0 : i32
    return %arg0, %arg1, %c0_i32, %arg2 : i32, i32, i32, i32
  }
}

module attributes {stable_mosaic.version = 11 : i64} {
  func.func @_affine_act_kernel(%arg0: i32, %arg1: memref<512x128xbf16, #tpu.memory_space<vmem>>, %arg2: memref<1x128xf32, #tpu.memory_space<vmem>>, %arg3: memref<1x128xf32, #tpu.memory_space<vmem>>, %arg4: memref<512x128xbf16, #tpu.memory_space<vmem>>) attributes {dimension_semantics = [#tpu.dimension_semantics<parallel>], iteration_bounds = array<i64: 4>, scalar_prefetch = 0 : i64, scratch_operands = 0 : i64, tpu.core_type = #tpu.core_type<tc>, window_params = [{transform_indices = @transform_0, window_bounds = array<i64: 512, 128>}, {pipeline_mode = #tpu.pipeline_mode<synchronous>, transform_indices = @transform_1, window_bounds = array<i64: 1, 128>}, {pipeline_mode = #tpu.pipeline_mode<synchronous>, transform_indices = @transform_2, window_bounds = array<i64: 1, 128>}, {transform_indices = @transform_3, window_bounds = array<i64: 512, 128>}]} {
    %c0 = arith.constant 0 : index
    %c0_0 = arith.constant 0 : index
    %0 = vector.load %arg1[%c0, %c0_0] : memref<512x128xbf16, #tpu.memory_space<vmem>>, vector<512x128xbf16>
    %1 = arith.extf %0 : vector<512x128xbf16> to vector<512x128xf32>
    %c0_1 = arith.constant 0 : index
    %c0_2 = arith.constant 0 : index
    %2 = vector.load %arg2[%c0_1, %c0_2] : memref<1x128xf32, #tpu.memory_space<vmem>>, vector<1x128xf32>
    %3 = vector.broadcast %2 : vector<1x128xf32> to vector<512x128xf32>
    %4 = arith.mulf %1, %3 : vector<512x128xf32>
    %c0_3 = arith.constant 0 : index
    %c0_4 = arith.constant 0 : index
    %5 = vector.load %arg3[%c0_3, %c0_4] : memref<1x128xf32, #tpu.memory_space<vmem>>, vector<1x128xf32>
    %6 = vector.broadcast %5 : vector<1x128xf32> to vector<512x128xf32>
    %7 = arith.addf %4, %6 : vector<512x128xf32>
    %cst = arith.constant 0.000000e+00 : f32
    %8 = vector.broadcast %cst : f32 to vector<512x128xf32>
    %9 = arith.maximumf %7, %8 : vector<512x128xf32>
    %10 = arith.truncf %9 : vector<512x128xf32> to vector<512x128xbf16>
    %c0_5 = arith.constant 0 : index
    %c0_6 = arith.constant 0 : index
    %11 = vector.load %arg4[%c0_5, %c0_6] : memref<512x128xbf16, #tpu.memory_space<vmem>>, vector<512x128xbf16>
    tpu.vector_store %arg4[%c0_5, %c0_6], %10 {strides = array<i32>} : memref<512x128xbf16, #tpu.memory_space<vmem>>, vector<512x128xbf16>,
    return
  }
  func.func @transform_0(%arg0: i32) -> (i32, i32) {
    %c0_i32 = arith.constant 0 : i32
    %c0_i32_0 = arith.constant 0 : i32
    return %arg0, %c0_i32 : i32, i32
  }
  func.func @transform_1(%arg0: i32) -> (i32, i32) {
    %c0_i32 = arith.constant 0 : i32
    %c0_i32_0 = arith.constant 0 : i32
    %c0_i32_1 = arith.constant 0 : i32
    return %c0_i32, %c0_i32_0 : i32, i32
  }
  func.func @transform_2(%arg0: i32) -> (i32, i32) {
    %c0_i32 = arith.constant 0 : i32
    %c0_i32_0 = arith.constant 0 : i32
    %c0_i32_1 = arith.constant 0 : i32
    return %c0_i32, %c0_i32_0 : i32, i32
  }
  func.func @transform_3(%arg0: i32) -> (i32, i32) {
    %c0_i32 = arith.constant 0 : i32
    %c0_i32_0 = arith.constant 0 : i32
    return %arg0, %c0_i32 : i32, i32
  }
}

module attributes {stable_mosaic.version = 11 : i64} {
  func.func @_mm_stats_kernel(%arg0: i32, %arg1: i32, %arg2: i32, %arg3: memref<1x256x128xbf16, #tpu.memory_space<vmem>>, %arg4: memref<1x128x128xbf16, #tpu.memory_space<vmem>>, %arg5: memref<1x256x128xbf16, #tpu.memory_space<vmem>>, %arg6: memref<1x1x2x128xf32, #tpu.memory_space<vmem>>) attributes {dimension_semantics = [#tpu.dimension_semantics<parallel>, #tpu.dimension_semantics<parallel>, #tpu.dimension_semantics<parallel>], iteration_bounds = array<i64: 4, 8, 1>, scalar_prefetch = 0 : i64, scratch_operands = 0 : i64, tpu.core_type = #tpu.core_type<tc>, window_params = [{transform_indices = @transform_0, window_bounds = array<i64: 1, 256, 128>}, {transform_indices = @transform_1, window_bounds = array<i64: 1, 128, 128>}, {transform_indices = @transform_2, window_bounds = array<i64: 1, 256, 128>}, {transform_indices = @transform_3, window_bounds = array<i64: 1, 1, 2, 128>}]} {
    %c0 = arith.constant 0 : index
    %c0_0 = arith.constant 0 : index
    %c0_1 = arith.constant 0 : index
    %0 = vector.load %arg3[%c0, %c0_0, %c0_1] : memref<1x256x128xbf16, #tpu.memory_space<vmem>>, vector<1x256x128xbf16>
    %1 = vector.shape_cast %0 : vector<1x256x128xbf16> to vector<256x128xbf16>
    %c0_2 = arith.constant 0 : index
    %c0_3 = arith.constant 0 : index
    %c0_4 = arith.constant 0 : index
    %2 = vector.load %arg4[%c0_2, %c0_3, %c0_4] : memref<1x128x128xbf16, #tpu.memory_space<vmem>>, vector<1x128x128xbf16>
    %3 = vector.shape_cast %2 : vector<1x128x128xbf16> to vector<128x128xbf16>
    %cst = arith.constant dense<0.000000e+00> : vector<256x128xf32>
    %4 = tpu.matmul %1, %3, %cst {dimension_numbers = #tpu.dot_dimension_numbers<[1], [0], [0], [1], [0, 0, 1, 1], [], []>} : vector<256x128xbf16>, vector<128x128xbf16>, vector<256x128xf32> -> vector<256x128xf32>
    %5 = arith.truncf %4 : vector<256x128xf32> to vector<256x128xbf16>
    %c0_5 = arith.constant 0 : index
    %c0_6 = arith.constant 0 : index
    %c0_7 = arith.constant 0 : index
    %6 = vector.load %arg5[%c0_5, %c0_6, %c0_7] : memref<1x256x128xbf16, #tpu.memory_space<vmem>>, vector<1x256x128xbf16>
    %7 = vector.shape_cast %6 : vector<1x256x128xbf16> to vector<256x128xbf16>
    %8 = vector.shape_cast %5 : vector<256x128xbf16> to vector<1x256x128xbf16>
    tpu.vector_store %arg5[%c0_5, %c0_6, %c0_7], %8 {strides = array<i32>} : memref<1x256x128xbf16, #tpu.memory_space<vmem>>, vector<1x256x128xbf16>,
    %cst_8 = arith.constant dense<0.000000e+00> : vector<128xf32>
    %9 = vector.multi_reduction <add>, %4, %cst_8 [0] : vector<256x128xf32> to vector<128xf32>
    %10 = vector.shape_cast %9 : vector<128xf32> to vector<1x128xf32>
    %11 = arith.mulf %4, %4 : vector<256x128xf32>
    %cst_9 = arith.constant dense<0.000000e+00> : vector<128xf32>
    %12 = vector.multi_reduction <add>, %11, %cst_9 [0] : vector<256x128xf32> to vector<128xf32>
    %13 = vector.shape_cast %12 : vector<128xf32> to vector<1x128xf32>
    %14 = tpu.concatenate %10, %13 in 0 : vector<1x128xf32>, vector<1x128xf32> -> vector<2x128xf32>
    %c0_10 = arith.constant 0 : index
    %c0_11 = arith.constant 0 : index
    %c0_12 = arith.constant 0 : index
    %c0_13 = arith.constant 0 : index
    %15 = vector.load %arg6[%c0_10, %c0_11, %c0_12, %c0_13] : memref<1x1x2x128xf32, #tpu.memory_space<vmem>>, vector<1x1x2x128xf32>
    %16 = vector.shape_cast %15 : vector<1x1x2x128xf32> to vector<2x128xf32>
    %17 = vector.shape_cast %14 : vector<2x128xf32> to vector<1x1x2x128xf32>
    tpu.vector_store %arg6[%c0_10, %c0_11, %c0_12, %c0_13], %17 {strides = array<i32>} : memref<1x1x2x128xf32, #tpu.memory_space<vmem>>, vector<1x1x2x128xf32>,
    return
  }
  func.func @transform_0(%arg0: i32, %arg1: i32, %arg2: i32) -> (i32, i32, i32) {
    %c0_i32 = arith.constant 0 : i32
    %c0_i32_0 = arith.constant 0 : i32
    return %arg0, %arg1, %c0_i32 : i32, i32, i32
  }
  func.func @transform_1(%arg0: i32, %arg1: i32, %arg2: i32) -> (i32, i32, i32) {
    %c0_i32 = arith.constant 0 : i32
    %c0_i32_0 = arith.constant 0 : i32
    return %arg0, %c0_i32, %arg2 : i32, i32, i32
  }
  func.func @transform_2(%arg0: i32, %arg1: i32, %arg2: i32) -> (i32, i32, i32) {
    %c0_i32 = arith.constant 0 : i32
    return %arg0, %arg1, %arg2 : i32, i32, i32
  }
  func.func @transform_3(%arg0: i32, %arg1: i32, %arg2: i32) -> (i32, i32, i32, i32) {
    %c0_i32 = arith.constant 0 : i32
    %c0_i32_0 = arith.constant 0 : i32
    return %arg0, %arg1, %c0_i32, %arg2 : i32, i32, i32, i32
  }
}

module attributes {stable_mosaic.version = 11 : i64} {
  func.func @_affine_act_kernel(%arg0: i32, %arg1: memref<48x512xbf16, #tpu.memory_space<vmem>>, %arg2: memref<1x512xf32, #tpu.memory_space<vmem>>, %arg3: memref<1x512xf32, #tpu.memory_space<vmem>>, %arg4: memref<48x512xf32, #tpu.memory_space<vmem>>) attributes {dimension_semantics = [#tpu.dimension_semantics<parallel>], iteration_bounds = array<i64: 1>, scalar_prefetch = 0 : i64, scratch_operands = 0 : i64, tpu.core_type = #tpu.core_type<tc>, window_params = [{transform_indices = @transform_0, window_bounds = array<i64: 48, 512>}, {pipeline_mode = #tpu.pipeline_mode<synchronous>, transform_indices = @transform_1, window_bounds = array<i64: 1, 512>}, {pipeline_mode = #tpu.pipeline_mode<synchronous>, transform_indices = @transform_2, window_bounds = array<i64: 1, 512>}, {transform_indices = @transform_3, window_bounds = array<i64: 48, 512>}]} {
    %c0 = arith.constant 0 : index
    %c0_0 = arith.constant 0 : index
    %0 = vector.load %arg1[%c0, %c0_0] : memref<48x512xbf16, #tpu.memory_space<vmem>>, vector<48x512xbf16>
    %1 = arith.extf %0 : vector<48x512xbf16> to vector<48x512xf32>
    %c0_1 = arith.constant 0 : index
    %c0_2 = arith.constant 0 : index
    %2 = vector.load %arg2[%c0_1, %c0_2] : memref<1x512xf32, #tpu.memory_space<vmem>>, vector<1x512xf32>
    %3 = vector.broadcast %2 : vector<1x512xf32> to vector<48x512xf32>
    %4 = arith.mulf %1, %3 : vector<48x512xf32>
    %c0_3 = arith.constant 0 : index
    %c0_4 = arith.constant 0 : index
    %5 = vector.load %arg3[%c0_3, %c0_4] : memref<1x512xf32, #tpu.memory_space<vmem>>, vector<1x512xf32>
    %6 = vector.broadcast %5 : vector<1x512xf32> to vector<48x512xf32>
    %7 = arith.addf %4, %6 : vector<48x512xf32>
    %8 = math.tanh %7 : vector<48x512xf32>
    %c0_5 = arith.constant 0 : index
    %c0_6 = arith.constant 0 : index
    %9 = vector.load %arg4[%c0_5, %c0_6] : memref<48x512xf32, #tpu.memory_space<vmem>>, vector<48x512xf32>
    tpu.vector_store %arg4[%c0_5, %c0_6], %8 {strides = array<i32>} : memref<48x512xf32, #tpu.memory_space<vmem>>, vector<48x512xf32>,
    return
  }
  func.func @transform_0(%arg0: i32) -> (i32, i32) {
    %c0_i32 = arith.constant 0 : i32
    %c0_i32_0 = arith.constant 0 : i32
    return %arg0, %c0_i32 : i32, i32
  }
  func.func @transform_1(%arg0: i32) -> (i32, i32) {
    %c0_i32 = arith.constant 0 : i32
    %c0_i32_0 = arith.constant 0 : i32
    %c0_i32_1 = arith.constant 0 : i32
    return %c0_i32, %c0_i32_0 : i32, i32
  }
  func.func @transform_2(%arg0: i32) -> (i32, i32) {
    %c0_i32 = arith.constant 0 : i32
    %c0_i32_0 = arith.constant 0 : i32
    %c0_i32_1 = arith.constant 0 : i32
    return %c0_i32, %c0_i32_0 : i32, i32
  }
  func.func @transform_3(%arg0: i32) -> (i32, i32) {
    %c0_i32 = arith.constant 0 : i32
    %c0_i32_0 = arith.constant 0 : i32
    return %arg0, %c0_i32 : i32, i32
  }
}

</mosaic_0001>

<bundles_post_ra>
// kernel: tile.13
= control target key start
LH: loop header
LB: loop body
LE: loop exit
PB: predicated region body
PF: predicated region fallthrough
CT: control target
= control target key end

     0   :  { %s28_s0 = inlined_call_operand.vmem [shape: f32[128], index: 0, kind: input, shape index: {}]   ;;  %s29_s1 = inlined_call_operand.vmem [shape: f32[16,128], index: 1, kind: output, shape index: {}]  }
   0x1   :  { %v4_v0 = vld [vmem:[%s28_s0] ss:$0 sm:$0xff] }
   0x2   :  { %5 = vst [vmem:[%s29_s1] sm:$0xff] %v4_v0  ;;  %8 = vst [vmem:[%s29_s1 + $0x8] sm:$0xff] %v4_v0 }

// kernel: generator_forward.10
= control target key start
LH: loop header
LB: loop body
LE: loop exit
PB: predicated region body
PF: predicated region fallthrough
CT: control target
= control target key end

     0   :  { %s1267_s12 = smov 0   ;;  %s1269_s13 = smov 0   ;;  %s1477_s0 = inlined_call_operand.vmem [shape: bf16[1,32,128], index: 0, kind: input, shape index: {}]   ;;  %s1478_s1 = inlined_call_operand.vmem [shape: bf16[1,128,2048], index: 1, kind: input, shape index: {}]   ;;  %s1479_s2 = inlined_call_operand.vmem [shape: bf16[1,32,2048], index: 2, kind: output, shape index: {0}]   ;;  %s1480_s3 = inlined_call_operand.vmem [shape: f32[1,1,2,2048], index: 3, kind: output, shape index: {1}]  }
   0x1   :  { %s1271_s14 = smov 0   ;;  %s1273_s15 = smov 0  }
   0x2   :  { %s1275_s16 = smov 0  }
   0x3 LB: > { %s26_s17 = sadd.s32 1, %s1239_s15  ;;  %s1043_s18 = sadd.s32 4294967295, %s1243_s16   ;;  %s1243_s16 = sphi %s1275_s16, %s14_s16   ;;  %s1239_s15 = sphi %s1273_s15, %s1485_s15   ;;  %s1235_s14 = sphi %s1271_s14, %s1484_s14   ;;  %s1231_s13 = sphi %s1269_s13, %s1483_s13   ;;  %s1227_s12 = sphi %s1267_s12, %s1482_s12  }
   0x4   : > { %p27_p0 = scmp.ge.s32.totalorder %s26_s17, 4  ;;  %p77_p1 = scmp.ne.s32.totalorder %s1231_s13, %s1227_s12 }
   0x5   : > { %p78_p2 = scmp.eq.s32.totalorder %s1243_s16, 0  ;;  %p111_p4 = scmp.eq.s32.totalorder %s1043_s18, 3 }
   0x6   : > { %s1487_s17 = smov (%p27_p0, %s26_s17), 0  ;;  %s70_s20 = sadd.s32 1, %s1231_s13 }
   0x7   : > { %p79_p3 = por %p78_p2, %p77_p1  ;;  %s66_s19 = ssub.s32 %s1239_s15, %s1487_s17 }
   0x8   : > { %p68_p5 = scmp.eq.s32.totalorder %s66_s19, 0  ;;  %p1302_p6 = por %p111_p4, %p77_p1 }
   0x9   : > { %p1047_p7 = scmp.ge.s32.totalorder %s1243_s16, 4 }
   0xa   : > { %s1307_s22 = scalar_select %p68_p5, %s1231_s13, %s70_s20  }
   0xb   : > { %176 = sbr.rel (%p1047_p7) target bundleno = 36 (0x24), region = 20 }
  0x10   : > { %179 = sbr.rel (!%p79_p3) target bundleno = 36 (0x24), region = 24  ;;  %s181_s23 = sand.u32 (%p79_p3), 1, %s1231_s13  }
  0x11   : > { %s1103_s24 = sshll.u32 (%p79_p3), %s1239_s15, 4  ;;  %s1048_s25 = sshll.u32 (%p79_p3), %s181_s23, 8 }
  0x12   : > { %s1315_s28 = scalar_lea.vmem (%p79_p3), %s1478_s1, %s1103_s24  ;;  %s1320_s29 = scalar_lea.vmem (%p79_p3), [#allocation2], %s1048_s25 }
  0x13   : > { %v201_v0 = vld [vmem:[%s1315_s28] sm:$0xff] (%p79_p3)  ;;  %v203_v1 = vld [vmem:[%s1315_s28 + $0x8] sm:$0xff] (%p79_p3) }
  0x14   : > { %v205_v2 = vld [vmem:[%s1315_s28 + $0x40] sm:$0xff] (%p79_p3)  ;;  %202 = vst [vmem:[%s1320_s29] sm:$0xff] (%p79_p3), %v201_v0  ;;  %204 = vst [vmem:[%s1320_s29 + $0x8] sm:$0xff] (%p79_p3), %v203_v1  ;;  %v207_v3 = vld [vmem:[%s1315_s28 + $0x48] sm:$0xff] (%p79_p3) }
  0x15   : > { %206 = vst [vmem:[%s1320_s29 + $0x10] sm:$0xff] %v205_v2  ;;  %v209_v4 = vld [vmem:[%s1315_s28 + $0x80] sm:$0xff]  ;;  %v211_v5 = vld [vmem:[%s1315_s28 + $0x88] sm:$0xff]  ;;  %208 = vst [vmem:[%s1320_s29 + $0x18] sm:$0xff] %v207_v3 }
  0x16   : > { %210 = vst [vmem:[%s1320_s29 + $0x20] sm:$0xff] %v209_v4  ;;  %212 = vst [vmem:[%s1320_s29 + $0x28] sm:$0xff] %v211_v5  ;;  %v213_v6 = vld [vmem:[%s1315_s28 + $0xc0] sm:$0xff]  ;;  %v215_v7 = vld [vmem:[%s1315_s28 + $0xc8] sm:$0xff] }
  0x17   : > { %v217_v8 = vld [vmem:[%s1315_s28 + $0x100] sm:$0xff]  ;;  %214 = vst [vmem:[%s1320_s29 + $0x30] sm:$0xff] %v213_v6  ;;  %216 = vst [vmem:[%s1320_s29 + $0x38] sm:$0xff] %v215_v7  ;;  %v219_v9 = vld [vmem:[%s1315_s28 + $0x108] sm:$0xff] }
  0x18   : > { %218 = vst [vmem:[%s1320_s29 + $0x40] sm:$0xff] %v217_v8  ;;  %v221_v10 = vld [vmem:[%s1315_s28 + $0x140] sm:$0xff]  ;;  %v223_v11 = vld [vmem:[%s1315_s28 + $0x148] sm:$0xff]  ;;  %220 = vst [vmem:[%s1320_s29 + $0x48] sm:$0xff] %v219_v9 }
  0x19   : > { %222 = vst [vmem:[%s1320_s29 + $0x50] sm:$0xff] %v221_v10  ;;  %224 = vst [vmem:[%s1320_s29 + $0x58] sm:$0xff] %v223_v11  ;;  %v225_v12 = vld [vmem:[%s1315_s28 + $0x180] sm:$0xff]  ;;  %v227_v13 = vld [vmem:[%s1315_s28 + $0x188] sm:$0xff] }
  0x1a   : > { %v229_v14 = vld [vmem:[%s1315_s28 + $0x1c0] sm:$0xff]  ;;  %226 = vst [vmem:[%s1320_s29 + $0x60] sm:$0xff] %v225_v12  ;;  %228 = vst [vmem:[%s1320_s29 + $0x68] sm:$0xff] %v227_v13  ;;  %v231_v15 = vld [vmem:[%s1315_s28 + $0x1c8] sm:$0xff] }
  0x1b   : > { %230 = vst [vmem:[%s1320_s29 + $0x70] sm:$0xff] %v229_v14  ;;  %v233_v16 = vld [vmem:[%s1315_s28 + $0x200] sm:$0xff]  ;;  %v235_v17 = vld [vmem:[%s1315_s28 + $0x208] sm:$0xff]  ;;  %232 = vst [vmem:[%s1320_s29 + $0x78] sm:$0xff] %v231_v15 }
  0x1c   : > { %234 = vst [vmem:[%s1320_s29 + $0x80] sm:$0xff] %v233_v16  ;;  %236 = vst [vmem:[%s1320_s29 + $0x88] sm:$0xff] %v235_v17  ;;  %v237_v18 = vld [vmem:[%s1315_s28 + $0x240] sm:$0xff]  ;;  %v239_v19 = vld [vmem:[%s1315_s28 + $0x248] sm:$0xff] }
  0x1d   : > { %v241_v20 = vld [vmem:[%s1315_s28 + $0x280] sm:$0xff]  ;;  %238 = vst [vmem:[%s1320_s29 + $0x90] sm:$0xff] %v237_v18  ;;  %240 = vst [vmem:[%s1320_s29 + $0x98] sm:$0xff] %v239_v19  ;;  %v243_v21 = vld [vmem:[%s1315_s28 + $0x288] sm:$0xff] }
  0x1e   : > { %242 = vst [vmem:[%s1320_s29 + $0xa0] sm:$0xff] %v241_v20  ;;  %v245_v22 = vld [vmem:[%s1315_s28 + $0x2c0] sm:$0xff]  ;;  %v247_v23 = vld [vmem:[%s1315_s28 + $0x2c8] sm:$0xff]  ;;  %244 = vst [vmem:[%s1320_s29 + $0xa8] sm:$0xff] %v243_v21 }
  0x1f   : > { %246 = vst [vmem:[%s1320_s29 + $0xb0] sm:$0xff] %v245_v22  ;;  %248 = vst [vmem:[%s1320_s29 + $0xb8] sm:$0xff] %v247_v23  ;;  %v249_v24 = vld [vmem:[%s1315_s28 + $0x300] sm:$0xff]  ;;  %v251_v25 = vld [vmem:[%s1315_s28 + $0x308] sm:$0xff] }
  0x20   : > { %v253_v26 = vld [vmem:[%s1315_s28 + $0x340] sm:$0xff]  ;;  %250 = vst [vmem:[%s1320_s29 + $0xc0] sm:$0xff] %v249_v24  ;;  %252 = vst [vmem:[%s1320_s29 + $0xc8] sm:$0xff] %v251_v25  ;;  %v255_v27 = vld [vmem:[%s1315_s28 + $0x348] sm:$0xff] }
  0x21   : > { %254 = vst [vmem:[%s1320_s29 + $0xd0] sm:$0xff] %v253_v26  ;;  %v257_v28 = vld [vmem:[%s1315_s28 + $0x380] sm:$0xff]  ;;  %v259_v29 = vld [vmem:[%s1315_s28 + $0x388] sm:$0xff]  ;;  %256 = vst [vmem:[%s1320_s29 + $0xd8] sm:$0xff] %v255_v27 }
  0x22   : > { %258 = vst [vmem:[%s1320_s29 + $0xe0] sm:$0xff] %v257_v28  ;;  %260 = vst [vmem:[%s1320_s29 + $0xe8] sm:$0xff] %v259_v29  ;;  %v261_v30 = vld [vmem:[%s1315_s28 + $0x3c0] sm:$0xff]  ;;  %v263_v31 = vld [vmem:[%s1315_s28 + $0x3c8] sm:$0xff] }
  0x23   : > { %262 = vst [vmem:[%s1320_s29 + $0xf0] sm:$0xff] %v261_v30  ;;  %264 = vst [vmem:[%s1320_s29 + $0xf8] sm:$0xff] %v263_v31 }
  0x24 PF: > { %p1051_p8 = scmp.ge.s32.totalorder %s1243_s16, 1  ;;  %p269_p9 = scmp.lt.s32.totalorder %s1243_s16, 5 }
  0x26   : > { %p270_p10 = pnand %p1051_p8, %p269_p9 }
  0x27   : > { %s276_s30 = sand.u32 (!%p270_p10), 1, %s1227_s12   ;;  %s1054_s12 = sshll.u32 (!%p270_p10), %s1235_s14, 2 }
  0x28   : > { %273 = sbr.rel (%p270_p10) target bundleno = 313 (0x139), region = 47  ;;  %s1052_s4 = sshll.u32 (!%p270_p10), %s276_s30, 8 }
  0x29   : > { %s1390_s5 = scalar_lea.vmem (!%p270_p10), [#allocation2], %s1052_s4  ;;  %s1053_s10 = sshll.u32 (!%p270_p10), %s276_s30, 6 }
  0x2a   : > { %s1434_s11 = scalar_lea.vmem (!%p270_p10), [#allocation3], %s1053_s10  ;;  %p338_p11 = scmp.lt.s32.totalorder (!%p270_p10), %s1054_s12, 15 }
  0x2d   : > { %v1245_v32 = vmov 0   ;;  %v1155_v33 = vld [vmem:[%s1390_s5 + $0xe4] ss:$16 sps:$4 sm:$0xff]   ;;  %v1157_v34 = vld [vmem:[%s1390_s5 + $0xec] ss:$16 sps:$4 sm:$0xff]   ;;  %vm806_vm0 = vcmask 1040384  }
  0x2e   : > { %588 = vmatprep.mubr.bf16.mxu0 %v1245_v32  ;;  %641 = vmatprep.mubr.bf16.mxu1 %v1245_v32  ;;  %v1159_v35 = vld [vmem:[%s1390_s5 + $0xe0] ss:$16 sps:$4 sm:$0xff]   ;;  %v1160_v36 = vld [vmem:[%s1390_s5 + $0xe8] ss:$16 sps:$4 sm:$0xff]   ;;  %v1161_v37 = vld [vmem:[%s1390_s5 + $0xc4] ss:$16 sps:$4 sm:$0xff]  }
  0x2f   : > { %556 = vmatprep.subr.bf16.mxu0 %v1155_v33  ;;  %609 = vmatprep.subr.bf16.mxu1 %v1157_v34  ;;  %v1163_v38 = vld [vmem:[%s1390_s5 + $0xcc] ss:$16 sps:$4 sm:$0xff]   ;;  %v1165_v39 = vld [vmem:[%s1390_s5 + $0xc0] ss:$16 sps:$4 sm:$0xff]   ;;  %v1166_v40 = vld [vmem:[%s1390_s5 + $0xc8] ss:$16 sps:$4 sm:$0xff]  }
  0x30   : > { %557 = vmatpush1.bf16.msra.mxu0 %v1159_v35  ;;  %610 = vmatpush1.bf16.msra.mxu1 %v1160_v36  ;;  %v1167_v41 = vld [vmem:[%s1390_s5 + $0xa4] ss:$16 sps:$4 sm:$0xff]   ;;  %v1169_v42 = vld [vmem:[%s1390_s5 + $0xac] ss:$16 sps:$4 sm:$0xff]   ;;  %v1171_v43 = vld [vmem:[%s1390_s5 + $0xa0] ss:$16 sps:$4 sm:$0xff]  }
  0x31   : > { %558 = vmatprep.subr.bf16.mxu0 %v1161_v37  ;;  %611 = vmatprep.subr.bf16.mxu1 %v1163_v38  ;;  %v1172_v44 = vld [vmem:[%s1390_s5 + $0xa8] ss:$16 sps:$4 sm:$0xff]   ;;  %v1173_v45 = vld [vmem:[%s1390_s5 + $0x84] ss:$16 sps:$4 sm:$0xff]   ;;  %v1175_v46 = vld [vmem:[%s1390_s5 + $0x8c] ss:$16 sps:$4 sm:$0xff]  }
  0x32   : > { %v1177_v47 = vld [vmem:[%s1390_s5 + $0x80] ss:$16 sps:$4 sm:$0xff]   ;;  %v1178_v48 = vld [vmem:[%s1390_s5 + $0x88] ss:$16 sps:$4 sm:$0xff]   ;;  %v1179_v49 = vld [vmem:[%s1390_s5 + $0x64] ss:$16 sps:$4 sm:$0xff]  }
  0x33   : > { %v1181_v50 = vld [vmem:[%s1390_s5 + $0x6c] ss:$16 sps:$4 sm:$0xff]   ;;  %v1183_v51 = vld [vmem:[%s1390_s5 + $0x60] ss:$16 sps:$4 sm:$0xff]   ;;  %v1184_v52 = vld [vmem:[%s1390_s5 + $0x68] ss:$16 sps:$4 sm:$0xff]  }
  0x34   : > { %559 = vmatpush1.bf16.msra.mxu0 %v1165_v39  ;;  %612 = vmatpush1.bf16.msra.mxu1 %v1166_v40  ;;  %v1185_v53 = vld [vmem:[%s1390_s5 + $0x44] ss:$16 sps:$4 sm:$0xff]   ;;  %v1187_v54 = vld [vmem:[%s1390_s5 + $0x4c] ss:$16 sps:$4 sm:$0xff]   ;;  %v1189_v55 = vld [vmem:[%s1390_s5 + $0x40] ss:$16 sps:$4 sm:$0xff]  }
  0x35   : > { %560 = vmatprep.subr.bf16.mxu0 %v1167_v41  ;;  %613 = vmatprep.subr.bf16.mxu1 %v1169_v42  ;;  %v1190_v56 = vld [vmem:[%s1390_s5 + $0x48] ss:$16 sps:$4 sm:$0xff]   ;;  %v1191_v57 = vld [vmem:[%s1390_s5 + $0x24] ss:$16 sps:$4 sm:$0xff]   ;;  %v1193_v58 = vld [vmem:[%s1390_s5 + $0x2c] ss:$16 sps:$4 sm:$0xff]  }
  0x36   : > { %v1195_v59 = vld [vmem:[%s1390_s5 + $0x20] ss:$16 sps:$4 sm:$0xff]   ;;  %v1196_v60 = vld [vmem:[%s1390_s5 + $0x28] ss:$16 sps:$4 sm:$0xff]   ;;  %v1197_v61 = vld [vmem:[%s1390_s5 + $0x4] ss:$16 sps:$4 sm:$0xff]  }
  0x37   : > { %v1199_v62 = vld [vmem:[%s1390_s5 + $0xc] ss:$16 sps:$4 sm:$0xff]   ;;  %v1201_v63 = vld [vmem:[%s1390_s5] ss:$16 sps:$4 sm:$0xff]   ;;  %v1202_v0 = vld [vmem:[%s1390_s5 + $0x8] ss:$16 sps:$4 sm:$0xff]  }
  0x38   : > { %561 = vmatpush1.bf16.msra.mxu0 %v1171_v43  ;;  %614 = vmatpush1.bf16.msra.mxu1 %v1172_v44  ;;  %v1203_v1 = vld [vmem:[%s1477_s0] sm:$0xff]   ;;  %v1204_v2 = vld [vmem:[%s1477_s0 + $0x8] sm:$0xff]   ;;  %s1489_s12 = smov (!%p338_p11, %s1054_s12), 15  ;;  %s1112_s24 = sshll.u32 (%p1302_p6), %s1235_s14, 4 }
  0x39   : > { %562 = vmatprep.subr.bf16.mxu0 %v1173_v45  ;;  %615 = vmatprep.subr.bf16.mxu1 %v1175_v46  ;;  %s1055_s18 = sshll.u32 %s1489_s12, 1  ;;  %s861_s27 = scalar_lea.vmem (%p1302_p6), %s1479_s2, %s1112_s24 }
  0x3a   : > { %s345_s23 = scalar_lea.vmem %s1480_s3, %s1055_s18 }
  0x3c   : > { %563 = vmatpush1.bf16.msra.mxu0 %v1177_v47  ;;  %616 = vmatpush1.bf16.msra.mxu1 %v1178_v48 }
  0x3d   : > { %564 = vmatprep.subr.bf16.mxu0 %v1179_v49  ;;  %617 = vmatprep.subr.bf16.mxu1 %v1181_v50 }
  0x40   : > { %565 = vmatpush1.bf16.msra.mxu0 %v1183_v51  ;;  %618 = vmatpush1.bf16.msra.mxu1 %v1184_v52 }
  0x41   : > { %566 = vmatprep.subr.bf16.mxu0 %v1185_v53  ;;  %619 = vmatprep.subr.bf16.mxu1 %v1187_v54 }
  0x44   : > { %567 = vmatpush1.bf16.msra.mxu0 %v1189_v55  ;;  %620 = vmatpush1.bf16.msra.mxu1 %v1190_v56 }
  0x45   : > { %568 = vmatprep.subr.bf16.mxu0 %v1191_v57  ;;  %621 = vmatprep.subr.bf16.mxu1 %v1193_v58 }
  0x48   : > { %569 = vmatpush1.bf16.msra.mxu0 %v1195_v59  ;;  %622 = vmatpush1.bf16.msra.mxu1 %v1196_v60 }
  0x49   : > { %570 = vmatprep.subr.bf16.mxu0 %v1197_v61  ;;  %623 = vmatprep.subr.bf16.mxu1 %v1199_v62 }
  0x4c   : > { %571 = vmatpush1.bf16.msra.mxu0 %v1201_v63  ;;  %624 = vmatpush1.bf16.msra.mxu1 %v1202_v0 }
  0x4f   : > { %589 = vmatmul.mubr.bf16.vlgmr.msra.gmra.mxu0 %v1203_v1  ;;  %642 = vmatmul.mubr.bf16.vlgmr.msra.gmra.mxu1 %v1203_v1 }
  0x50   : > { %598 = vmatprep.mubr.bf16.mxu0 %v1245_v32  ;;  %651 = vmatprep.mubr.bf16.mxu1 %v1245_v32 }
  0x57   : > { %599 = vmatmul.mubr.bf16.gmra.mxu0 %v1204_v2  ;;  %652 = vmatmul.mubr.bf16.gmra.mxu1 %v1204_v2 }
 0x10f   : > { %v590_v3 = vpop.f32.mrf.mxu0  ;;  %v643_v4 = vpop.f32.mrf.mxu1 }
 0x110   : > { %v754_v13 = vmul.f32 %v590_v3, %v590_v3  ;;  %v756_v14 = vmul.f32 %v643_v4, %v643_v4 }
 0x111   : > { %v592_v5 = vpop.f32.mrf.mxu0  ;;  %v645_v6 = vpop.f32.mrf.mxu1 }
 0x112   : > { %v1104_v7 = vpack.c.bf16 %v592_v5, %v590_v3  ;;  %v1105_v8 = vpack.c.bf16 %v645_v6, %v643_v4  ;;  %v755_v17 = vmul.f32 %v592_v5, %v592_v5  ;;  %v757_v18 = vmul.f32 %v645_v6, %v645_v6 }
 0x113   : > { %v594_v9 = vpop.f32.mrf.mxu0  ;;  %v647_v10 = vpop.f32.mrf.mxu1 }
 0x114   : > { %710 = vst [vmem:[%s1434_s11] sm:$0xff] %v1104_v7  ;;  %711 = vst [vmem:[%s1434_s11 + $0x8] sm:$0xff] %v1105_v8  ;;  %v758_v11 = vmul.f32 %v594_v9, %v594_v9  ;;  %v760_v12 = vmul.f32 %v647_v10, %v647_v10  ;;  %v718_v19 = vadd.f32 %v594_v9, %v590_v3 }
 0x115   : > { %v596_v15 = vpop.f32.mrf.mxu0  ;;  %v649_v16 = vpop.f32.mrf.mxu1  ;;  %v736_v21 = vadd.f32 %v647_v10, %v643_v4 }
 0x116   : > { %v1106_v20 = vpack.c.bf16 %v596_v15, %v594_v9  ;;  %v759_v22 = vmul.f32 %v596_v15, %v596_v15  ;;  %v1107_v23 = vpack.c.bf16 %v649_v16, %v647_v10  ;;  %v761_v24 = vmul.f32 %v649_v16, %v649_v16 }
 0x117   : > { %v600_v25 = vpop.f32.mrf.mxu0  ;;  %v653_v26 = vpop.f32.mrf.mxu1  ;;  %v770_v27 = vadd.f32 %v758_v11, %v754_v13  ;;  %v788_v28 = vadd.f32 %v760_v12, %v756_v14  ;;  %v727_v31 = vadd.f32 %v596_v15, %v592_v5  ;;  %v745_v32 = vadd.f32 %v649_v16, %v645_v6 }
 0x118   : > { %712 = vst [vmem:[%s1434_s11 + $0x10] sm:$0xff] %v1106_v20  ;;  %v762_v29 = vmul.f32 %v600_v25, %v600_v25  ;;  %v764_v30 = vmul.f32 %v653_v26, %v653_v26  ;;  %713 = vst [vmem:[%s1434_s11 + $0x18] sm:$0xff] %v1107_v23  ;;  %v719_v33 = vadd.f32 %v718_v19, %v600_v25  ;;  %v1246_v20 = vmov 1983009808  }
 0x119   : > { %v737_v34 = vadd.f32 %v736_v21, %v653_v26  ;;  %v602_v35 = vpop.f32.mrf.mxu0  ;;  %v655_v36 = vpop.f32.mrf.mxu1  ;;  %v779_v37 = vadd.f32 %v759_v22, %v755_v17  ;;  %v797_v38 = vadd.f32 %v761_v24, %v757_v18  ;;  %v818_v21 = vunpack.c.l.s4 %v1246_v20 }
 0x11a   : > { %v771_v39 = vadd.f32 %v770_v27, %v762_v29  ;;  %v1108_v40 = vpack.c.bf16 %v602_v35, %v600_v25  ;;  %v789_v41 = vadd.f32 %v788_v28, %v764_v30  ;;  %v763_v42 = vmul.f32 %v602_v35, %v602_v35 }
 0x11b   : > { %v1109_v43 = vpack.c.bf16 %v655_v36, %v653_v26  ;;  %v765_v44 = vmul.f32 %v655_v36, %v655_v36  ;;  %v604_v45 = vpop.f32.mrf.mxu0  ;;  %v657_v46 = vpop.f32.mrf.mxu1  ;;  %v728_v51 = vadd.f32 %v727_v31, %v602_v35  ;;  %v746_v53 = vadd.f32 %v745_v32, %v655_v36 }
 0x11c   : > { %714 = vst [vmem:[%s1434_s11 + $0x20] sm:$0xff] %v1108_v40  ;;  %v720_v47 = vadd.f32 %v719_v33, %v604_v45  ;;  %v766_v48 = vmul.f32 %v604_v45, %v604_v45  ;;  %v738_v49 = vadd.f32 %v737_v34, %v657_v46  ;;  %v768_v50 = vmul.f32 %v657_v46, %v657_v46 }
 0x11d   : > { %v780_v52 = vadd.f32 %v779_v37, %v763_v42  ;;  %715 = vst [vmem:[%s1434_s11 + $0x28] sm:$0xff] %v1109_v43  ;;  %v798_v54 = vadd.f32 %v797_v38, %v765_v44  ;;  %v606_v55 = vpop.f32.mrf.mxu0  ;;  %v659_v56 = vpop.f32.mrf.mxu1  ;;  %v820_v29 = vlaneseq  ;;  %v819_v42 = vunpack.c.0.s8 %v818_v21 }
 0x11e   : > { %v721_v57 = vrot.slane %v720_v47, 4  ;;  %v772_v58 = vadd.f32 %v771_v39, %v766_v48  ;;  %v739_v59 = vrot.slane %v738_v49, 4  ;;  %v790_v60 = vadd.f32 %v789_v41, %v768_v50 }
 0x11f   : > { %v1110_v61 = vpack.c.bf16 %v606_v55, %v604_v45  ;;  %v729_v62 = vadd.f32 %v728_v51, %v606_v55  ;;  %v767_v63 = vmul.f32 %v606_v55, %v606_v55  ;;  %v1111_v0 = vpack.c.bf16 %v659_v56, %v657_v46 }
 0x120   : > { %v722_v1 = vadd.f32 %v721_v57, %v720_v47  ;;  %v773_v2 = vrot.slane %v772_v58, 4  ;;  %v740_v3 = vadd.f32 %v739_v59, %v738_v49  ;;  %v791_v4 = vrot.slane %v790_v60, 4 }
 0x121   : > { %716 = vst [vmem:[%s1434_s11 + $0x30] sm:$0xff] %v1110_v61  ;;  %v730_v5 = vrot.slane %v729_v62, 4  ;;  %v781_v6 = vadd.f32 %v780_v52, %v767_v63  ;;  %717 = vst [vmem:[%s1434_s11 + $0x38] sm:$0xff] %v1111_v0  ;;  %v747_v7 = vadd.f32 %v746_v53, %v659_v56  ;;  %v769_v8 = vmul.f32 %v659_v56, %v659_v56 }
 0x122   : > { %v723_v9 = vrot.slane %v722_v1, 2  ;;  %v774_v10 = vadd.f32 %v773_v2, %v772_v58  ;;  %v741_v11 = vrot.slane %v740_v3, 2  ;;  %v792_v12 = vadd.f32 %v791_v4, %v790_v60  ;;  %v874_v2 = vld [vmem:[%s1434_s11] sm:$0xff] (%p1302_p6)  ;;  %v878_v4 = vld [vmem:[%s1434_s11 + $0x10] sm:$0xff] (%p1302_p6) }
 0x123   : > { %v731_v13 = vadd.f32 %v730_v5, %v729_v62  ;;  %v782_v14 = vrot.slane %v781_v6, 4  ;;  %v748_v15 = vrot.slane %v747_v7, 4  ;;  %v799_v16 = vadd.f32 %v798_v54, %v769_v8  ;;  %v880_v5 = vld [vmem:[%s1434_s11 + $0x18] sm:$0xff] (%p1302_p6)  ;;  %875 = vst [vmem:[%s861_s27] sm:$0xff] (%p1302_p6), %v874_v2  ;;  %879 = vst [vmem:[%s861_s27 + $0x40] sm:$0xff] (%p1302_p6), %v878_v4 }
 0x124   : > { %v724_v17 = vadd.f32 %v723_v9, %v722_v1  ;;  %v775_v18 = vrot.slane %v774_v10, 2  ;;  %v793_v19 = vrot.slane %v792_v12, 2  ;;  %v742_v27 = vadd.f32 %v741_v11, %v740_v3  ;;  %v876_v3 = vld [vmem:[%s1434_s11 + $0x8] sm:$0xff] (%p1302_p6)  ;;  %881 = vst [vmem:[%s861_s27 + $0x48] sm:$0xff] (%p1302_p6), %v880_v5 }
 0x125   : > { %v732_v22 = vrot.slane %v731_v13, 2  ;;  %v783_v23 = vadd.f32 %v782_v14, %v781_v6  ;;  %v749_v24 = vadd.f32 %v748_v15, %v747_v7  ;;  %v800_v25 = vrot.slane %v799_v16, 4  ;;  %v882_v6 = vld [vmem:[%s1434_s11 + $0x20] sm:$0xff] (%p1302_p6)  ;;  %v884_v7 = vld [vmem:[%s1434_s11 + $0x28] sm:$0xff] (%p1302_p6)  ;;  %877 = vst [vmem:[%s861_s27 + $0x8] sm:$0xff] (%p1302_p6), %v876_v3 }
 0x126   : > { %v776_v26 = vadd.f32 %v775_v18, %v774_v10  ;;  %v794_v28 = vadd.f32 %v793_v19, %v792_v12  ;;  %v725_v34 = vrot.slane %v724_v17, 1  ;;  %v743_v41 = vrot.slane %v742_v27, 1  ;;  %883 = vst [vmem:[%s861_s27 + $0x80] sm:$0xff] (%p1302_p6), %v882_v6  ;;  %885 = vst [vmem:[%s861_s27 + $0x88] sm:$0xff] (%p1302_p6), %v884_v7 }
 0x127   : > { %v733_v30 = vadd.f32 %v732_v22, %v731_v13  ;;  %v784_v31 = vrot.slane %v783_v23, 2  ;;  %v750_v32 = vrot.slane %v749_v24, 2  ;;  %v801_v33 = vadd.f32 %v800_v25, %v799_v16 }
 0x128   : > { %v777_v35 = vrot.slane %v776_v26, 1  ;;  %v795_v36 = vrot.slane %v794_v28, 1  ;;  %v821_v43 = vshrl.u32 %v820_v29, 7  ;;  %v726_v48 = vadd.f32 %v725_v34, %v724_v17  ;;  %v886_v8 = vld [vmem:[%s1434_s11 + $0x30] sm:$0xff] (%p1302_p6)  ;;  %v888_v9 = vld [vmem:[%s1434_s11 + $0x38] sm:$0xff] (%p1302_p6) }
 0x129   : > { %v734_v37 = vrot.slane %v733_v30, 1  ;;  %v785_v38 = vadd.f32 %v784_v31, %v783_v23  ;;  %v751_v39 = vadd.f32 %v750_v32, %v749_v24  ;;  %v802_v40 = vrot.slane %v801_v33, 2  ;;  %887 = vst [vmem:[%s861_s27 + $0xc0] sm:$0xff] (%p1302_p6), %v886_v8  ;;  %889 = vst [vmem:[%s861_s27 + $0xc8] sm:$0xff] (%p1302_p6), %v888_v9 }
 0x12a   : > { %v778_v44 = vadd.f32 %v777_v35, %v776_v26  ;;  %v796_v49 = vadd.f32 %v795_v36, %v794_v28  ;;  %v744_v53 = vadd.f32 %v743_v41, %v742_v27  ;;  %v822_v54 = vsub.s32 %v819_v42, %v821_v43 }
 0x12b   : > { %v786_v45 = vrot.slane %v785_v38, 1  ;;  %v752_v46 = vrot.slane %v751_v39, 1  ;;  %v803_v47 = vadd.f32 %v802_v40, %v801_v33  ;;  %v735_v50 = vadd.f32 %v734_v37, %v733_v30 }
 0x12c   : > { %v807_v55 = vsel %vm806_vm0, %v726_v48, %v778_v44  ;;  %v809_v60 = vsel %vm806_vm0, %v744_v53, %v796_v49 }
 0x12d   : > { %v787_v51 = vadd.f32 %v786_v45, %v785_v38  ;;  %v804_v52 = vrot.slane %v803_v47, 1  ;;  %v753_v57 = vadd.f32 %v752_v46, %v751_v39 }
 0x12f   : > { %v808_v56 = vsel %vm806_vm0, %v735_v50, %v787_v51  ;;  %v805_v58 = vadd.f32 %v804_v52, %v803_v47 }
 0x130   : > { %v815_v59 = vcombine.low %v807_v55, %v808_v56 }
 0x131   : > { %v810_v61 = vsel %vm806_vm0, %v753_v57, %v805_v58 }
 0x132   : > { %v823_v62 = vrot.slane %v815_v59, %v822_v54  ;;  %v816_v63 = vcombine.low %v809_v60, %v810_v61 }
 0x134   : > { %v830_v0 = vrot.slane %v816_v63, %v822_v54  ;;  %853 = sbr.rel (!%p1302_p6) target bundleno = 313 (0x139), region = 55 }
 0x136   : > { %v831_v1 = vcombine.low %v823_v62, %v830_v0 }
 0x138   : > { %833 = vst [vmem:[%s345_s23] sm:$0xff] %v831_v1 }
 0x139 PF: > { %s14_s16 = sadd.s32 1, %s1243_s16   ;;  %s1482_s12 = smov %s1231_s13 }
 0x13a   : > { %p11_p12 = scmp.ge.s32.totalorder %s14_s16, 6   ;;  %s1483_s13 = smov %s1307_s22 }
 0x13b   : > { %s1484_s14 = smov %s1239_s15  ;;  %s1485_s15 = smov %s1487_s17 }
 0x13c   :  { %13 = sbr.rel (!%p11_p12) target bundleno = 3 (0x3), region = 124 }

// kernel: generator_forward.11
= control target key start
LH: loop header
LB: loop body
LE: loop exit
PB: predicated region body
PF: predicated region fallthrough
CT: control target
= control target key end

     0   :  { %v114_v0 = vlaneseq  ;;  %s1220_s0 = inlined_call_operand.vmem [shape: bf16[32,2048], index: 0, kind: input, shape index: {}]   ;;  %s1221_s1 = inlined_call_operand.vmem [shape: f32[1,2048], index: 1, kind: input, shape index: {}]   ;;  %s1222_s2 = inlined_call_operand.vmem [shape: f32[1,2048], index: 2, kind: input, shape index: {}]   ;;  %s1223_s3 = inlined_call_operand.vmem [shape: bf16[32,2048], index: 3, kind: output, shape index: {}]  }
   0x1   :  { %v14_v1 = vld [vmem:[%s1220_s0] sm:$0xff]  ;;  %v15_v5 = vld [vmem:[%s1220_s0 + $0x8] sm:$0xff]  ;;  %v16_v6 = vld [vmem:[%s1220_s0 + $0x10] sm:$0xff] }
   0x2   :  { %v46_v2 = vunpack.c.l.bf16 %v14_v1  ;;  %v47_v3 = vunpack.c.h.bf16 %v14_v1  ;;  %v115_v4 = vshrl.u32 %v114_v0, 7  ;;  %v17_v7 = vld [vmem:[%s1220_s0 + $0x18] sm:$0xff]  ;;  %v110_v8 = vld [vmem:[%s1221_s1] sm:$0xff]  ;;  %v48_v10 = vunpack.c.l.bf16 %v15_v5  ;;  %v111_v55 = vld [vmem:[%s1221_s1 + $0x8] sm:$0xff] }
   0x3   :  { %v258_v9 = vld [vmem:[%s1222_s2] sm:$0xff]  ;;  %v49_v11 = vunpack.c.h.bf16 %v15_v5  ;;  %v50_v12 = vunpack.c.l.bf16 %v16_v6  ;;  %v51_v13 = vunpack.c.h.bf16 %v16_v6  ;;  %v52_v20 = vunpack.c.l.bf16 %v17_v7  ;;  %v259_v60 = vld [vmem:[%s1222_s2 + $0x8] sm:$0xff] }
   0x4   :  { %v116_v14 = vsub.s32 0, %v115_v4  ;;  %v800_v15 = vsub.s32 1, %v115_v4  ;;  %v802_v16 = vsub.s32 2, %v115_v4  ;;  %v804_v17 = vsub.s32 3, %v115_v4  ;;  %v18_v54 = vld [vmem:[%s1220_s0 + $0x20] sm:$0xff]  ;;  %v19_v1 = vld [vmem:[%s1220_s0 + $0x28] sm:$0xff] }
   0x5   :  { %v806_v18 = vsub.s32 4, %v115_v4  ;;  %v808_v19 = vsub.s32 5, %v115_v4  ;;  %v53_v21 = vunpack.c.h.bf16 %v17_v7  ;;  %v854_v44 = vsub.s32 6, %v115_v4 }
   0x6   :  { %v810_v22 = vrot.slane %v110_v8, %v116_v14  ;;  %v813_v23 = vrot.slane %v110_v8, %v800_v15  ;;  %v815_v24 = vrot.slane %v258_v9, %v116_v14  ;;  %v818_v25 = vrot.slane %v258_v9, %v800_v15 }
   0x7   :  { %v821_v26 = vrot.slane %v110_v8, %v802_v16  ;;  %v824_v27 = vrot.slane %v110_v8, %v804_v17  ;;  %v827_v28 = vrot.slane %v258_v9, %v802_v16  ;;  %v830_v29 = vrot.slane %v258_v9, %v804_v17 }
   0x8   :  { %v194_v30 = vmul.f32 %v810_v22, %v46_v2  ;;  %v195_v31 = vmul.f32 %v813_v23, %v47_v3  ;;  %v835_v32 = vrot.slane %v110_v8, %v806_v18  ;;  %v838_v33 = vrot.slane %v110_v8, %v808_v19 }
   0x9   :  { %v196_v34 = vmul.f32 %v821_v26, %v48_v10  ;;  %v197_v35 = vmul.f32 %v824_v27, %v49_v11  ;;  %v843_v36 = vrot.slane %v258_v9, %v806_v18  ;;  %v846_v37 = vrot.slane %v258_v9, %v808_v19 }
   0xa   :  { %v342_v38 = vadd.f32 %v815_v24, %v194_v30  ;;  %v343_v39 = vadd.f32 %v818_v25, %v195_v31  ;;  %v198_v40 = vmul.f32 %v835_v32, %v50_v12  ;;  %v199_v41 = vmul.f32 %v838_v33, %v51_v13 }
   0xb   :  { %v344_v42 = vadd.f32 %v827_v28, %v196_v34  ;;  %v345_v43 = vadd.f32 %v830_v29, %v197_v35  ;;  %v856_v45 = vsub.s32 7, %v115_v4  ;;  %v861_v52 = vrot.slane %v110_v8, %v854_v44 }
   0xc   :  { %v406_v46 = vmax.f32 %v342_v38, 0.0  ;;  %v407_v47 = vmax.f32 %v343_v39, 0.0  ;;  %v346_v48 = vadd.f32 %v843_v36, %v198_v40  ;;  %v347_v49 = vadd.f32 %v846_v37, %v199_v41 }
   0xd   :  { %v408_v50 = vmax.f32 %v344_v42, 0.0  ;;  %v409_v51 = vmax.f32 %v345_v43, 0.0  ;;  %v864_v53 = vrot.slane %v110_v8, %v856_v45  ;;  %v873_v59 = vrot.slane %v258_v9, %v854_v44  ;;  %v21_v43 = vld [vmem:[%s1220_s0 + $0x38] sm:$0xff] }
   0xe   :  { %v730_v56 = vpack.c.bf16 %v407_v47, %v406_v46  ;;  %v410_v57 = vmax.f32 %v346_v48, 0.0  ;;  %v411_v58 = vmax.f32 %v347_v49, 0.0  ;;  %v200_v62 = vmul.f32 %v861_v52, %v52_v20  ;;  %v20_v20 = vld [vmem:[%s1220_s0 + $0x30] sm:$0xff] }
   0xf   :  { %v731_v61 = vpack.c.bf16 %v409_v51, %v408_v50  ;;  %v201_v63 = vmul.f32 %v864_v53, %v53_v21  ;;  %v881_v0 = vrot.slane %v258_v9, %v856_v45  ;;  %v54_v3 = vunpack.c.l.bf16 %v18_v54 }
  0x10   :  { %662 = vst [vmem:[%s1223_s3] sm:$0xff] %v730_v56  ;;  %v732_v2 = vpack.c.bf16 %v411_v58, %v410_v57  ;;  %v55_v4 = vunpack.c.h.bf16 %v18_v54  ;;  %v889_v5 = vrot.slane %v111_v55, %v116_v14  ;;  %v348_v6 = vadd.f32 %v873_v59, %v200_v62 }
  0x11   :  { %663 = vst [vmem:[%s1223_s3 + $0x8] sm:$0xff] %v731_v61  ;;  %v349_v7 = vadd.f32 %v881_v0, %v201_v63  ;;  %v897_v8 = vrot.slane %v111_v55, %v800_v15  ;;  %v899_v9 = vrot.slane %v259_v60, %v116_v14  ;;  %v906_v11 = vrot.slane %v259_v60, %v800_v15  ;;  %v22_v61 = vld [vmem:[%s1220_s0 + $0x40] sm:$0xff] }
  0x12   :  { %664 = vst [vmem:[%s1223_s3 + $0x10] sm:$0xff] %v732_v2  ;;  %v202_v10 = vmul.f32 %v889_v5, %v54_v3  ;;  %v56_v12 = vunpack.c.l.bf16 %v19_v1  ;;  %v57_v13 = vunpack.c.h.bf16 %v19_v1  ;;  %v412_v21 = vmax.f32 %v348_v6, 0.0 }
  0x13   :  { %v413_v30 = vmax.f32 %v349_v7, 0.0  ;;  %v203_v14 = vmul.f32 %v897_v8, %v55_v4  ;;  %v913_v31 = vrot.slane %v111_v55, %v802_v16  ;;  %v917_v35 = vrot.slane %v111_v55, %v804_v17 }
  0x14   :  { %v350_v34 = vadd.f32 %v899_v9, %v202_v10  ;;  %v920_v15 = vrot.slane %v259_v60, %v802_v16  ;;  %v923_v38 = vrot.slane %v259_v60, %v804_v17  ;;  %v58_v42 = vunpack.c.l.bf16 %v20_v20 }
  0x15   :  { %v733_v39 = vpack.c.bf16 %v413_v30, %v412_v21  ;;  %v351_v40 = vadd.f32 %v906_v11, %v203_v14  ;;  %v204_v41 = vmul.f32 %v913_v31, %v56_v12  ;;  %v205_v47 = vmul.f32 %v917_v35, %v57_v13 }
  0x16   :  { %v414_v46 = vmax.f32 %v350_v34, 0.0  ;;  %v59_v48 = vunpack.c.h.bf16 %v20_v20  ;;  %v932_v16 = vrot.slane %v111_v55, %v806_v18  ;;  %v939_v50 = vrot.slane %v111_v55, %v808_v19 }
  0x17   :  { %665 = vst [vmem:[%s1223_s3 + $0x18] sm:$0xff] %v733_v39  ;;  %v415_v17 = vmax.f32 %v351_v40, 0.0  ;;  %v352_v49 = vadd.f32 %v920_v15, %v204_v41  ;;  %v942_v51 = vrot.slane %v259_v60, %v806_v18  ;;  %v353_v54 = vadd.f32 %v923_v38, %v205_v47 }
  0x18   :  { %v206_v56 = vmul.f32 %v932_v16, %v58_v42  ;;  %v947_v57 = vrot.slane %v259_v60, %v808_v19  ;;  %v60_v58 = vunpack.c.l.bf16 %v21_v43  ;;  %v207_v1 = vmul.f32 %v939_v50, %v59_v48  ;;  %v23_v19 = vld [vmem:[%s1220_s0 + $0x48] sm:$0xff] }
  0x19   :  { %v734_v62 = vpack.c.bf16 %v415_v17, %v414_v46  ;;  %v416_v63 = vmax.f32 %v352_v49, 0.0  ;;  %v61_v2 = vunpack.c.h.bf16 %v21_v43  ;;  %v417_v3 = vmax.f32 %v353_v54, 0.0  ;;  %v25_v17 = vld [vmem:[%s1220_s0 + $0x58] sm:$0xff] }
  0x1a   :  { %v354_v18 = vadd.f32 %v942_v51, %v206_v56  ;;  %v955_v4 = vrot.slane %v111_v55, %v854_v44  ;;  %v958_v6 = vrot.slane %v111_v55, %v856_v45  ;;  %v355_v7 = vadd.f32 %v947_v57, %v207_v1  ;;  %v24_v55 = vld [vmem:[%s1220_s0 + $0x50] sm:$0xff] }
  0x1b   :  { %666 = vst [vmem:[%s1223_s3 + $0x20] sm:$0xff] %v734_v62  ;;  %v968_v10 = vrot.slane %v259_v60, %v854_v44  ;;  %v971_v12 = vrot.slane %v259_v60, %v856_v45  ;;  %v62_v13 = vunpack.c.l.bf16 %v22_v61  ;;  %v735_v20 = vpack.c.bf16 %v417_v3, %v416_v63 }
  0x1c   :  { %v418_v21 = vmax.f32 %v354_v18, 0.0  ;;  %v208_v30 = vmul.f32 %v955_v4, %v60_v58  ;;  %v209_v14 = vmul.f32 %v958_v6, %v61_v2  ;;  %v419_v34 = vmax.f32 %v355_v7, 0.0  ;;  %v26_v2 = vld [vmem:[%s1220_s0 + $0x60] sm:$0xff] }
  0x1d   :  { %v63_v39 = vunpack.c.h.bf16 %v22_v61  ;;  %v210_v40 = vmul.f32 %v810_v22, %v62_v13  ;;  %v64_v44 = vunpack.c.l.bf16 %v23_v19  ;;  %667 = vst [vmem:[%s1223_s3 + $0x28] sm:$0xff] %v735_v20  ;;  %v65_v41 = vunpack.c.h.bf16 %v23_v19 }
  0x1e   :  { %v356_v45 = vadd.f32 %v968_v10, %v208_v30  ;;  %v357_v60 = vadd.f32 %v971_v12, %v209_v14  ;;  %v66_v42 = vunpack.c.l.bf16 %v24_v55  ;;  %v736_v43 = vpack.c.bf16 %v419_v34, %v418_v21 }
  0x1f   :  { %v211_v46 = vmul.f32 %v813_v23, %v63_v39  ;;  %v358_v47 = vadd.f32 %v815_v24, %v210_v40  ;;  %v212_v48 = vmul.f32 %v821_v26, %v64_v44  ;;  %v213_v56 = vmul.f32 %v824_v27, %v65_v41  ;;  %v27_v40 = vld [vmem:[%s1220_s0 + $0x68] sm:$0xff] }
  0x20   :  { %v420_v49 = vmax.f32 %v356_v45, 0.0  ;;  %v421_v54 = vmax.f32 %v357_v60, 0.0  ;;  %v67_v58 = vunpack.c.h.bf16 %v24_v55  ;;  %668 = vst [vmem:[%s1223_s3 + $0x30] sm:$0xff] %v736_v43  ;;  %v214_v1 = vmul.f32 %v835_v32, %v66_v42  ;;  %v28_v42 = vld [vmem:[%s1220_s0 + $0x70] sm:$0xff] }
  0x21   :  { %v359_v61 = vadd.f32 %v818_v25, %v211_v46  ;;  %v422_v62 = vmax.f32 %v358_v47, 0.0  ;;  %v360_v63 = vadd.f32 %v827_v28, %v212_v48  ;;  %v361_v18 = vadd.f32 %v830_v29, %v213_v56 }
  0x22   :  { %v737_v3 = vpack.c.bf16 %v421_v54, %v420_v49  ;;  %v215_v19 = vmul.f32 %v838_v33, %v67_v58  ;;  %v68_v7 = vunpack.c.l.bf16 %v25_v17  ;;  %v362_v20 = vadd.f32 %v843_v36, %v214_v1  ;;  %v29_v58 = vld [vmem:[%s1220_s0 + $0x78] sm:$0xff] }
  0x23   :  { %v423_v13 = vmax.f32 %v359_v61, 0.0  ;;  %v424_v55 = vmax.f32 %v360_v63, 0.0  ;;  %v69_v21 = vunpack.c.h.bf16 %v25_v17  ;;  %v425_v30 = vmax.f32 %v361_v18, 0.0 }
  0x24   :  { %669 = vst [vmem:[%s1223_s3 + $0x38] sm:$0xff] %v737_v3  ;;  %v363_v14 = vadd.f32 %v846_v37, %v215_v19  ;;  %v216_v34 = vmul.f32 %v861_v52, %v68_v7  ;;  %v70_v39 = vunpack.c.l.bf16 %v26_v2  ;;  %v426_v45 = vmax.f32 %v362_v20, 0.0 }
  0x25   :  { %v738_v44 = vpack.c.bf16 %v423_v13, %v422_v62  ;;  %v217_v60 = vmul.f32 %v864_v53, %v69_v21  ;;  %v71_v41 = vunpack.c.h.bf16 %v26_v2  ;;  %v739_v43 = vpack.c.bf16 %v425_v30, %v424_v55  ;;  %v30_v21 = vld [vmem:[%s1220_s0 + $0x80] sm:$0xff] }
  0x26   :  { %v427_v46 = vmax.f32 %v363_v14, 0.0  ;;  %v364_v47 = vadd.f32 %v873_v59, %v216_v34  ;;  %v218_v48 = vmul.f32 %v889_v5, %v70_v39  ;;  %v72_v54 = vunpack.c.l.bf16 %v27_v40 }
  0x27   :  { %670 = vst [vmem:[%s1223_s3 + $0x40] sm:$0xff] %v738_v44  ;;  %v365_v17 = vadd.f32 %v881_v0, %v217_v60  ;;  %v219_v49 = vmul.f32 %v897_v8, %v71_v41  ;;  %v73_v56 = vunpack.c.h.bf16 %v27_v40  ;;  %671 = vst [vmem:[%s1223_s3 + $0x48] sm:$0xff] %v739_v43  ;;  %v74_v1 = vunpack.c.l.bf16 %v28_v42  ;;  %v31_v41 = vld [vmem:[%s1220_s0 + $0x88] sm:$0xff] }
  0x28   :  { %v740_v61 = vpack.c.bf16 %v427_v46, %v426_v45  ;;  %v428_v62 = vmax.f32 %v364_v47, 0.0  ;;  %v366_v63 = vadd.f32 %v899_v9, %v218_v48  ;;  %v220_v18 = vmul.f32 %v913_v31, %v72_v54 }
  0x29   :  { %v429_v2 = vmax.f32 %v365_v17, 0.0  ;;  %v367_v3 = vadd.f32 %v906_v11, %v219_v49  ;;  %v221_v19 = vmul.f32 %v917_v35, %v73_v56  ;;  %v75_v13 = vunpack.c.h.bf16 %v28_v42  ;;  %v32_v56 = vld [vmem:[%s1220_s0 + $0x90] sm:$0xff] }
  0x2a   :  { %672 = vst [vmem:[%s1223_s3 + $0x50] sm:$0xff] %v740_v61  ;;  %v430_v7 = vmax.f32 %v366_v63, 0.0  ;;  %v222_v55 = vmul.f32 %v932_v16, %v74_v1  ;;  %v76_v20 = vunpack.c.l.bf16 %v29_v58  ;;  %v368_v34 = vadd.f32 %v920_v15, %v220_v18 }
  0x2b   :  { %v741_v30 = vpack.c.bf16 %v429_v2, %v428_v62  ;;  %v431_v14 = vmax.f32 %v367_v3, 0.0  ;;  %v369_v39 = vadd.f32 %v923_v38, %v221_v19  ;;  %v223_v40 = vmul.f32 %v939_v50, %v75_v13 }
  0x2c   :  { %v370_v44 = vadd.f32 %v942_v51, %v222_v55  ;;  %v77_v45 = vunpack.c.h.bf16 %v29_v58  ;;  %v224_v60 = vmul.f32 %v955_v4, %v76_v20  ;;  %v432_v43 = vmax.f32 %v368_v34, 0.0  ;;  %v33_v20 = vld [vmem:[%s1220_s0 + $0x98] sm:$0xff] }
  0x2d   :  { %673 = vst [vmem:[%s1223_s3 + $0x58] sm:$0xff] %v741_v30  ;;  %v742_v42 = vpack.c.bf16 %v431_v14, %v430_v7  ;;  %v433_v46 = vmax.f32 %v369_v39, 0.0  ;;  %v78_v47 = vunpack.c.l.bf16 %v30_v21  ;;  %v371_v48 = vadd.f32 %v947_v57, %v223_v40 }
  0x2e   :  { %v434_v17 = vmax.f32 %v370_v44, 0.0  ;;  %v225_v49 = vmul.f32 %v958_v6, %v77_v45  ;;  %v372_v54 = vadd.f32 %v968_v10, %v224_v60  ;;  %v79_v61 = vunpack.c.h.bf16 %v30_v21  ;;  %v34_v60 = vld [vmem:[%s1220_s0 + $0xa0] sm:$0xff] }
  0x2f   :  { %674 = vst [vmem:[%s1223_s3 + $0x60] sm:$0xff] %v742_v42  ;;  %v743_v58 = vpack.c.bf16 %v433_v46, %v432_v43  ;;  %v226_v62 = vmul.f32 %v810_v22, %v78_v47  ;;  %v80_v63 = vunpack.c.l.bf16 %v31_v41  ;;  %v435_v1 = vmax.f32 %v371_v48, 0.0 }
  0x30   :  { %v373_v2 = vadd.f32 %v971_v12, %v225_v49  ;;  %v436_v3 = vmax.f32 %v372_v54, 0.0  ;;  %v81_v18 = vunpack.c.h.bf16 %v31_v41  ;;  %v227_v19 = vmul.f32 %v813_v23, %v79_v61 }
  0x31   :  { %675 = vst [vmem:[%s1223_s3 + $0x68] sm:$0xff] %v743_v58  ;;  %v374_v7 = vadd.f32 %v815_v24, %v226_v62  ;;  %v228_v13 = vmul.f32 %v821_v26, %v80_v63  ;;  %v82_v55 = vunpack.c.l.bf16 %v32_v56  ;;  %v744_v21 = vpack.c.bf16 %v435_v1, %v434_v17  ;;  %v35_v62 = vld [vmem:[%s1220_s0 + $0xa8] sm:$0xff] }
  0x32   :  { %v437_v30 = vmax.f32 %v373_v2, 0.0  ;;  %v229_v14 = vmul.f32 %v824_v27, %v81_v18  ;;  %v83_v34 = vunpack.c.h.bf16 %v32_v56  ;;  %v375_v39 = vadd.f32 %v818_v25, %v227_v19  ;;  %v36_v18 = vld [vmem:[%s1220_s0 + $0xb0] sm:$0xff] }
  0x33   :  { %v438_v40 = vmax.f32 %v374_v7, 0.0  ;;  %v376_v44 = vadd.f32 %v827_v28, %v228_v13  ;;  %v230_v45 = vmul.f32 %v835_v32, %v82_v55  ;;  %676 = vst [vmem:[%s1223_s3 + $0x70] sm:$0xff] %v744_v21  ;;  %v84_v46 = vunpack.c.l.bf16 %v33_v20 }
  0x34   :  { %v745_v41 = vpack.c.bf16 %v437_v30, %v436_v3  ;;  %v377_v42 = vadd.f32 %v830_v29, %v229_v14  ;;  %v231_v43 = vmul.f32 %v838_v33, %v83_v34  ;;  %v439_v47 = vmax.f32 %v375_v39, 0.0  ;;  %v37_v34 = vld [vmem:[%s1220_s0 + $0xb8] sm:$0xff] }
  0x35   :  { %v440_v48 = vmax.f32 %v376_v44, 0.0  ;;  %v378_v17 = vadd.f32 %v843_v36, %v230_v45  ;;  %v85_v49 = vunpack.c.h.bf16 %v33_v20  ;;  %v232_v58 = vmul.f32 %v861_v52, %v84_v46 }
  0x36   :  { %677 = vst [vmem:[%s1223_s3 + $0x78] sm:$0xff] %v745_v41  ;;  %v441_v54 = vmax.f32 %v377_v42, 0.0  ;;  %v379_v56 = vadd.f32 %v846_v37, %v231_v43  ;;  %v86_v61 = vunpack.c.l.bf16 %v34_v60  ;;  %v746_v63 = vpack.c.bf16 %v439_v47, %v438_v40 }
  0x37   :  { %v442_v1 = vmax.f32 %v378_v17, 0.0  ;;  %v233_v2 = vmul.f32 %v864_v53, %v85_v49  ;;  %v87_v3 = vunpack.c.h.bf16 %v34_v60  ;;  %v380_v13 = vadd.f32 %v873_v59, %v232_v58  ;;  %v38_v49 = vld [vmem:[%s1220_s0 + $0xc0] sm:$0xff] }
  0x38   :  { %v747_v19 = vpack.c.bf16 %v441_v54, %v440_v48  ;;  %v443_v7 = vmax.f32 %v379_v56, 0.0  ;;  %v234_v55 = vmul.f32 %v889_v5, %v86_v61  ;;  %678 = vst [vmem:[%s1223_s3 + $0x80] sm:$0xff] %v746_v63  ;;  %v88_v30 = vunpack.c.l.bf16 %v35_v62 }
  0x39   :  { %v381_v20 = vadd.f32 %v881_v0, %v233_v2  ;;  %v235_v21 = vmul.f32 %v897_v8, %v87_v3  ;;  %v89_v14 = vunpack.c.h.bf16 %v35_v62  ;;  %v444_v40 = vmax.f32 %v380_v13, 0.0  ;;  %v39_v3 = vld [vmem:[%s1220_s0 + $0xc8] sm:$0xff] }
  0x3a   :  { %679 = vst [vmem:[%s1223_s3 + $0x88] sm:$0xff] %v747_v19  ;;  %v748_v39 = vpack.c.bf16 %v443_v7, %v442_v1  ;;  %v382_v44 = vadd.f32 %v899_v9, %v234_v55  ;;  %v90_v45 = vunpack.c.l.bf16 %v36_v18  ;;  %v236_v42 = vmul.f32 %v913_v31, %v88_v30 }
  0x3b   :  { %v445_v60 = vmax.f32 %v381_v20, 0.0  ;;  %v383_v41 = vadd.f32 %v906_v11, %v235_v21  ;;  %v237_v43 = vmul.f32 %v917_v35, %v89_v14  ;;  %v91_v47 = vunpack.c.h.bf16 %v36_v18  ;;  %v40_v14 = vld [vmem:[%s1220_s0 + $0xd0] sm:$0xff] }
  0x3c   :  { %680 = vst [vmem:[%s1223_s3 + $0x90] sm:$0xff] %v748_v39  ;;  %v446_v46 = vmax.f32 %v382_v44, 0.0  ;;  %v238_v48 = vmul.f32 %v932_v16, %v90_v45  ;;  %v92_v17 = vunpack.c.l.bf16 %v37_v34  ;;  %v384_v58 = vadd.f32 %v920_v15, %v236_v42 }
  0x3d   :  { %v749_v54 = vpack.c.bf16 %v445_v60, %v444_v40  ;;  %v447_v56 = vmax.f32 %v383_v41, 0.0  ;;  %v385_v61 = vadd.f32 %v923_v38, %v237_v43  ;;  %v239_v62 = vmul.f32 %v939_v50, %v91_v47 }
  0x3e   :  { %v386_v63 = vadd.f32 %v942_v51, %v238_v48  ;;  %v93_v1 = vunpack.c.h.bf16 %v37_v34  ;;  %v240_v2 = vmul.f32 %v955_v4, %v92_v17  ;;  %v448_v19 = vmax.f32 %v384_v58, 0.0 }
  0x3f   :  { %681 = vst [vmem:[%s1223_s3 + $0x98] sm:$0xff] %v749_v54  ;;  %v750_v18 = vpack.c.bf16 %v447_v56, %v446_v46  ;;  %v449_v7 = vmax.f32 %v385_v61, 0.0  ;;  %v94_v13 = vunpack.c.l.bf16 %v38_v49  ;;  %v387_v55 = vadd.f32 %v947_v57, %v239_v62 }
  0x40   :  { %v450_v20 = vmax.f32 %v386_v63, 0.0  ;;  %v241_v21 = vmul.f32 %v958_v6, %v93_v1  ;;  %v388_v30 = vadd.f32 %v968_v10, %v240_v2  ;;  %v95_v39 = vunpack.c.h.bf16 %v38_v49 }
  0x41   :  { %682 = vst [vmem:[%s1223_s3 + $0xa0] sm:$0xff] %v750_v18  ;;  %v751_v34 = vpack.c.bf16 %v449_v7, %v448_v19  ;;  %v242_v40 = vmul.f32 %v810_v22, %v94_v13  ;;  %v96_v44 = vunpack.c.l.bf16 %v39_v3  ;;  %v451_v45 = vmax.f32 %v387_v55, 0.0  ;;  %v41_v22 = vld [vmem:[%s1220_s0 + $0xd8] sm:$0xff] }
  0x42   :  { %v389_v60 = vadd.f32 %v971_v12, %v241_v21  ;;  %v452_v41 = vmax.f32 %v388_v30, 0.0  ;;  %v97_v42 = vunpack.c.h.bf16 %v39_v3  ;;  %v243_v43 = vmul.f32 %v813_v23, %v95_v39 }
  0x43   :  { %683 = vst [vmem:[%s1223_s3 + $0xa8] sm:$0xff] %v751_v34  ;;  %v390_v46 = vadd.f32 %v815_v24, %v242_v40  ;;  %v244_v47 = vmul.f32 %v821_v26, %v96_v44  ;;  %v98_v48 = vunpack.c.l.bf16 %v40_v14  ;;  %v752_v17 = vpack.c.bf16 %v451_v45, %v450_v20  ;;  %v42_v24 = vld [vmem:[%s1220_s0 + $0xe0] sm:$0xff]  ;;  %v44_v20 = vld [vmem:[%s1220_s0 + $0xf0] sm:$0xff]  ;;  %v45_v40 = vld [vmem:[%s1220_s0 + $0xf8] sm:$0xff] }
  0x44   :  { %v453_v49 = vmax.f32 %v389_v60, 0.0  ;;  %v245_v54 = vmul.f32 %v824_v27, %v97_v42  ;;  %v99_v56 = vunpack.c.h.bf16 %v40_v14  ;;  %v391_v58 = vadd.f32 %v818_v25, %v243_v43 }
  0x45   :  { %v454_v61 = vmax.f32 %v390_v46, 0.0  ;;  %v392_v62 = vadd.f32 %v827_v28, %v244_v47  ;;  %v246_v23 = vmul.f32 %v835_v32, %v98_v48  ;;  %684 = vst [vmem:[%s1223_s3 + $0xb0] sm:$0xff] %v752_v17  ;;  %v100_v1 = vunpack.c.l.bf16 %v41_v22 }
  0x46   :  { %v753_v26 = vpack.c.bf16 %v453_v49, %v452_v41  ;;  %v393_v63 = vadd.f32 %v830_v29, %v245_v54  ;;  %v247_v27 = vmul.f32 %v838_v33, %v99_v56  ;;  %v455_v25 = vmax.f32 %v391_v58, 0.0  ;;  %v43_v29 = vld [vmem:[%s1220_s0 + $0xe8] sm:$0xff] }
  0x47   :  { %v456_v2 = vmax.f32 %v392_v62, 0.0  ;;  %v394_v28 = vadd.f32 %v843_v36, %v246_v23  ;;  %v101_v3 = vunpack.c.h.bf16 %v41_v22  ;;  %v248_v19 = vmul.f32 %v861_v52, %v100_v1 }
  0x48   :  { %685 = vst [vmem:[%s1223_s3 + $0xb8] sm:$0xff] %v753_v26  ;;  %v457_v32 = vmax.f32 %v393_v63, 0.0  ;;  %v395_v18 = vadd.f32 %v846_v37, %v247_v27  ;;  %v102_v7 = vunpack.c.l.bf16 %v42_v24  ;;  %v754_v33 = vpack.c.bf16 %v455_v25, %v454_v61 }
  0x49   :  { %v458_v13 = vmax.f32 %v394_v28, 0.0  ;;  %v249_v55 = vmul.f32 %v864_v53, %v101_v3  ;;  %v103_v36 = vunpack.c.h.bf16 %v42_v24  ;;  %v396_v37 = vadd.f32 %v873_v59, %v248_v19 }
  0x4a   :  { %v755_v21 = vpack.c.bf16 %v457_v32, %v456_v2  ;;  %v459_v30 = vmax.f32 %v395_v18, 0.0  ;;  %v250_v52 = vmul.f32 %v889_v5, %v102_v7  ;;  %686 = vst [vmem:[%s1223_s3 + $0xc0] sm:$0xff] %v754_v33  ;;  %v104_v53 = vunpack.c.l.bf16 %v43_v29 }
  0x4b   :  { %v397_v14 = vadd.f32 %v881_v0, %v249_v55  ;;  %v251_v34 = vmul.f32 %v897_v8, %v103_v36  ;;  %v105_v39 = vunpack.c.h.bf16 %v43_v29  ;;  %v460_v5 = vmax.f32 %v396_v37, 0.0 }
  0x4c   :  { %687 = vst [vmem:[%s1223_s3 + $0xc8] sm:$0xff] %v755_v21  ;;  %v756_v59 = vpack.c.bf16 %v459_v30, %v458_v13  ;;  %v398_v44 = vadd.f32 %v899_v9, %v250_v52  ;;  %v106_v45 = vunpack.c.l.bf16 %v44_v20  ;;  %v252_v8 = vmul.f32 %v913_v31, %v104_v53 }
  0x4d   :  { %v461_v60 = vmax.f32 %v397_v14, 0.0  ;;  %v399_v0 = vadd.f32 %v906_v11, %v251_v34  ;;  %v253_v41 = vmul.f32 %v917_v35, %v105_v39  ;;  %v107_v43 = vunpack.c.h.bf16 %v44_v20 }
  0x4e   :  { %688 = vst [vmem:[%s1223_s3 + $0xd0] sm:$0xff] %v756_v59  ;;  %v462_v42 = vmax.f32 %v398_v44, 0.0  ;;  %v254_v46 = vmul.f32 %v932_v16, %v106_v45  ;;  %v108_v47 = vunpack.c.l.bf16 %v45_v40  ;;  %v400_v9 = vadd.f32 %v920_v15, %v252_v8 }
  0x4f   :  { %v757_v48 = vpack.c.bf16 %v461_v60, %v460_v5  ;;  %v463_v22 = vmax.f32 %v399_v0, 0.0  ;;  %v401_v17 = vadd.f32 %v923_v38, %v253_v41  ;;  %v255_v11 = vmul.f32 %v939_v50, %v107_v43 }
  0x50   :  { %v402_v31 = vadd.f32 %v942_v51, %v254_v46  ;;  %v109_v35 = vunpack.c.h.bf16 %v45_v40  ;;  %v256_v49 = vmul.f32 %v955_v4, %v108_v47  ;;  %v464_v16 = vmax.f32 %v400_v9, 0.0 }
  0x51   :  { %689 = vst [vmem:[%s1223_s3 + $0xd8] sm:$0xff] %v757_v48  ;;  %v758_v54 = vpack.c.bf16 %v463_v22, %v462_v42  ;;  %v465_v56 = vmax.f32 %v401_v17, 0.0  ;;  %v403_v58 = vadd.f32 %v947_v57, %v255_v11 }
  0x52   :  { %v466_v61 = vmax.f32 %v402_v31, 0.0  ;;  %v257_v15 = vmul.f32 %v958_v6, %v109_v35  ;;  %v404_v38 = vadd.f32 %v968_v10, %v256_v49 }
  0x53   :  { %690 = vst [vmem:[%s1223_s3 + $0xe0] sm:$0xff] %v758_v54  ;;  %v759_v50 = vpack.c.bf16 %v465_v56, %v464_v16  ;;  %v467_v51 = vmax.f32 %v403_v58, 0.0 }
  0x54   :  { %v405_v4 = vadd.f32 %v971_v12, %v257_v15  ;;  %v468_v62 = vmax.f32 %v404_v38, 0.0 }
  0x55   :  { %691 = vst [vmem:[%s1223_s3 + $0xe8] sm:$0xff] %v759_v50  ;;  %v760_v23 = vpack.c.bf16 %v467_v51, %v466_v61 }
  0x56   :  { %v469_v57 = vmax.f32 %v405_v4, 0.0 }
  0x57   :  { %692 = vst [vmem:[%s1223_s3 + $0xf0] sm:$0xff] %v760_v23 }
  0x58   :  { %v761_v6 = vpack.c.bf16 %v469_v57, %v468_v62 }
  0x5a   :  { %693 = vst [vmem:[%s1223_s3 + $0xf8] sm:$0xff] %v761_v6 }

// kernel: generator_forward.12
= control target key start
LH: loop header
LB: loop body
LE: loop exit
PB: predicated region body
PF: predicated region fallthrough
CT: control target
= control target key end

     0   :  { %s1150_s12 = smov 0   ;;  %s1152_s13 = smov 0   ;;  %s1229_s0 = inlined_call_operand.vmem [shape: bf16[4,32,512], index: 0, kind: input, shape index: {}]   ;;  %s1230_s1 = inlined_call_operand.vmem [shape: bf16[4,512,128], index: 1, kind: input, shape index: {}]   ;;  %s1231_s2 = inlined_call_operand.vmem [shape: bf16[4,32,128], index: 2, kind: output, shape index: {0}]   ;;  %s1232_s3 = inlined_call_operand.vmem [shape: f32[4,1,2,128], index: 3, kind: output, shape index: {1}]  }
   0x1   :  { %s1154_s14 = smov 0  }
   0x2 LB: > { %s33_s15 = sadd.s32 1, %s1124_s13  ;;  %p910_p0 = scmp.ge.s32.totalorder %s1128_s14, 1  ;;  %s1128_s14 = sphi %s1154_s14, %s14_s14   ;;  %s1124_s13 = sphi %s1152_s13, %s1234_s13   ;;  %s1120_s12 = sphi %s1150_s12, %s1233_s12  }
   0x3   : > { %p35_p1 = scmp.ge.s32.totalorder %s33_s15, 4  ;;  %p190_p2 = scmp.lt.s32.totalorder %s1128_s14, 5 }
   0x5   : > { %s1236_s15 = smov (%p35_p1, %s33_s15), 0  ;;  %p191_p3 = pnand %p910_p0, %p190_p2 }
   0x6   : > { %p245_p4 = scmp.lt.s32.totalorder (!%p191_p3), %s1120_s12, 3 }
   0x7   : > { %194 = sbr.rel (%p191_p3) target bundleno = 279 (0x117), region = 28 }
   0xc   : > { %s1238_s12 = smov (!%p245_p4, %s1120_s12), 3  ;;  %vm731_vm0 = vcmask 1040384  }
   0xd   : > { %s965_s16 = sshll.u32 %s1238_s12, 8  ;;  %s964_s20 = sshll.u32 %s1238_s12, 6 }
   0xe   : > { %s1174_s19 = scalar_lea.vmem %s1230_s1, %s965_s16  ;;  %s253_s23 = scalar_lea.vmem %s1229_s0, %s964_s20 }
   0xf   : > { %v1062_v0 = vld [vmem:[%s1174_s19 + $0x78] sm:$0xff]   ;;  %v1066_v4 = vld [vmem:[%s1174_s19 + $0x70] sm:$0xff]   ;;  %v1070_v8 = vld [vmem:[%s1174_s19 + $0x68] sm:$0xff]   ;;  %s966_s24 = sshll.u32 %s1238_s12, 4  ;;  %s917_s28 = sshll.u32 %s1238_s12, 1 }
  0x10   : > { %v1063_v1 = vld [vmem:[%s1174_s19 + $0xf8] sm:$0xff]   ;;  %982 = vmatprep.subr.bf16.mxu0 %v1062_v0  ;;  %v1067_v5 = vld [vmem:[%s1174_s19 + $0xf0] sm:$0xff]   ;;  %v1071_v9 = vld [vmem:[%s1174_s19 + $0xe8] sm:$0xff]   ;;  %s274_s27 = scalar_lea.vmem %s1231_s2, %s966_s24  ;;  %s285_s4 = scalar_lea.vmem %s1232_s3, %s917_s28 }
  0x11   : > { %v1064_v2 = vld [vmem:[%s1174_s19 + $0x38] sm:$0xff]   ;;  %1010 = vmatprep.subr.bf16.mxu1 %v1063_v1  ;;  %v1068_v6 = vld [vmem:[%s1174_s19 + $0x30] sm:$0xff]   ;;  %v1072_v10 = vld [vmem:[%s1174_s19 + $0x28] sm:$0xff]  }
  0x12   : > { %v1065_v3 = vld [vmem:[%s1174_s19 + $0xb8] sm:$0xff]   ;;  %983 = vmatpush3.bf16.msra.mxu0 %v1064_v2  ;;  %v1069_v7 = vld [vmem:[%s1174_s19 + $0xb0] sm:$0xff]   ;;  %v1073_v11 = vld [vmem:[%s1174_s19 + $0xa8] sm:$0xff]  }
  0x13   : > { %1011 = vmatpush3.bf16.msra.mxu1 %v1065_v3  ;;  %984 = vmatprep.subr.bf16.mxu0 %v1066_v4  ;;  %v1074_v12 = vld [vmem:[%s1174_s19 + $0x60] sm:$0xff]   ;;  %v1078_v16 = vld [vmem:[%s1174_s19 + $0x58] sm:$0xff]   ;;  %v1082_v20 = vld [vmem:[%s1174_s19 + $0x50] sm:$0xff]  }
  0x14   : > { %1012 = vmatprep.subr.bf16.mxu1 %v1067_v5  ;;  %v1075_v13 = vld [vmem:[%s1174_s19 + $0xe0] sm:$0xff]   ;;  %v1079_v17 = vld [vmem:[%s1174_s19 + $0xd8] sm:$0xff]   ;;  %v1083_v21 = vld [vmem:[%s1174_s19 + $0xd0] sm:$0xff]  }
  0x15   : > { %v1076_v14 = vld [vmem:[%s1174_s19 + $0x20] sm:$0xff]   ;;  %v1080_v18 = vld [vmem:[%s1174_s19 + $0x18] sm:$0xff]   ;;  %v1084_v22 = vld [vmem:[%s1174_s19 + $0x10] sm:$0xff]  }
  0x16   : > { %985 = vmatpush3.bf16.msra.mxu0 %v1068_v6  ;;  %v1077_v15 = vld [vmem:[%s1174_s19 + $0xa0] sm:$0xff]   ;;  %v1081_v19 = vld [vmem:[%s1174_s19 + $0x98] sm:$0xff]   ;;  %v1085_v23 = vld [vmem:[%s1174_s19 + $0x90] sm:$0xff]  }
  0x17   : > { %1013 = vmatpush3.bf16.msra.mxu1 %v1069_v7  ;;  %986 = vmatprep.subr.bf16.mxu0 %v1070_v8  ;;  %v1086_v24 = vld [vmem:[%s1174_s19 + $0x48] sm:$0xff]   ;;  %v1090_v28 = vld [vmem:[%s1174_s19 + $0x40] sm:$0xff]  }
  0x18   : > { %1014 = vmatprep.subr.bf16.mxu1 %v1071_v9  ;;  %v1087_v25 = vld [vmem:[%s1174_s19 + $0xc8] sm:$0xff]   ;;  %v1091_v29 = vld [vmem:[%s1174_s19 + $0xc0] sm:$0xff]  }
  0x19   : > { %v1088_v26 = vld [vmem:[%s1174_s19 + $0x8] sm:$0xff]   ;;  %v1092_v30 = vld [vmem:[%s1174_s19] sm:$0xff]  }
  0x1a   : > { %987 = vmatpush3.bf16.msra.mxu0 %v1072_v10  ;;  %v1089_v27 = vld [vmem:[%s1174_s19 + $0x88] sm:$0xff]   ;;  %v1093_v31 = vld [vmem:[%s1174_s19 + $0x80] sm:$0xff]  }
  0x1b   : > { %1015 = vmatpush3.bf16.msra.mxu1 %v1073_v11  ;;  %988 = vmatprep.subr.bf16.mxu0 %v1074_v12  ;;  %v1094_v32 = vld [vmem:[%s253_s23] ss:$16 sps:$4 sm:$0xff]   ;;  %v1096_v33 = vld [vmem:[%s253_s23 + $0x4] ss:$16 sps:$4 sm:$0xff]   ;;  %v1097_v34 = vld [vmem:[%s253_s23 + $0x8] ss:$16 sps:$4 sm:$0xff]  }
  0x1c   : > { %1016 = vmatprep.subr.bf16.mxu1 %v1075_v13  ;;  %v1099_v35 = vld [vmem:[%s253_s23 + $0xc] ss:$16 sps:$4 sm:$0xff]   ;;  %623 = vmatprep.mubr.bf16.mxu0 %v1096_v33  ;;  %v1100_v36 = vld [vmem:[%s253_s23 + $0x24] ss:$16 sps:$4 sm:$0xff]   ;;  %v1104_v38 = vld [vmem:[%s253_s23 + $0x20] ss:$16 sps:$4 sm:$0xff]  }
  0x1d   : > { %672 = vmatprep.mubr.bf16.mxu1 %v1099_v35  ;;  %v1102_v37 = vld [vmem:[%s253_s23 + $0x2c] ss:$16 sps:$4 sm:$0xff]   ;;  %v1105_v39 = vld [vmem:[%s253_s23 + $0x28] ss:$16 sps:$4 sm:$0xff]  }
  0x1e   : > { %989 = vmatpush3.bf16.msra.mxu0 %v1076_v14 }
  0x1f   : > { %1017 = vmatpush3.bf16.msra.mxu1 %v1077_v15  ;;  %990 = vmatprep.subr.bf16.mxu0 %v1078_v16 }
  0x20   : > { %1018 = vmatprep.subr.bf16.mxu1 %v1079_v17 }
  0x22   : > { %991 = vmatpush3.bf16.msra.mxu0 %v1080_v18 }
  0x23   : > { %1019 = vmatpush3.bf16.msra.mxu1 %v1081_v19  ;;  %992 = vmatprep.subr.bf16.mxu0 %v1082_v20 }
  0x24   : > { %1020 = vmatprep.subr.bf16.mxu1 %v1083_v21 }
  0x26   : > { %993 = vmatpush3.bf16.msra.mxu0 %v1084_v22 }
  0x27   : > { %1021 = vmatpush3.bf16.msra.mxu1 %v1085_v23  ;;  %994 = vmatprep.subr.bf16.mxu0 %v1086_v24 }
  0x28   : > { %1022 = vmatprep.subr.bf16.mxu1 %v1087_v25 }
  0x2a   : > { %995 = vmatpush3.bf16.msra.mxu0 %v1088_v26 }
  0x2b   : > { %1023 = vmatpush3.bf16.msra.mxu1 %v1089_v27  ;;  %996 = vmatprep.subr.bf16.mxu0 %v1090_v28 }
  0x2c   : > { %1024 = vmatprep.subr.bf16.mxu1 %v1091_v29 }
  0x2e   : > { %997 = vmatpush3.bf16.msra.mxu0 %v1092_v30 }
  0x2f   : > { %1025 = vmatpush3.bf16.msra.mxu1 %v1093_v31 }
  0x31   : > { %624 = vmatmul.mubr.bf16.vlgmr.msra.gmra.mxu0 %v1094_v32 }
  0x32   : > { %673 = vmatmul.mubr.bf16.vlgmr.msra.gmra.mxu1 %v1097_v34  ;;  %631 = vmatprep.mubr.bf16.mxu0 %v1100_v36 }
  0x33   : > { %680 = vmatprep.mubr.bf16.mxu1 %v1102_v37 }
  0x39   : > { %632 = vmatmul.mubr.bf16.gmra.mxu0 %v1104_v38 }
  0x3a   : > { %681 = vmatmul.mubr.bf16.gmra.mxu1 %v1105_v39 }
  0xf1   : > { %v998_v40 = vpop.f32.mrf.mxu0 }
  0xf2   : > { %v1026_v41 = vpop.f32.mrf.mxu1 }
  0xf3   : > { %v999_v42 = vpop.f32.mrf.mxu0 }
  0xf4   : > { %v1027_v43 = vpop.f32.mrf.mxu1  ;;  %v1000_v46 = vadd.f32 %v999_v42, %v998_v40 }
  0xf5   : > { %v1001_v44 = vpop.f32.mrf.mxu0  ;;  %v1028_v47 = vadd.f32 %v1027_v43, %v1026_v41 }
  0xf6   : > { %v1029_v45 = vpop.f32.mrf.mxu1 }
  0xf7   : > { %v1002_v48 = vpop.f32.mrf.mxu0  ;;  %v675_v54 = vadd.f32 %v1028_v47, %v1000_v46 }
  0xf8   : > { %v1003_v49 = vadd.f32 %v1002_v48, %v1001_v44  ;;  %v1030_v50 = vpop.f32.mrf.mxu1 }
  0xf9   : > { %v1031_v51 = vadd.f32 %v1030_v50, %v1029_v45  ;;  %v1004_v52 = vpop.f32.mrf.mxu0  ;;  %v718_v4 = vmul.f32 %v675_v54, %v675_v54 }
  0xfa   : > { %v1032_v53 = vpop.f32.mrf.mxu1 }
  0xfb   : > { %v678_v55 = vadd.f32 %v1031_v51, %v1003_v49  ;;  %v1005_v56 = vpop.f32.mrf.mxu0 }
  0xfc   : > { %v1006_v57 = vadd.f32 %v1005_v56, %v1004_v52  ;;  %v1033_v58 = vpop.f32.mrf.mxu1 }
  0xfd   : > { %v974_v59 = vpack.c.bf16 %v678_v55, %v675_v54  ;;  %v1034_v60 = vadd.f32 %v1033_v58, %v1032_v53  ;;  %v1007_v61 = vpop.f32.mrf.mxu0  ;;  %v719_v63 = vmul.f32 %v678_v55, %v678_v55  ;;  %v709_v5 = vadd.f32 %v678_v55, %v675_v54 }
  0xfe   : > { %v1035_v62 = vpop.f32.mrf.mxu1 }
  0xff   : > { %975 = vst [vmem:[%s274_s27] sm:$0xff] %v974_v59   ;;  %v683_v0 = vadd.f32 %v1034_v60, %v1006_v57  ;;  %v1008_v1 = vpop.f32.mrf.mxu0  ;;  %v722_v8 = vadd.f32 %v719_v63, %v718_v4 }
 0x100   : > { %v1009_v2 = vadd.f32 %v1008_v1, %v1007_v61  ;;  %v1036_v3 = vpop.f32.mrf.mxu1 }
 0x101   : > { %v720_v6 = vmul.f32 %v683_v0, %v683_v0  ;;  %v1037_v7 = vadd.f32 %v1036_v3, %v1035_v62  ;;  %v710_v9 = vadd.f32 %v709_v5, %v683_v0 }
 0x103   : > { %v686_v10 = vadd.f32 %v1037_v7, %v1009_v2  ;;  %v723_v11 = vadd.f32 %v722_v8, %v720_v6 }
 0x105   : > { %v979_v12 = vpack.c.bf16 %v686_v10, %v683_v0  ;;  %v711_v13 = vadd.f32 %v710_v9, %v686_v10  ;;  %v721_v14 = vmul.f32 %v686_v10, %v686_v10 }
 0x107   : > { %981 = vst [vmem:[%s274_s27 + $0x8] sm:$0xff] %v979_v12   ;;  %v712_v15 = vrot.slane %v711_v13, 4  ;;  %v724_v16 = vadd.f32 %v723_v11, %v721_v14 }
 0x109   : > { %v713_v17 = vadd.f32 %v712_v15, %v711_v13  ;;  %v725_v18 = vrot.slane %v724_v16, 4 }
 0x10b   : > { %v714_v19 = vrot.slane %v713_v17, 2  ;;  %v726_v20 = vadd.f32 %v725_v18, %v724_v16 }
 0x10d   : > { %v715_v21 = vadd.f32 %v714_v19, %v713_v17  ;;  %v727_v22 = vrot.slane %v726_v20, 2 }
 0x10f   : > { %v716_v23 = vrot.slane %v715_v21, 1  ;;  %v728_v24 = vadd.f32 %v727_v22, %v726_v20 }
 0x111   : > { %v729_v25 = vrot.slane %v728_v24, 1  ;;  %v717_v26 = vadd.f32 %v716_v23, %v715_v21 }
 0x113   : > { %v730_v27 = vadd.f32 %v729_v25, %v728_v24 }
 0x115   : > { %v732_v28 = vsel %vm731_vm0, %v717_v26, %v730_v27 }
 0x116   : > { %733 = vst [vmem:[%s285_s4] sm:$0x3] %v732_v28 }
 0x117 PF: > { %s14_s14 = sadd.s32 1, %s1128_s14   ;;  %s1233_s12 = smov %s1124_s13 }
 0x118   : > { %p11_p5 = scmp.ge.s32.totalorder %s14_s14, 6   ;;  %s1234_s13 = smov %s1236_s15 }
 0x11a   :  { %13 = sbr.rel (!%p11_p5) target bundleno = 2 (0x2), region = 73 }

// kernel: generator_forward.13
= control target key start
LH: loop header
LB: loop body
LE: loop exit
PB: predicated region body
PF: predicated region fallthrough
CT: control target
= control target key end

     0   :  { %s422_s0 = inlined_call_operand.vmem [shape: bf16[128,128], index: 0, kind: input, shape index: {}]   ;;  %s423_s1 = inlined_call_operand.vmem [shape: f32[1,128], index: 1, kind: input, shape index: {}]   ;;  %s424_s2 = inlined_call_operand.vmem [shape: f32[1,128], index: 2, kind: input, shape index: {}]   ;;  %s425_s3 = inlined_call_operand.vmem [shape: bf16[128,128], index: 3, kind: output, shape index: {}]  }
   0x1   :  { %v227_v0 = vld [vmem:[%s422_s0] sm:$0xff]   ;;  %v298_v4 = vld [vmem:[%s422_s0 + $0x8] sm:$0xff]   ;;  %v299_v5 = vld [vmem:[%s422_s0 + $0x10] sm:$0xff]  }
   0x2   :  { %v338_v1 = vld [vmem:[%s423_s1] ss:$0 sm:$0xff]  ;;  %v228_v2 = vunpack.c.l.bf16 %v227_v0  ;;  %v229_v3 = vunpack.c.h.bf16 %v227_v0  ;;  %v300_v6 = vld [vmem:[%s422_s0 + $0x18] sm:$0xff]   ;;  %v232_v8 = vunpack.c.l.bf16 %v298_v4  ;;  %v233_v9 = vunpack.c.h.bf16 %v298_v4  ;;  %v302_v33 = vld [vmem:[%s422_s0 + $0x28] sm:$0xff]  }
   0x3   :  { %v352_v7 = vld [vmem:[%s424_s2] ss:$0 sm:$0xff]  ;;  %v236_v10 = vunpack.c.l.bf16 %v299_v5  ;;  %v237_v11 = vunpack.c.h.bf16 %v299_v5  ;;  %v240_v14 = vunpack.c.l.bf16 %v300_v6  ;;  %v241_v15 = vunpack.c.h.bf16 %v300_v6  ;;  %v303_v38 = vld [vmem:[%s422_s0 + $0x30] sm:$0xff]   ;;  %v304_v43 = vld [vmem:[%s422_s0 + $0x38] sm:$0xff]  }
   0x4   :  { %v53_v12 = vmul.f32 %v228_v2, %v338_v1  ;;  %v54_v13 = vmul.f32 %v229_v3, %v338_v1  ;;  %v55_v16 = vmul.f32 %v232_v8, %v338_v1  ;;  %v56_v17 = vmul.f32 %v233_v9, %v338_v1  ;;  %v301_v28 = vld [vmem:[%s422_s0 + $0x20] sm:$0xff]  }
   0x5   :  { %v57_v18 = vmul.f32 %v236_v10, %v338_v1  ;;  %v58_v19 = vmul.f32 %v237_v11, %v338_v1  ;;  %v59_v22 = vmul.f32 %v240_v14, %v338_v1  ;;  %v60_v23 = vmul.f32 %v241_v15, %v338_v1 }
   0x6   :  { %v76_v20 = vadd.f32 %v352_v7, %v53_v12  ;;  %v77_v21 = vadd.f32 %v352_v7, %v54_v13  ;;  %v78_v24 = vadd.f32 %v352_v7, %v55_v16  ;;  %v79_v25 = vadd.f32 %v352_v7, %v56_v17 }
   0x7   :  { %v80_v26 = vadd.f32 %v352_v7, %v57_v18  ;;  %v81_v27 = vadd.f32 %v352_v7, %v58_v19  ;;  %v82_v31 = vadd.f32 %v352_v7, %v59_v22  ;;  %v83_v32 = vadd.f32 %v352_v7, %v60_v23 }
   0x8   :  { %v92_v29 = vmax.f32 %v76_v20, 0.0  ;;  %v93_v30 = vmax.f32 %v77_v21, 0.0  ;;  %v94_v34 = vmax.f32 %v78_v24, 0.0  ;;  %v95_v35 = vmax.f32 %v79_v25, 0.0 }
   0x9   :  { %v96_v36 = vmax.f32 %v80_v26, 0.0  ;;  %v97_v37 = vmax.f32 %v81_v27, 0.0  ;;  %v98_v40 = vmax.f32 %v82_v31, 0.0  ;;  %v99_v41 = vmax.f32 %v83_v32, 0.0 }
   0xa   :  { %v261_v39 = vpack.c.bf16 %v93_v30, %v92_v29  ;;  %v244_v42 = vunpack.c.l.bf16 %v301_v28  ;;  %v266_v44 = vpack.c.bf16 %v95_v35, %v94_v34  ;;  %v245_v46 = vunpack.c.h.bf16 %v301_v28 }
   0xb   :  { %v271_v45 = vpack.c.bf16 %v97_v37, %v96_v36  ;;  %v248_v47 = vunpack.c.l.bf16 %v302_v33  ;;  %v276_v48 = vpack.c.bf16 %v99_v41, %v98_v40  ;;  %v249_v50 = vunpack.c.h.bf16 %v302_v33 }
   0xc   :  { %262 = vst [vmem:[%s425_s3] sm:$0xff] %v261_v39   ;;  %v61_v49 = vmul.f32 %v244_v42, %v338_v1  ;;  %v252_v51 = vunpack.c.l.bf16 %v303_v38  ;;  %305 = vst [vmem:[%s425_s3 + $0x8] sm:$0xff] %v266_v44   ;;  %v62_v52 = vmul.f32 %v245_v46, %v338_v1  ;;  %v253_v54 = vunpack.c.h.bf16 %v303_v38 }
   0xd   :  { %306 = vst [vmem:[%s425_s3 + $0x10] sm:$0xff] %v271_v45   ;;  %v63_v53 = vmul.f32 %v248_v47, %v338_v1  ;;  %v256_v55 = vunpack.c.l.bf16 %v304_v43  ;;  %307 = vst [vmem:[%s425_s3 + $0x18] sm:$0xff] %v276_v48   ;;  %v64_v57 = vmul.f32 %v249_v50, %v338_v1  ;;  %v257_v59 = vunpack.c.h.bf16 %v304_v43 }
   0xe   :  { %v84_v56 = vadd.f32 %v352_v7, %v61_v49  ;;  %v65_v58 = vmul.f32 %v252_v51, %v338_v1  ;;  %v85_v60 = vadd.f32 %v352_v7, %v62_v52  ;;  %v66_v62 = vmul.f32 %v253_v54, %v338_v1 }
   0xf   :  { %v86_v61 = vadd.f32 %v352_v7, %v63_v53  ;;  %v67_v63 = vmul.f32 %v256_v55, %v338_v1  ;;  %v87_v2 = vadd.f32 %v352_v7, %v64_v57  ;;  %v68_v4 = vmul.f32 %v257_v59, %v338_v1 }
  0x10   :  { %v100_v0 = vmax.f32 %v84_v56, 0.0  ;;  %v88_v3 = vadd.f32 %v352_v7, %v65_v58  ;;  %v101_v5 = vmax.f32 %v85_v60, 0.0  ;;  %v89_v8 = vadd.f32 %v352_v7, %v66_v62 }
  0x11   :  { %v102_v6 = vmax.f32 %v86_v61, 0.0  ;;  %v90_v9 = vadd.f32 %v352_v7, %v67_v63  ;;  %v103_v10 = vmax.f32 %v87_v2, 0.0  ;;  %v91_v12 = vadd.f32 %v352_v7, %v68_v4 }
  0x12   :  { %v104_v11 = vmax.f32 %v88_v3, 0.0  ;;  %v281_v13 = vpack.c.bf16 %v101_v5, %v100_v0  ;;  %v105_v14 = vmax.f32 %v89_v8, 0.0 }
  0x13   :  { %v106_v15 = vmax.f32 %v90_v9, 0.0  ;;  %v286_v16 = vpack.c.bf16 %v103_v10, %v102_v6  ;;  %v107_v17 = vmax.f32 %v91_v12, 0.0 }
  0x14   :  { %308 = vst [vmem:[%s425_s3 + $0x20] sm:$0xff] %v281_v13   ;;  %v291_v1 = vpack.c.bf16 %v105_v14, %v104_v11 }
  0x15   :  { %309 = vst [vmem:[%s425_s3 + $0x28] sm:$0xff] %v286_v16   ;;  %v296_v18 = vpack.c.bf16 %v107_v17, %v106_v15 }
  0x16   :  { %310 = vst [vmem:[%s425_s3 + $0x30] sm:$0xff] %v291_v1  }
  0x17   :  { %311 = vst [vmem:[%s425_s3 + $0x38] sm:$0xff] %v296_v18  }

// kernel: generator_forward.14
= control target key start
LH: loop header
LB: loop body
LE: loop exit
PB: predicated region body
PF: predicated region fallthrough
CT: control target
= control target key end

     0   :  { %s1237_s12 = smov 0   ;;  %s1239_s13 = smov 0   ;;  %s1351_s0 = inlined_call_operand.vmem [shape: bf16[4,128,256], index: 0, kind: input, shape index: {}]   ;;  %s1352_s1 = inlined_call_operand.vmem [shape: bf16[4,256,128], index: 1, kind: input, shape index: {}]   ;;  %s1353_s2 = inlined_call_operand.vmem [shape: bf16[4,128,128], index: 2, kind: output, shape index: {0}]   ;;  %s1354_s3 = inlined_call_operand.vmem [shape: f32[4,1,2,128], index: 3, kind: output, shape index: {1}]  }
   0x1   :  { %s1241_s14 = smov 0  }
   0x2 LB: > { %s33_s15 = sadd.s32 1, %s1211_s13  ;;  %p925_p0 = scmp.ge.s32.totalorder %s1215_s14, 1  ;;  %s1215_s14 = sphi %s1241_s14, %s14_s14   ;;  %s1211_s13 = sphi %s1239_s13, %s1356_s13   ;;  %s1207_s12 = sphi %s1237_s12, %s1355_s12  }
   0x3   : > { %p35_p1 = scmp.ge.s32.totalorder %s33_s15, 4  ;;  %p190_p2 = scmp.lt.s32.totalorder %s1215_s14, 5 }
   0x5   : > { %s1358_s15 = smov (%p35_p1, %s33_s15), 0  ;;  %p191_p3 = pnand %p925_p0, %p190_p2 }
   0x6   : > { %p245_p4 = scmp.lt.s32.totalorder (!%p191_p3), %s1207_s12, 3 }
   0x7   : > { %194 = sbr.rel (%p191_p3) target bundleno = 307 (0x133), region = 28 }
   0xc   : > { %s1360_s12 = smov (!%p245_p4, %s1207_s12), 3  ;;  %vm746_vm0 = vcmask 1040384  }
   0xd   : > { %s983_s16 = sshll.u32 %s1360_s12, 7  ;;  %s985_s23 = sshll.u32 %s1360_s12, 6 }
   0xe   : > { %s1261_s19 = scalar_lea.vmem %s1352_s1, %s983_s16  ;;  %s1275_s22 = scalar_lea.vmem %s1351_s0, %s983_s16 }
   0xf   : > { %v1153_v0 = vld [vmem:[%s1261_s19 + $0x78] sm:$0xff]   ;;  %v1155_v2 = vld [vmem:[%s1261_s19 + $0x70] sm:$0xff]   ;;  %v1157_v4 = vld [vmem:[%s1261_s19 + $0x68] sm:$0xff]   ;;  %s1308_s26 = scalar_lea.vmem %s1353_s2, %s985_s23  ;;  %s932_s27 = sshll.u32 %s1360_s12, 1 }
  0x10   : > { %v1154_v1 = vld [vmem:[%s1261_s19 + $0x38] sm:$0xff]   ;;  %1049 = vmatprep.subr.bf16.mxu0 %v1153_v0  ;;  %1113 = vmatprep.subr.bf16.mxu1 %v1153_v0  ;;  %v1156_v3 = vld [vmem:[%s1261_s19 + $0x30] sm:$0xff]   ;;  %v1158_v5 = vld [vmem:[%s1261_s19 + $0x28] sm:$0xff]   ;;  %s285_s30 = scalar_lea.vmem %s1354_s3, %s932_s27 }
  0x11   : > { %1050 = vmatpush3.bf16.msra.mxu0 %v1154_v1  ;;  %1121 = vmatpush3.bf16.msra.mxu1 %v1154_v1  ;;  %v1159_v6 = vld [vmem:[%s1261_s19 + $0x60] sm:$0xff]   ;;  %v1161_v8 = vld [vmem:[%s1261_s19 + $0x58] sm:$0xff]   ;;  %v1163_v10 = vld [vmem:[%s1261_s19 + $0x50] sm:$0xff]  }
  0x12   : > { %1051 = vmatprep.subr.bf16.mxu0 %v1155_v2  ;;  %1114 = vmatprep.subr.bf16.mxu1 %v1155_v2  ;;  %v1160_v7 = vld [vmem:[%s1261_s19 + $0x20] sm:$0xff]   ;;  %v1162_v9 = vld [vmem:[%s1261_s19 + $0x18] sm:$0xff]   ;;  %v1164_v12 = vld [vmem:[%s1261_s19 + $0x10] sm:$0xff]  }
  0x13   : > { %v1171_v11 = vld [vmem:[%s1275_s22 + $0x4] ss:$8 sps:$4 sm:$0xff]   ;;  %v1169_v18 = vld [vmem:[%s1275_s22] ss:$8 sps:$4 sm:$0xff]   ;;  %v1172_v20 = vld [vmem:[%s1275_s22 + $0x14] ss:$8 sps:$4 sm:$0xff]  }
  0x14   : > { %v1177_v13 = vld [vmem:[%s1275_s22 + $0x44] ss:$8 sps:$4 sm:$0xff]   ;;  %543 = vmatprep.mubr.bf16.mxu0 %v1171_v11  ;;  %v1175_v19 = vld [vmem:[%s1275_s22 + $0x40] ss:$8 sps:$4 sm:$0xff]   ;;  %v1181_v21 = vld [vmem:[%s1275_s22 + $0x54] ss:$8 sps:$4 sm:$0xff]  }
  0x15   : > { %1052 = vmatpush3.bf16.msra.mxu0 %v1156_v3  ;;  %1122 = vmatpush3.bf16.msra.mxu1 %v1156_v3  ;;  %v1165_v14 = vld [vmem:[%s1261_s19 + $0x48] sm:$0xff]   ;;  %v1167_v16 = vld [vmem:[%s1261_s19 + $0x40] sm:$0xff]   ;;  %v1174_v22 = vld [vmem:[%s1275_s22 + $0x10] ss:$8 sps:$4 sm:$0xff]  }
  0x16   : > { %1053 = vmatprep.subr.bf16.mxu0 %v1157_v4  ;;  %1115 = vmatprep.subr.bf16.mxu1 %v1157_v4  ;;  %v1166_v15 = vld [vmem:[%s1261_s19 + $0x8] sm:$0xff]   ;;  %v1168_v17 = vld [vmem:[%s1261_s19] sm:$0xff]   ;;  %v1183_v23 = vld [vmem:[%s1275_s22 + $0x50] ss:$8 sps:$4 sm:$0xff]  }
  0x17   : > { %575 = vmatprep.mubr.bf16.mxu1 %v1177_v13  ;;  %v1178_v24 = vld [vmem:[%s1275_s22 + $0x24] ss:$8 sps:$4 sm:$0xff]   ;;  %v1180_v26 = vld [vmem:[%s1275_s22 + $0x20] ss:$8 sps:$4 sm:$0xff]   ;;  %v1184_v28 = vld [vmem:[%s1275_s22 + $0x34] ss:$8 sps:$4 sm:$0xff]  }
  0x18   : > { %v1187_v25 = vld [vmem:[%s1275_s22 + $0x64] ss:$8 sps:$4 sm:$0xff]   ;;  %v1189_v27 = vld [vmem:[%s1275_s22 + $0x60] ss:$8 sps:$4 sm:$0xff]   ;;  %v1190_v29 = vld [vmem:[%s1275_s22 + $0x74] ss:$8 sps:$4 sm:$0xff]  }
  0x19   : > { %1054 = vmatpush3.bf16.msra.mxu0 %v1158_v5  ;;  %1123 = vmatpush3.bf16.msra.mxu1 %v1158_v5  ;;  %v1186_v30 = vld [vmem:[%s1275_s22 + $0x30] ss:$8 sps:$4 sm:$0xff]  }
  0x1a   : > { %1055 = vmatprep.subr.bf16.mxu0 %v1159_v6  ;;  %1116 = vmatprep.subr.bf16.mxu1 %v1159_v6  ;;  %v1192_v31 = vld [vmem:[%s1275_s22 + $0x70] ss:$8 sps:$4 sm:$0xff]  }
  0x1d   : > { %1056 = vmatpush3.bf16.msra.mxu0 %v1160_v7  ;;  %1124 = vmatpush3.bf16.msra.mxu1 %v1160_v7 }
  0x1e   : > { %1057 = vmatprep.subr.bf16.mxu0 %v1161_v8  ;;  %1117 = vmatprep.subr.bf16.mxu1 %v1161_v8 }
  0x21   : > { %1058 = vmatpush3.bf16.msra.mxu0 %v1162_v9  ;;  %1125 = vmatpush3.bf16.msra.mxu1 %v1162_v9 }
  0x22   : > { %1059 = vmatprep.subr.bf16.mxu0 %v1163_v10  ;;  %1118 = vmatprep.subr.bf16.mxu1 %v1163_v10 }
  0x25   : > { %1060 = vmatpush3.bf16.msra.mxu0 %v1164_v12  ;;  %1126 = vmatpush3.bf16.msra.mxu1 %v1164_v12 }
  0x26   : > { %1061 = vmatprep.subr.bf16.mxu0 %v1165_v14  ;;  %1119 = vmatprep.subr.bf16.mxu1 %v1165_v14 }
  0x29   : > { %1062 = vmatpush3.bf16.msra.mxu0 %v1166_v15  ;;  %1127 = vmatpush3.bf16.msra.mxu1 %v1166_v15 }
  0x2a   : > { %1063 = vmatprep.subr.bf16.mxu0 %v1167_v16  ;;  %1120 = vmatprep.subr.bf16.mxu1 %v1167_v16 }
  0x2d   : > { %1064 = vmatpush3.bf16.msra.mxu0 %v1168_v17  ;;  %1128 = vmatpush3.bf16.msra.mxu1 %v1168_v17 }
  0x30   : > { %544 = vmatmul.mubr.bf16.vlgmr.msra.gmra.mxu0 %v1169_v18  ;;  %576 = vmatmul.mubr.bf16.vlgmr.msra.gmra.mxu1 %v1175_v19 }
  0x31   : > { %551 = vmatprep.mubr.bf16.mxu0 %v1172_v20  ;;  %583 = vmatprep.mubr.bf16.mxu1 %v1181_v21 }
  0x38   : > { %552 = vmatmul.mubr.bf16.gmra.mxu0 %v1174_v22  ;;  %584 = vmatmul.mubr.bf16.gmra.mxu1 %v1183_v23 }
  0x39   : > { %559 = vmatprep.mubr.bf16.mxu0 %v1178_v24  ;;  %591 = vmatprep.mubr.bf16.mxu1 %v1187_v25 }
  0x40   : > { %560 = vmatmul.mubr.bf16.gmra.mxu0 %v1180_v26  ;;  %592 = vmatmul.mubr.bf16.gmra.mxu1 %v1189_v27 }
  0x41   : > { %567 = vmatprep.mubr.bf16.mxu0 %v1184_v28  ;;  %599 = vmatprep.mubr.bf16.mxu1 %v1190_v29 }
  0x48   : > { %568 = vmatmul.mubr.bf16.gmra.mxu0 %v1186_v30  ;;  %600 = vmatmul.mubr.bf16.gmra.mxu1 %v1192_v31 }
  0xf0   : > { %v1065_v32 = vpop.f32.mrf.mxu0  ;;  %v1089_v33 = vpop.f32.mrf.mxu1 }
  0xf2   : > { %v1066_v34 = vpop.f32.mrf.mxu0  ;;  %v1090_v35 = vpop.f32.mrf.mxu1 }
  0xf3   : > { %v1301_v38 = vadd.f32 %v1090_v35, %v1089_v33  ;;  %v1067_v41 = vadd.f32 %v1066_v34, %v1065_v32 }
  0xf4   : > { %v1068_v36 = vpop.f32.mrf.mxu0  ;;  %v1092_v37 = vpop.f32.mrf.mxu1 }
  0xf5   : > { %v709_v1 = vmul.f32 %v1067_v41, %v1067_v41 }
  0xf6   : > { %v1069_v39 = vpop.f32.mrf.mxu0  ;;  %v1093_v40 = vpop.f32.mrf.mxu1 }
  0xf7   : > { %v1070_v42 = vadd.f32 %v1069_v39, %v1068_v36  ;;  %v1303_v43 = vadd.f32 %v1093_v40, %v1092_v37 }
  0xf8   : > { %v1071_v44 = vpop.f32.mrf.mxu0  ;;  %v1095_v45 = vpop.f32.mrf.mxu1 }
  0xf9   : > { %v1005_v46 = vpack.c.bf16 %v1070_v42, %v1067_v41  ;;  %v1025_v47 = vpack.c.bf16 %v1303_v43, %v1301_v38  ;;  %v710_v62 = vmul.f32 %v1070_v42, %v1070_v42  ;;  %v688_v6 = vadd.f32 %v1070_v42, %v1067_v41 }
  0xfa   : > { %v1072_v48 = vpop.f32.mrf.mxu0  ;;  %v1096_v49 = vpop.f32.mrf.mxu1 }
  0xfb   : > { %1006 = vst [vmem:[%s1308_s26] sm:$0xff] %v1005_v46   ;;  %1045 = vst [vmem:[%s1308_s26 + $0x20] sm:$0xff] %v1025_v47   ;;  %v1314_v52 = vadd.f32 %v1096_v49, %v1095_v45  ;;  %v1073_v55 = vadd.f32 %v1072_v48, %v1071_v44  ;;  %v725_v8 = vadd.f32 %v710_v62, %v709_v1 }
  0xfc   : > { %v1074_v50 = vpop.f32.mrf.mxu0  ;;  %v1098_v51 = vpop.f32.mrf.mxu1  ;;  %v717_v47 = vmul.f32 %v1301_v38, %v1301_v38 }
  0xfd   : > { %v711_v2 = vmul.f32 %v1073_v55, %v1073_v55  ;;  %v689_v12 = vadd.f32 %v1073_v55, %v688_v6 }
  0xfe   : > { %v1075_v53 = vpop.f32.mrf.mxu0  ;;  %v1099_v54 = vpop.f32.mrf.mxu1 }
  0xff   : > { %v1076_v56 = vadd.f32 %v1075_v53, %v1074_v50  ;;  %v1316_v57 = vadd.f32 %v1099_v54, %v1098_v51  ;;  %v726_v15 = vadd.f32 %v725_v8, %v711_v2  ;;  %v718_v50 = vmul.f32 %v1303_v43, %v1303_v43 }
 0x100   : > { %v1077_v58 = vpop.f32.mrf.mxu0  ;;  %v1101_v59 = vpop.f32.mrf.mxu1  ;;  %v719_v54 = vmul.f32 %v1314_v52, %v1314_v52 }
 0x101   : > { %v1010_v60 = vpack.c.bf16 %v1076_v56, %v1073_v55  ;;  %v1030_v61 = vpack.c.bf16 %v1316_v57, %v1314_v52  ;;  %v712_v9 = vmul.f32 %v1076_v56, %v1076_v56  ;;  %v690_v19 = vadd.f32 %v1076_v56, %v689_v12 }
 0x102   : > { %v1078_v63 = vpop.f32.mrf.mxu0  ;;  %v1102_v0 = vpop.f32.mrf.mxu1 }
 0x103   : > { %1042 = vst [vmem:[%s1308_s26 + $0x8] sm:$0xff] %v1010_v60   ;;  %1046 = vst [vmem:[%s1308_s26 + $0x28] sm:$0xff] %v1030_v61   ;;  %v1079_v3 = vadd.f32 %v1078_v63, %v1077_v58  ;;  %v1103_v7 = vadd.f32 %v1102_v0, %v1101_v59  ;;  %v727_v22 = vadd.f32 %v726_v15, %v712_v9 }
 0x104   : > { %v1080_v4 = vpop.f32.mrf.mxu0  ;;  %v1104_v5 = vpop.f32.mrf.mxu1  ;;  %v720_v58 = vmul.f32 %v1316_v57, %v1316_v57 }
 0x105   : > { %v713_v16 = vmul.f32 %v1079_v3, %v1079_v3  ;;  %v691_v26 = vadd.f32 %v1079_v3, %v690_v19  ;;  %v721_v60 = vmul.f32 %v1103_v7, %v1103_v7 }
 0x106   : > { %v1081_v10 = vpop.f32.mrf.mxu0  ;;  %v1105_v11 = vpop.f32.mrf.mxu1 }
 0x107   : > { %v1082_v13 = vadd.f32 %v1081_v10, %v1080_v4  ;;  %v1106_v14 = vadd.f32 %v1105_v11, %v1104_v5  ;;  %v728_v28 = vadd.f32 %v727_v22, %v713_v16 }
 0x108   : > { %v1083_v17 = vpop.f32.mrf.mxu0  ;;  %v1107_v18 = vpop.f32.mrf.mxu1 }
 0x109   : > { %v1015_v20 = vpack.c.bf16 %v1082_v13, %v1079_v3  ;;  %v1035_v21 = vpack.c.bf16 %v1106_v14, %v1103_v7  ;;  %v714_v23 = vmul.f32 %v1082_v13, %v1082_v13  ;;  %v692_v31 = vadd.f32 %v1082_v13, %v691_v26 }
 0x10a   : > { %v1084_v24 = vpop.f32.mrf.mxu0  ;;  %v1108_v25 = vpop.f32.mrf.mxu1  ;;  %v722_v0 = vmul.f32 %v1106_v14, %v1106_v14 }
 0x10b   : > { %1043 = vst [vmem:[%s1308_s26 + $0x10] sm:$0xff] %v1015_v20   ;;  %v1085_v27 = vadd.f32 %v1084_v24, %v1083_v17  ;;  %1047 = vst [vmem:[%s1308_s26 + $0x30] sm:$0xff] %v1035_v21   ;;  %v1109_v33 = vadd.f32 %v1108_v25, %v1107_v18  ;;  %v729_v34 = vadd.f32 %v728_v28, %v714_v23 }
 0x10c   : > { %v1086_v29 = vpop.f32.mrf.mxu0  ;;  %v1110_v30 = vpop.f32.mrf.mxu1 }
 0x10d   : > { %v715_v32 = vmul.f32 %v1085_v27, %v1085_v27  ;;  %v693_v37 = vadd.f32 %v1085_v27, %v692_v31  ;;  %v723_v3 = vmul.f32 %v1109_v33, %v1109_v33 }
 0x10e   : > { %v1087_v35 = vpop.f32.mrf.mxu0  ;;  %v1111_v36 = vpop.f32.mrf.mxu1 }
 0x10f   : > { %v1088_v39 = vadd.f32 %v1087_v35, %v1086_v29  ;;  %v1112_v40 = vadd.f32 %v1111_v36, %v1110_v30  ;;  %v730_v41 = vadd.f32 %v729_v34, %v715_v32 }
 0x111   : > { %v1020_v42 = vpack.c.bf16 %v1088_v39, %v1085_v27  ;;  %v694_v44 = vadd.f32 %v1088_v39, %v693_v37  ;;  %v716_v45 = vmul.f32 %v1088_v39, %v1088_v39  ;;  %v1040_v46 = vpack.c.bf16 %v1112_v40, %v1109_v33 }
 0x112   : > { %v724_v6 = vmul.f32 %v1112_v40, %v1112_v40 }
 0x113   : > { %1044 = vst [vmem:[%s1308_s26 + $0x18] sm:$0xff] %v1020_v42   ;;  %v695_v48 = vadd.f32 %v1301_v38, %v694_v44  ;;  %v731_v49 = vadd.f32 %v730_v41, %v716_v45  ;;  %1048 = vst [vmem:[%s1308_s26 + $0x38] sm:$0xff] %v1040_v46  }
 0x115   : > { %v696_v51 = vadd.f32 %v1303_v43, %v695_v48  ;;  %v732_v53 = vadd.f32 %v731_v49, %v717_v47 }
 0x117   : > { %v733_v55 = vadd.f32 %v732_v53, %v718_v50  ;;  %v697_v56 = vadd.f32 %v1314_v52, %v696_v51 }
 0x119   : > { %v698_v59 = vadd.f32 %v1316_v57, %v697_v56  ;;  %v734_v38 = vadd.f32 %v733_v55, %v719_v54 }
 0x11b   : > { %v699_v61 = vadd.f32 %v1103_v7, %v698_v59  ;;  %v735_v62 = vadd.f32 %v734_v38, %v720_v58 }
 0x11d   : > { %v700_v63 = vadd.f32 %v1106_v14, %v699_v61  ;;  %v736_v1 = vadd.f32 %v735_v62, %v721_v60 }
 0x11f   : > { %v737_v43 = vadd.f32 %v736_v1, %v722_v0  ;;  %v701_v2 = vadd.f32 %v1109_v33, %v700_v63 }
 0x121   : > { %v738_v4 = vadd.f32 %v737_v43, %v723_v3  ;;  %v702_v5 = vadd.f32 %v1112_v40, %v701_v2 }
 0x123   : > { %v703_v52 = vrot.slane %v702_v5, 4  ;;  %v739_v8 = vadd.f32 %v738_v4, %v724_v6 }
 0x125   : > { %v704_v9 = vadd.f32 %v703_v52, %v702_v5  ;;  %v740_v10 = vrot.slane %v739_v8, 4 }
 0x127   : > { %v705_v11 = vrot.slane %v704_v9, 2  ;;  %v741_v57 = vadd.f32 %v740_v10, %v739_v8 }
 0x129   : > { %v706_v12 = vadd.f32 %v705_v11, %v704_v9  ;;  %v742_v13 = vrot.slane %v741_v57, 2 }
 0x12b   : > { %v707_v7 = vrot.slane %v706_v12, 1  ;;  %v743_v15 = vadd.f32 %v742_v13, %v741_v57 }
 0x12d   : > { %v744_v14 = vrot.slane %v743_v15, 1  ;;  %v708_v16 = vadd.f32 %v707_v7, %v706_v12 }
 0x12f   : > { %v745_v17 = vadd.f32 %v744_v14, %v743_v15 }
 0x131   : > { %v747_v18 = vsel %vm746_vm0, %v708_v16, %v745_v17 }
 0x132   : > { %748 = vst [vmem:[%s285_s30] sm:$0x3] %v747_v18 }
 0x133 PF: > { %s14_s14 = sadd.s32 1, %s1215_s14   ;;  %s1355_s12 = smov %s1211_s13 }
 0x134   : > { %p11_p5 = scmp.ge.s32.totalorder %s14_s14, 6   ;;  %s1356_s13 = smov %s1358_s15 }
 0x136   :  { %13 = sbr.rel (!%p11_p5) target bundleno = 2 (0x2), region = 73 }

// kernel: generator_forward.15
= control target key start
LH: loop header
LB: loop body
LE: loop exit
PB: predicated region body
PF: predicated region fallthrough
CT: control target
= control target key end

     0   :  { %s1502_s0 = inlined_call_operand.vmem [shape: bf16[512,128], index: 0, kind: input, shape index: {}]   ;;  %s1503_s1 = inlined_call_operand.vmem [shape: f32[1,128], index: 1, kind: input, shape index: {}]   ;;  %s1504_s2 = inlined_call_operand.vmem [shape: f32[1,128], index: 2, kind: input, shape index: {}]   ;;  %s1505_s3 = inlined_call_operand.vmem [shape: bf16[512,128], index: 3, kind: output, shape index: {}]  }
   0x1   :  { %v803_v0 = vld [vmem:[%s1502_s0] sm:$0xff]   ;;  %v1090_v4 = vld [vmem:[%s1502_s0 + $0x8] sm:$0xff]   ;;  %v1091_v5 = vld [vmem:[%s1502_s0 + $0x10] sm:$0xff]  }
   0x2   :  { %v1178_v1 = vld [vmem:[%s1503_s1] ss:$0 sm:$0xff]  ;;  %v804_v2 = vunpack.c.l.bf16 %v803_v0  ;;  %v805_v3 = vunpack.c.h.bf16 %v803_v0  ;;  %v1092_v6 = vld [vmem:[%s1502_s0 + $0x18] sm:$0xff]   ;;  %v808_v8 = vunpack.c.l.bf16 %v1090_v4  ;;  %v809_v9 = vunpack.c.h.bf16 %v1090_v4  ;;  %v1094_v33 = vld [vmem:[%s1502_s0 + $0x28] sm:$0xff]  }
   0x3   :  { %v1192_v7 = vld [vmem:[%s1504_s2] ss:$0 sm:$0xff]  ;;  %v812_v10 = vunpack.c.l.bf16 %v1091_v5  ;;  %v813_v11 = vunpack.c.h.bf16 %v1091_v5  ;;  %v816_v14 = vunpack.c.l.bf16 %v1092_v6  ;;  %v817_v15 = vunpack.c.h.bf16 %v1092_v6  ;;  %v1095_v38 = vld [vmem:[%s1502_s0 + $0x30] sm:$0xff]   ;;  %v1096_v43 = vld [vmem:[%s1502_s0 + $0x38] sm:$0xff]  }
   0x4   :  { %v149_v12 = vmul.f32 %v804_v2, %v1178_v1  ;;  %v150_v13 = vmul.f32 %v805_v3, %v1178_v1  ;;  %v151_v16 = vmul.f32 %v808_v8, %v1178_v1  ;;  %v152_v17 = vmul.f32 %v809_v9, %v1178_v1  ;;  %v1093_v28 = vld [vmem:[%s1502_s0 + $0x20] sm:$0xff]  }
   0x5   :  { %v153_v18 = vmul.f32 %v812_v10, %v1178_v1  ;;  %v154_v19 = vmul.f32 %v813_v11, %v1178_v1  ;;  %v155_v22 = vmul.f32 %v816_v14, %v1178_v1  ;;  %v156_v23 = vmul.f32 %v817_v15, %v1178_v1  ;;  %v1097_v0 = vld [vmem:[%s1502_s0 + $0x40] sm:$0xff]   ;;  %v1098_v11 = vld [vmem:[%s1502_s0 + $0x48] sm:$0xff]  }
   0x6   :  { %v220_v20 = vadd.f32 %v1192_v7, %v149_v12  ;;  %v221_v21 = vadd.f32 %v1192_v7, %v150_v13  ;;  %v222_v24 = vadd.f32 %v1192_v7, %v151_v16  ;;  %v223_v25 = vadd.f32 %v1192_v7, %v152_v17  ;;  %v1099_v16 = vld [vmem:[%s1502_s0 + $0x50] sm:$0xff]  }
   0x7   :  { %v224_v26 = vadd.f32 %v1192_v7, %v153_v18  ;;  %v225_v27 = vadd.f32 %v1192_v7, %v154_v19  ;;  %v226_v31 = vadd.f32 %v1192_v7, %v155_v22  ;;  %v227_v32 = vadd.f32 %v1192_v7, %v156_v23 }
   0x8   :  { %v284_v29 = vmax.f32 %v220_v20, 0.0  ;;  %v285_v30 = vmax.f32 %v221_v21, 0.0  ;;  %v286_v34 = vmax.f32 %v222_v24, 0.0  ;;  %v287_v35 = vmax.f32 %v223_v25, 0.0  ;;  %v1100_v25 = vld [vmem:[%s1502_s0 + $0x58] sm:$0xff]  }
   0x9   :  { %v288_v36 = vmax.f32 %v224_v26, 0.0  ;;  %v289_v37 = vmax.f32 %v225_v27, 0.0  ;;  %v290_v40 = vmax.f32 %v226_v31, 0.0  ;;  %v291_v41 = vmax.f32 %v227_v32, 0.0 }
   0xa   :  { %v933_v39 = vpack.c.bf16 %v285_v30, %v284_v29  ;;  %v820_v42 = vunpack.c.l.bf16 %v1093_v28  ;;  %v938_v44 = vpack.c.bf16 %v287_v35, %v286_v34  ;;  %v821_v46 = vunpack.c.h.bf16 %v1093_v28 }
   0xb   :  { %v943_v45 = vpack.c.bf16 %v289_v37, %v288_v36  ;;  %v824_v47 = vunpack.c.l.bf16 %v1094_v33  ;;  %v948_v48 = vpack.c.bf16 %v291_v41, %v290_v40  ;;  %v825_v50 = vunpack.c.h.bf16 %v1094_v33 }
   0xc   :  { %934 = vst [vmem:[%s1505_s3] sm:$0xff] %v933_v39   ;;  %v157_v49 = vmul.f32 %v820_v42, %v1178_v1  ;;  %v828_v51 = vunpack.c.l.bf16 %v1095_v38  ;;  %1121 = vst [vmem:[%s1505_s3 + $0x8] sm:$0xff] %v938_v44   ;;  %v158_v52 = vmul.f32 %v821_v46, %v1178_v1  ;;  %v829_v54 = vunpack.c.h.bf16 %v1095_v38  ;;  %v1101_v38 = vld [vmem:[%s1502_s0 + $0x60] sm:$0xff]  }
   0xd   :  { %1122 = vst [vmem:[%s1505_s3 + $0x10] sm:$0xff] %v943_v45   ;;  %v159_v53 = vmul.f32 %v824_v47, %v1178_v1  ;;  %v832_v55 = vunpack.c.l.bf16 %v1096_v43  ;;  %1123 = vst [vmem:[%s1505_s3 + $0x18] sm:$0xff] %v948_v48   ;;  %v160_v57 = vmul.f32 %v825_v50, %v1178_v1  ;;  %v833_v59 = vunpack.c.h.bf16 %v1096_v43 }
   0xe   :  { %v228_v56 = vadd.f32 %v1192_v7, %v157_v49  ;;  %v161_v58 = vmul.f32 %v828_v51, %v1178_v1  ;;  %v229_v60 = vadd.f32 %v1192_v7, %v158_v52  ;;  %v162_v62 = vmul.f32 %v829_v54, %v1178_v1  ;;  %v1102_v51 = vld [vmem:[%s1502_s0 + $0x68] sm:$0xff]  }
   0xf   :  { %v230_v61 = vadd.f32 %v1192_v7, %v159_v53  ;;  %v163_v63 = vmul.f32 %v832_v55, %v1178_v1  ;;  %v231_v3 = vadd.f32 %v1192_v7, %v160_v57  ;;  %v164_v5 = vmul.f32 %v833_v59, %v1178_v1 }
  0x10   :  { %v292_v2 = vmax.f32 %v228_v56, 0.0  ;;  %v232_v4 = vadd.f32 %v1192_v7, %v161_v58  ;;  %v293_v6 = vmax.f32 %v229_v60, 0.0  ;;  %v233_v9 = vadd.f32 %v1192_v7, %v162_v62  ;;  %v1103_v60 = vld [vmem:[%s1502_s0 + $0x70] sm:$0xff]  }
  0x11   :  { %v294_v8 = vmax.f32 %v230_v61, 0.0  ;;  %v234_v10 = vadd.f32 %v1192_v7, %v163_v63  ;;  %v295_v12 = vmax.f32 %v231_v3, 0.0  ;;  %v235_v14 = vadd.f32 %v1192_v7, %v164_v5 }
  0x12   :  { %v296_v13 = vmax.f32 %v232_v4, 0.0  ;;  %v836_v15 = vunpack.c.l.bf16 %v1097_v0  ;;  %v953_v17 = vpack.c.bf16 %v293_v6, %v292_v2  ;;  %v297_v18 = vmax.f32 %v233_v9, 0.0  ;;  %v1104_v2 = vld [vmem:[%s1502_s0 + $0x78] sm:$0xff]  }
  0x13   :  { %v298_v19 = vmax.f32 %v234_v10, 0.0  ;;  %v837_v20 = vunpack.c.h.bf16 %v1097_v0  ;;  %v958_v21 = vpack.c.bf16 %v295_v12, %v294_v8  ;;  %v299_v22 = vmax.f32 %v235_v14, 0.0  ;;  %v1105_v12 = vld [vmem:[%s1502_s0 + $0x80] sm:$0xff]  }
  0x14   :  { %v165_v23 = vmul.f32 %v836_v15, %v1178_v1  ;;  %v840_v24 = vunpack.c.l.bf16 %v1098_v11  ;;  %1124 = vst [vmem:[%s1505_s3 + $0x20] sm:$0xff] %v953_v17   ;;  %v963_v26 = vpack.c.bf16 %v297_v18, %v296_v13  ;;  %v841_v28 = vunpack.c.h.bf16 %v1098_v11 }
  0x15   :  { %v166_v27 = vmul.f32 %v837_v20, %v1178_v1  ;;  %v844_v29 = vunpack.c.l.bf16 %v1099_v16  ;;  %1125 = vst [vmem:[%s1505_s3 + $0x28] sm:$0xff] %v958_v21   ;;  %v968_v30 = vpack.c.bf16 %v299_v22, %v298_v19  ;;  %v845_v33 = vunpack.c.h.bf16 %v1099_v16 }
  0x16   :  { %v236_v31 = vadd.f32 %v1192_v7, %v165_v23  ;;  %v167_v32 = vmul.f32 %v840_v24, %v1178_v1  ;;  %1126 = vst [vmem:[%s1505_s3 + $0x30] sm:$0xff] %v963_v26   ;;  %v168_v35 = vmul.f32 %v841_v28, %v1178_v1  ;;  %v848_v37 = vunpack.c.l.bf16 %v1100_v25 }
  0x17   :  { %v237_v34 = vadd.f32 %v1192_v7, %v166_v27  ;;  %v169_v36 = vmul.f32 %v844_v29, %v1178_v1  ;;  %1127 = vst [vmem:[%s1505_s3 + $0x38] sm:$0xff] %v968_v30   ;;  %v170_v41 = vmul.f32 %v845_v33, %v1178_v1  ;;  %v849_v42 = vunpack.c.h.bf16 %v1100_v25  ;;  %v1106_v29 = vld [vmem:[%s1502_s0 + $0x88] sm:$0xff]  }
  0x18   :  { %v300_v39 = vmax.f32 %v236_v31, 0.0  ;;  %v238_v40 = vadd.f32 %v1192_v7, %v167_v32  ;;  %v239_v44 = vadd.f32 %v1192_v7, %v168_v35  ;;  %v171_v46 = vmul.f32 %v848_v37, %v1178_v1 }
  0x19   :  { %v301_v43 = vmax.f32 %v237_v34, 0.0  ;;  %v240_v45 = vadd.f32 %v1192_v7, %v169_v36  ;;  %v241_v48 = vadd.f32 %v1192_v7, %v170_v41  ;;  %v172_v49 = vmul.f32 %v849_v42, %v1178_v1  ;;  %v1107_v34 = vld [vmem:[%s1502_s0 + $0x90] sm:$0xff]  }
  0x1a   :  { %v302_v47 = vmax.f32 %v238_v40, 0.0  ;;  %v852_v50 = vunpack.c.l.bf16 %v1101_v38  ;;  %v303_v53 = vmax.f32 %v239_v44, 0.0  ;;  %v242_v55 = vadd.f32 %v1192_v7, %v171_v46 }
  0x1b   :  { %v973_v52 = vpack.c.bf16 %v301_v43, %v300_v39  ;;  %v304_v54 = vmax.f32 %v240_v45, 0.0  ;;  %v305_v56 = vmax.f32 %v241_v48, 0.0  ;;  %v243_v57 = vadd.f32 %v1192_v7, %v172_v49  ;;  %v1108_v43 = vld [vmem:[%s1502_s0 + $0x98] sm:$0xff]  }
  0x1c   :  { %v853_v58 = vunpack.c.h.bf16 %v1101_v38  ;;  %v173_v59 = vmul.f32 %v852_v50, %v1178_v1  ;;  %v978_v61 = vpack.c.bf16 %v303_v53, %v302_v47  ;;  %v306_v62 = vmax.f32 %v242_v55, 0.0 }
  0x1d   :  { %1128 = vst [vmem:[%s1505_s3 + $0x40] sm:$0xff] %v973_v52   ;;  %v856_v63 = vunpack.c.l.bf16 %v1102_v51  ;;  %v857_v0 = vunpack.c.h.bf16 %v1102_v51  ;;  %v983_v3 = vpack.c.bf16 %v305_v56, %v304_v54  ;;  %v307_v4 = vmax.f32 %v243_v57, 0.0  ;;  %v1109_v56 = vld [vmem:[%s1502_s0 + $0xa0] sm:$0xff]  }
  0x1e   :  { %v174_v5 = vmul.f32 %v853_v58, %v1178_v1  ;;  %v244_v6 = vadd.f32 %v1192_v7, %v173_v59  ;;  %1129 = vst [vmem:[%s1505_s3 + $0x48] sm:$0xff] %v978_v61   ;;  %v860_v10 = vunpack.c.l.bf16 %v1103_v60  ;;  %v861_v11 = vunpack.c.h.bf16 %v1103_v60 }
  0x1f   :  { %v175_v8 = vmul.f32 %v856_v63, %v1178_v1  ;;  %v176_v9 = vmul.f32 %v857_v0, %v1178_v1  ;;  %1130 = vst [vmem:[%s1505_s3 + $0x50] sm:$0xff] %v983_v3   ;;  %v988_v13 = vpack.c.bf16 %v307_v4, %v306_v62  ;;  %v864_v16 = vunpack.c.l.bf16 %v1104_v2 }
  0x20   :  { %v245_v14 = vadd.f32 %v1192_v7, %v174_v5  ;;  %v308_v15 = vmax.f32 %v244_v6, 0.0  ;;  %v177_v19 = vmul.f32 %v860_v10, %v1178_v1  ;;  %v178_v20 = vmul.f32 %v861_v11, %v1178_v1 }
  0x21   :  { %v246_v17 = vadd.f32 %v1192_v7, %v175_v8  ;;  %v247_v18 = vadd.f32 %v1192_v7, %v176_v9  ;;  %1131 = vst [vmem:[%s1505_s3 + $0x58] sm:$0xff] %v988_v13   ;;  %v865_v22 = vunpack.c.h.bf16 %v1104_v2  ;;  %v179_v23 = vmul.f32 %v864_v16, %v1178_v1  ;;  %v1110_v2 = vld [vmem:[%s1502_s0 + $0xa8] sm:$0xff]   ;;  %v1111_v16 = vld [vmem:[%s1502_s0 + $0xb0] sm:$0xff]  }
  0x22   :  { %v309_v21 = vmax.f32 %v245_v14, 0.0  ;;  %v868_v24 = vunpack.c.l.bf16 %v1105_v12  ;;  %v248_v27 = vadd.f32 %v1192_v7, %v177_v19  ;;  %v249_v28 = vadd.f32 %v1192_v7, %v178_v20 }
  0x23   :  { %v310_v25 = vmax.f32 %v246_v17, 0.0  ;;  %v311_v26 = vmax.f32 %v247_v18, 0.0  ;;  %v180_v31 = vmul.f32 %v865_v22, %v1178_v1  ;;  %v250_v32 = vadd.f32 %v1192_v7, %v179_v23 }
  0x24   :  { %v993_v30 = vpack.c.bf16 %v309_v21, %v308_v15  ;;  %v869_v33 = vunpack.c.h.bf16 %v1105_v12  ;;  %v312_v36 = vmax.f32 %v248_v27, 0.0  ;;  %v313_v37 = vmax.f32 %v249_v28, 0.0  ;;  %v1112_v21 = vld [vmem:[%s1502_s0 + $0xb8] sm:$0xff]  }
  0x25   :  { %v998_v35 = vpack.c.bf16 %v311_v26, %v310_v25  ;;  %v181_v38 = vmul.f32 %v868_v24, %v1178_v1  ;;  %v251_v39 = vadd.f32 %v1192_v7, %v180_v31  ;;  %v314_v40 = vmax.f32 %v250_v32, 0.0 }
  0x26   :  { %1132 = vst [vmem:[%s1505_s3 + $0x60] sm:$0xff] %v993_v30   ;;  %v182_v41 = vmul.f32 %v869_v33, %v1178_v1  ;;  %v872_v42 = vunpack.c.l.bf16 %v1106_v29  ;;  %v1003_v44 = vpack.c.bf16 %v313_v37, %v312_v36  ;;  %v873_v46 = vunpack.c.h.bf16 %v1106_v29 }
  0x27   :  { %1133 = vst [vmem:[%s1505_s3 + $0x68] sm:$0xff] %v998_v35   ;;  %v252_v45 = vadd.f32 %v1192_v7, %v181_v38  ;;  %v876_v47 = vunpack.c.l.bf16 %v1107_v34  ;;  %v315_v48 = vmax.f32 %v251_v39, 0.0  ;;  %v877_v51 = vunpack.c.h.bf16 %v1107_v34  ;;  %v1113_v34 = vld [vmem:[%s1502_s0 + $0xc0] sm:$0xff]  }
  0x28   :  { %v253_v49 = vadd.f32 %v1192_v7, %v182_v41  ;;  %v183_v50 = vmul.f32 %v872_v42, %v1178_v1  ;;  %1134 = vst [vmem:[%s1505_s3 + $0x70] sm:$0xff] %v1003_v44   ;;  %v184_v53 = vmul.f32 %v873_v46, %v1178_v1  ;;  %v880_v55 = vunpack.c.l.bf16 %v1108_v43 }
  0x29   :  { %v316_v52 = vmax.f32 %v252_v45, 0.0  ;;  %v185_v54 = vmul.f32 %v876_v47, %v1178_v1  ;;  %v1008_v57 = vpack.c.bf16 %v315_v48, %v314_v40  ;;  %v186_v60 = vmul.f32 %v877_v51, %v1178_v1  ;;  %v1114_v47 = vld [vmem:[%s1502_s0 + $0xc8] sm:$0xff]  }
  0x2a   :  { %v317_v58 = vmax.f32 %v253_v49, 0.0  ;;  %v254_v59 = vadd.f32 %v1192_v7, %v183_v50  ;;  %v255_v61 = vadd.f32 %v1192_v7, %v184_v53  ;;  %v881_v63 = vunpack.c.h.bf16 %v1108_v43 }
  0x2b   :  { %v256_v62 = vadd.f32 %v1192_v7, %v185_v54  ;;  %v187_v0 = vmul.f32 %v880_v55, %v1178_v1  ;;  %1135 = vst [vmem:[%s1505_s3 + $0x78] sm:$0xff] %v1008_v57   ;;  %v257_v5 = vadd.f32 %v1192_v7, %v186_v60  ;;  %v884_v6 = vunpack.c.l.bf16 %v1109_v56 }
  0x2c   :  { %v1013_v3 = vpack.c.bf16 %v317_v58, %v316_v52  ;;  %v318_v4 = vmax.f32 %v254_v59, 0.0  ;;  %v319_v8 = vmax.f32 %v255_v61, 0.0  ;;  %v188_v10 = vmul.f32 %v881_v63, %v1178_v1  ;;  %v1115_v52 = vld [vmem:[%s1502_s0 + $0xd0] sm:$0xff]   ;;  %v1116_v61 = vld [vmem:[%s1502_s0 + $0xd8] sm:$0xff]  }
  0x2d   :  { %v320_v9 = vmax.f32 %v256_v62, 0.0  ;;  %v258_v11 = vadd.f32 %v1192_v7, %v187_v0  ;;  %v321_v12 = vmax.f32 %v257_v5, 0.0  ;;  %v885_v13 = vunpack.c.h.bf16 %v1109_v56 }
  0x2e   :  { %1136 = vst [vmem:[%s1505_s3 + $0x80] sm:$0xff] %v1013_v3   ;;  %v189_v14 = vmul.f32 %v884_v6, %v1178_v1  ;;  %v888_v15 = vunpack.c.l.bf16 %v1110_v2  ;;  %v1018_v17 = vpack.c.bf16 %v319_v8, %v318_v4  ;;  %v259_v18 = vadd.f32 %v1192_v7, %v188_v10 }
  0x2f   :  { %v322_v19 = vmax.f32 %v258_v11, 0.0  ;;  %v889_v20 = vunpack.c.h.bf16 %v1110_v2  ;;  %v1023_v22 = vpack.c.bf16 %v321_v12, %v320_v9  ;;  %v190_v23 = vmul.f32 %v885_v13, %v1178_v1  ;;  %v1117_v12 = vld [vmem:[%s1502_s0 + $0xe0] sm:$0xff]  }
  0x30   :  { %v260_v24 = vadd.f32 %v1192_v7, %v189_v14  ;;  %v191_v25 = vmul.f32 %v888_v15, %v1178_v1  ;;  %1137 = vst [vmem:[%s1505_s3 + $0x88] sm:$0xff] %v1018_v17   ;;  %v323_v26 = vmax.f32 %v259_v18, 0.0  ;;  %v892_v28 = vunpack.c.l.bf16 %v1111_v16 }
  0x31   :  { %v192_v27 = vmul.f32 %v889_v20, %v1178_v1  ;;  %v893_v29 = vunpack.c.h.bf16 %v1111_v16  ;;  %1138 = vst [vmem:[%s1505_s3 + $0x90] sm:$0xff] %v1023_v22   ;;  %v261_v30 = vadd.f32 %v1192_v7, %v190_v23  ;;  %v896_v33 = vunpack.c.l.bf16 %v1112_v21 }
  0x32   :  { %v324_v31 = vmax.f32 %v260_v24, 0.0  ;;  %v262_v32 = vadd.f32 %v1192_v7, %v191_v25  ;;  %v1028_v35 = vpack.c.bf16 %v323_v26, %v322_v19  ;;  %v193_v37 = vmul.f32 %v892_v28, %v1178_v1 }
  0x33   :  { %v263_v36 = vadd.f32 %v1192_v7, %v192_v27  ;;  %v194_v38 = vmul.f32 %v893_v29, %v1178_v1  ;;  %v325_v39 = vmax.f32 %v261_v30, 0.0  ;;  %v897_v41 = vunpack.c.h.bf16 %v1112_v21  ;;  %v1118_v21 = vld [vmem:[%s1502_s0 + $0xe8] sm:$0xff]  }
  0x34   :  { %v326_v40 = vmax.f32 %v262_v32, 0.0  ;;  %v195_v42 = vmul.f32 %v896_v33, %v1178_v1  ;;  %1139 = vst [vmem:[%s1505_s3 + $0x98] sm:$0xff] %v1028_v35   ;;  %v264_v44 = vadd.f32 %v1192_v7, %v193_v37  ;;  %v900_v46 = vunpack.c.l.bf16 %v1113_v34 }
  0x35   :  { %v327_v43 = vmax.f32 %v263_v36, 0.0  ;;  %v265_v45 = vadd.f32 %v1192_v7, %v194_v38  ;;  %v1033_v48 = vpack.c.bf16 %v325_v39, %v324_v31  ;;  %v196_v49 = vmul.f32 %v897_v41, %v1178_v1  ;;  %v1120_v39 = vld [vmem:[%s1502_s0 + $0xf8] sm:$0xff]  }
  0x36   :  { %v266_v50 = vadd.f32 %v1192_v7, %v195_v42  ;;  %v901_v51 = vunpack.c.h.bf16 %v1113_v34  ;;  %v328_v54 = vmax.f32 %v264_v44, 0.0  ;;  %v197_v56 = vmul.f32 %v900_v46, %v1178_v1  ;;  %v1119_v34 = vld [vmem:[%s1502_s0 + $0xf0] sm:$0xff]  }
  0x37   :  { %v1038_v53 = vpack.c.bf16 %v327_v43, %v326_v40  ;;  %v329_v55 = vmax.f32 %v265_v45, 0.0  ;;  %1140 = vst [vmem:[%s1505_s3 + $0xa0] sm:$0xff] %v1033_v48   ;;  %v267_v57 = vadd.f32 %v1192_v7, %v196_v49  ;;  %v904_v60 = vunpack.c.l.bf16 %v1114_v47 }
  0x38   :  { %v330_v58 = vmax.f32 %v266_v50, 0.0  ;;  %v198_v59 = vmul.f32 %v901_v51, %v1178_v1  ;;  %v268_v63 = vadd.f32 %v1192_v7, %v197_v56  ;;  %v905_v0 = vunpack.c.h.bf16 %v1114_v47 }
  0x39   :  { %1141 = vst [vmem:[%s1505_s3 + $0xa8] sm:$0xff] %v1038_v53   ;;  %v1043_v62 = vpack.c.bf16 %v329_v55, %v328_v54  ;;  %v908_v2 = vunpack.c.l.bf16 %v1115_v52  ;;  %v331_v3 = vmax.f32 %v267_v57, 0.0  ;;  %v199_v5 = vmul.f32 %v904_v60, %v1178_v1 }
  0x3a   :  { %v269_v4 = vadd.f32 %v1192_v7, %v198_v59  ;;  %v909_v6 = vunpack.c.h.bf16 %v1115_v52  ;;  %v332_v8 = vmax.f32 %v268_v63, 0.0  ;;  %v200_v9 = vmul.f32 %v905_v0, %v1178_v1 }
  0x3b   :  { %1142 = vst [vmem:[%s1505_s3 + $0xb0] sm:$0xff] %v1043_v62   ;;  %v201_v10 = vmul.f32 %v908_v2, %v1178_v1  ;;  %v912_v11 = vunpack.c.l.bf16 %v1116_v61  ;;  %v1048_v13 = vpack.c.bf16 %v331_v3, %v330_v58  ;;  %v270_v15 = vadd.f32 %v1192_v7, %v199_v5 }
  0x3c   :  { %v333_v14 = vmax.f32 %v269_v4, 0.0  ;;  %v202_v16 = vmul.f32 %v909_v6, %v1178_v1  ;;  %v271_v17 = vadd.f32 %v1192_v7, %v200_v9  ;;  %v913_v19 = vunpack.c.h.bf16 %v1116_v61 }
  0x3d   :  { %v272_v18 = vadd.f32 %v1192_v7, %v201_v10  ;;  %v203_v20 = vmul.f32 %v912_v11, %v1178_v1  ;;  %1143 = vst [vmem:[%s1505_s3 + $0xb8] sm:$0xff] %v1048_v13   ;;  %v334_v23 = vmax.f32 %v270_v15, 0.0  ;;  %v916_v25 = vunpack.c.l.bf16 %v1117_v12 }
  0x3e   :  { %v1053_v22 = vpack.c.bf16 %v333_v14, %v332_v8  ;;  %v273_v24 = vadd.f32 %v1192_v7, %v202_v16  ;;  %v335_v26 = vmax.f32 %v271_v17, 0.0  ;;  %v204_v28 = vmul.f32 %v913_v19, %v1178_v1 }
  0x3f   :  { %v336_v27 = vmax.f32 %v272_v18, 0.0  ;;  %v274_v29 = vadd.f32 %v1192_v7, %v203_v20  ;;  %v917_v31 = vunpack.c.h.bf16 %v1117_v12  ;;  %v205_v32 = vmul.f32 %v916_v25, %v1178_v1 }
  0x40   :  { %1144 = vst [vmem:[%s1505_s3 + $0xc0] sm:$0xff] %v1053_v22   ;;  %v337_v30 = vmax.f32 %v273_v24, 0.0  ;;  %v920_v33 = vunpack.c.l.bf16 %v1118_v21  ;;  %v1058_v35 = vpack.c.bf16 %v335_v26, %v334_v23  ;;  %v275_v36 = vadd.f32 %v1192_v7, %v204_v28 }
  0x41   :  { %v338_v37 = vmax.f32 %v274_v29, 0.0  ;;  %v921_v38 = vunpack.c.h.bf16 %v1118_v21  ;;  %v206_v41 = vmul.f32 %v917_v31, %v1178_v1  ;;  %v276_v42 = vadd.f32 %v1192_v7, %v205_v32 }
  0x42   :  { %v1063_v40 = vpack.c.bf16 %v337_v30, %v336_v27  ;;  %v207_v43 = vmul.f32 %v920_v33, %v1178_v1  ;;  %1145 = vst [vmem:[%s1505_s3 + $0xc8] sm:$0xff] %v1058_v35   ;;  %v339_v44 = vmax.f32 %v275_v36, 0.0  ;;  %v924_v46 = vunpack.c.l.bf16 %v1119_v34 }
  0x43   :  { %v208_v45 = vmul.f32 %v921_v38, %v1178_v1  ;;  %v925_v47 = vunpack.c.h.bf16 %v1119_v34  ;;  %v277_v48 = vadd.f32 %v1192_v7, %v206_v41  ;;  %v340_v49 = vmax.f32 %v276_v42, 0.0 }
  0x44   :  { %1146 = vst [vmem:[%s1505_s3 + $0xd0] sm:$0xff] %v1063_v40   ;;  %v278_v50 = vadd.f32 %v1192_v7, %v207_v43  ;;  %v928_v51 = vunpack.c.l.bf16 %v1120_v39  ;;  %v1068_v52 = vpack.c.bf16 %v339_v44, %v338_v37  ;;  %v209_v54 = vmul.f32 %v924_v46, %v1178_v1 }
  0x45   :  { %v279_v53 = vadd.f32 %v1192_v7, %v208_v45  ;;  %v210_v55 = vmul.f32 %v925_v47, %v1178_v1  ;;  %v341_v56 = vmax.f32 %v277_v48, 0.0  ;;  %v929_v58 = vunpack.c.h.bf16 %v1120_v39 }
  0x46   :  { %v342_v57 = vmax.f32 %v278_v50, 0.0  ;;  %v211_v59 = vmul.f32 %v928_v51, %v1178_v1  ;;  %1147 = vst [vmem:[%s1505_s3 + $0xd8] sm:$0xff] %v1068_v52   ;;  %v280_v61 = vadd.f32 %v1192_v7, %v209_v54 }
  0x47   :  { %v343_v60 = vmax.f32 %v279_v53, 0.0  ;;  %v281_v62 = vadd.f32 %v1192_v7, %v210_v55  ;;  %v1073_v63 = vpack.c.bf16 %v341_v56, %v340_v49  ;;  %v212_v0 = vmul.f32 %v929_v58, %v1178_v1 }
  0x48   :  { %v282_v2 = vadd.f32 %v1192_v7, %v211_v59  ;;  %v344_v4 = vmax.f32 %v280_v61, 0.0 }
  0x49   :  { %v1078_v3 = vpack.c.bf16 %v343_v60, %v342_v57  ;;  %v345_v5 = vmax.f32 %v281_v62, 0.0  ;;  %1148 = vst [vmem:[%s1505_s3 + $0xe0] sm:$0xff] %v1073_v63   ;;  %v283_v6 = vadd.f32 %v1192_v7, %v212_v0 }
  0x4a   :  { %v346_v8 = vmax.f32 %v282_v2, 0.0 }
  0x4b   :  { %1149 = vst [vmem:[%s1505_s3 + $0xe8] sm:$0xff] %v1078_v3   ;;  %v1083_v9 = vpack.c.bf16 %v345_v5, %v344_v4  ;;  %v347_v10 = vmax.f32 %v283_v6, 0.0 }
  0x4d   :  { %1150 = vst [vmem:[%s1505_s3 + $0xf0] sm:$0xff] %v1083_v9   ;;  %v1088_v1 = vpack.c.bf16 %v347_v10, %v346_v8 }
  0x4f   :  { %1151 = vst [vmem:[%s1505_s3 + $0xf8] sm:$0xff] %v1088_v1  }

// kernel: generator_forward.16
= control target key start
LH: loop header
LB: loop body
LE: loop exit
PB: predicated region body
PF: predicated region fallthrough
CT: control target
= control target key end

     0   :  { %s1499_s12 = smov 0   ;;  %s1501_s13 = smov 0   ;;  %s1708_s0 = inlined_call_operand.vmem [shape: bf16[4,512,128], index: 0, kind: input, shape index: {}]   ;;  %s1709_s1 = inlined_call_operand.vmem [shape: bf16[4,128,128], index: 1, kind: input, shape index: {}]   ;;  %s1710_s2 = inlined_call_operand.vmem [shape: bf16[4,512,128], index: 2, kind: output, shape index: {0}]   ;;  %s1711_s3 = inlined_call_operand.vmem [shape: f32[4,2,2,128], index: 3, kind: output, shape index: {1}]  }
   0x1   :  { %s1503_s14 = smov 0   ;;  %s1505_s15 = smov 0  }
   0x2   :  { %s1507_s16 = smov 0  }
   0x3 LB: > { %s29_s17 = sadd.s32 1, %s1469_s14  ;;  %s33_s18 = sadd.s32 1, %s1473_s15  ;;  %s1477_s16 = sphi %s1507_s16, %s14_s16   ;;  %s1473_s15 = sphi %s1505_s15, %s1715_s15   ;;  %s1469_s14 = sphi %s1503_s14, %s1714_s14   ;;  %s1465_s13 = sphi %s1501_s13, %s1713_s13   ;;  %s1461_s12 = sphi %s1499_s12, %s1712_s12  }
   0x4   : > { %p31_p0 = scmp.ge.s32.totalorder %s29_s17, 2  ;;  %p1090_p1 = scmp.ge.s32.totalorder %s1477_s16, 1 }
   0x5   : > { %p189_p2 = scmp.lt.s32.totalorder %s1477_s16, 9 }
   0x6   : > { %s1717_s17 = smov (%p31_p0, %s29_s17), 0  ;;  %s1719_s18 = smov (!%p31_p0, %s33_s18), %s1473_s15 }
   0x7   : > { %p190_p3 = pnand %p1090_p1, %p189_p2  ;;  %p35_p4 = scmp.ge.s32.totalorder %s1719_s18, 4 }
   0x8   : > { %s1091_s19 = sshll.u32 (!%p190_p3), %s1461_s12, 5  ;;  %p244_p5 = scmp.lt.s32.totalorder (!%p190_p3), %s1465_s13, 3 }
   0x9   : > { %s1721_s18 = smov (%p35_p4, %s1719_s18), 0  ;;  %193 = sbr.rel (%p190_p3) target bundleno = 327 (0x147), region = 28 }
   0xa   : > { %p246_p6 = scmp.lt.s32.totalorder (!%p190_p3), %s1091_s19, 63  ;;  %p276_p7 = scmp.lt.s32.totalorder (!%p190_p3), %s1461_s12, 1 }
   0xe   : > { %s1723_s13 = smov (!%p244_p5, %s1465_s13), 3  ;;  %s1725_s19 = smov (!%p246_p6, %s1091_s19), 63  ;;  %vm905_vm0 = vcmask 1040384  }
   0xf   : > { %s1092_s20 = sshll.u32 %s1723_s13, 6  ;;  %s1727_s12 = smov (!%p276_p7, %s1461_s12), 1 }
  0x10   : > { %s1535_s21 = sadd.s32 %s1092_s20, %s1725_s19  ;;  %s1540_s24 = scalar_lea.vmem %s1709_s1, %s1092_s20 }
  0x11   : > { %v1415_v0 = vld [vmem:[%s1540_s24 + $0x38] sm:$0xff]   ;;  %v1416_v1 = vld [vmem:[%s1540_s24 + $0x30] sm:$0xff]   ;;  %s1093_s25 = sshll.u32 %s1535_s21, 2  ;;  %v1417_v2 = vld [vmem:[%s1540_s24 + $0x28] sm:$0xff]   ;;  %s1099_s5 = sshll.u32 %s1723_s13, 1 }
  0x12   : > { %1311 = vmatprep.subr.bf16.mxu0 %v1415_v0  ;;  %1359 = vmatprep.subr.bf16.mxu1 %v1415_v0  ;;  %s1551_s28 = scalar_lea.vmem %s1708_s0, %s1093_s25  ;;  %v1418_v3 = vld [vmem:[%s1540_s24 + $0x20] sm:$0xff]   ;;  %v1419_v5 = vld [vmem:[%s1540_s24 + $0x18] sm:$0xff]   ;;  %v1420_v6 = vld [vmem:[%s1540_s24 + $0x10] sm:$0xff]   ;;  %s1583_s4 = scalar_lea.vmem %s1710_s2, %s1093_s25 }
  0x13   : > { %1312 = vmatpush3.bf16.msra.mxu0 %v1415_v0  ;;  %1367 = vmatpush3.bf16.msra.mxu1 %v1415_v0  ;;  %v1423_v4 = vld [vmem:[%s1551_s28] sm:$0xff]   ;;  %v1421_v8 = vld [vmem:[%s1540_s24 + $0x8] sm:$0xff]   ;;  %v1425_v12 = vld [vmem:[%s1551_s28 + $0x10] sm:$0xff]   ;;  %s282_s6 = sadd.s32 %s1099_s5, %s1727_s12 }
  0x14   : > { %1313 = vmatprep.subr.bf16.mxu0 %v1416_v1  ;;  %1360 = vmatprep.subr.bf16.mxu1 %v1416_v1  ;;  %v1431_v7 = vld [vmem:[%s1551_s28 + $0x40] sm:$0xff]   ;;  %v1424_v10 = vld [vmem:[%s1551_s28 + $0x8] sm:$0xff]   ;;  %v1433_v13 = vld [vmem:[%s1551_s28 + $0x50] sm:$0xff]   ;;  %s1100_s7 = sshll.u32 %s282_s6, 1 }
  0x15   : > { %1327 = vmatprep.mubr.bf16.mxu0 %v1423_v4  ;;  %1343 = vmatprep.mubr.bf16.mxu1 %v1431_v7  ;;  %v1422_v9 = vld [vmem:[%s1540_s24] sm:$0xff]   ;;  %v1432_v11 = vld [vmem:[%s1551_s28 + $0x48] sm:$0xff]   ;;  %v1426_v14 = vld [vmem:[%s1551_s28 + $0x18] sm:$0xff]   ;;  %s284_s10 = scalar_lea.vmem %s1711_s3, %s1100_s7 }
  0x16   : > { %v1434_v15 = vld [vmem:[%s1551_s28 + $0x58] sm:$0xff]   ;;  %v1427_v16 = vld [vmem:[%s1551_s28 + $0x20] sm:$0xff]   ;;  %v1428_v18 = vld [vmem:[%s1551_s28 + $0x28] sm:$0xff]  }
  0x17   : > { %1314 = vmatpush3.bf16.msra.mxu0 %v1416_v1  ;;  %1368 = vmatpush3.bf16.msra.mxu1 %v1416_v1  ;;  %v1435_v17 = vld [vmem:[%s1551_s28 + $0x60] sm:$0xff]   ;;  %v1436_v19 = vld [vmem:[%s1551_s28 + $0x68] sm:$0xff]   ;;  %v1429_v20 = vld [vmem:[%s1551_s28 + $0x30] sm:$0xff]  }
  0x18   : > { %1315 = vmatprep.subr.bf16.mxu0 %v1417_v2  ;;  %1361 = vmatprep.subr.bf16.mxu1 %v1417_v2  ;;  %v1437_v21 = vld [vmem:[%s1551_s28 + $0x70] sm:$0xff]   ;;  %v1430_v22 = vld [vmem:[%s1551_s28 + $0x38] sm:$0xff]  }
  0x19   : > { %v1438_v23 = vld [vmem:[%s1551_s28 + $0x78] sm:$0xff]  }
  0x1b   : > { %1316 = vmatpush3.bf16.msra.mxu0 %v1417_v2  ;;  %1369 = vmatpush3.bf16.msra.mxu1 %v1417_v2 }
  0x1c   : > { %1317 = vmatprep.subr.bf16.mxu0 %v1418_v3  ;;  %1362 = vmatprep.subr.bf16.mxu1 %v1418_v3 }
  0x1f   : > { %1318 = vmatpush3.bf16.msra.mxu0 %v1418_v3  ;;  %1370 = vmatpush3.bf16.msra.mxu1 %v1418_v3 }
  0x20   : > { %1319 = vmatprep.subr.bf16.mxu0 %v1419_v5  ;;  %1363 = vmatprep.subr.bf16.mxu1 %v1419_v5 }
  0x23   : > { %1320 = vmatpush3.bf16.msra.mxu0 %v1419_v5  ;;  %1371 = vmatpush3.bf16.msra.mxu1 %v1419_v5 }
  0x24   : > { %1321 = vmatprep.subr.bf16.mxu0 %v1420_v6  ;;  %1364 = vmatprep.subr.bf16.mxu1 %v1420_v6 }
  0x27   : > { %1322 = vmatpush3.bf16.msra.mxu0 %v1420_v6  ;;  %1372 = vmatpush3.bf16.msra.mxu1 %v1420_v6 }
  0x28   : > { %1323 = vmatprep.subr.bf16.mxu0 %v1421_v8  ;;  %1365 = vmatprep.subr.bf16.mxu1 %v1421_v8 }
  0x2b   : > { %1324 = vmatpush3.bf16.msra.mxu0 %v1421_v8  ;;  %1373 = vmatpush3.bf16.msra.mxu1 %v1421_v8 }
  0x2c   : > { %1325 = vmatprep.subr.bf16.mxu0 %v1422_v9  ;;  %1366 = vmatprep.subr.bf16.mxu1 %v1422_v9 }
  0x2f   : > { %1326 = vmatpush3.bf16.msra.mxu0 %v1422_v9  ;;  %1374 = vmatpush3.bf16.msra.mxu1 %v1422_v9 }
  0x32   : > { %1328 = vmatmul.mubr.bf16.vlgmr.msra.gmra.mxu0 %v1424_v10  ;;  %1344 = vmatmul.mubr.bf16.vlgmr.msra.gmra.mxu1 %v1432_v11 }
  0x33   : > { %1331 = vmatprep.mubr.bf16.mxu0 %v1425_v12  ;;  %1347 = vmatprep.mubr.bf16.mxu1 %v1433_v13 }
  0x3a   : > { %1332 = vmatmul.mubr.bf16.gmra.mxu0 %v1426_v14  ;;  %1348 = vmatmul.mubr.bf16.gmra.mxu1 %v1434_v15 }
  0x3b   : > { %1335 = vmatprep.mubr.bf16.mxu0 %v1427_v16  ;;  %1351 = vmatprep.mubr.bf16.mxu1 %v1435_v17 }
  0x42   : > { %1336 = vmatmul.mubr.bf16.gmra.mxu0 %v1428_v18  ;;  %1352 = vmatmul.mubr.bf16.gmra.mxu1 %v1436_v19 }
  0x43   : > { %1339 = vmatprep.mubr.bf16.mxu0 %v1429_v20  ;;  %1355 = vmatprep.mubr.bf16.mxu1 %v1437_v21 }
  0x4a   : > { %1340 = vmatmul.mubr.bf16.gmra.mxu0 %v1430_v22  ;;  %1356 = vmatmul.mubr.bf16.gmra.mxu1 %v1438_v23 }
  0xf2   : > { %v1329_v24 = vpop.f32.mrf.mxu0  ;;  %v1574_v25 = vpop.f32.mrf.mxu1 }
  0xf3   : > { %v838_v41 = vmul.f32 %v1329_v24, %v1329_v24 }
  0xf4   : > { %v512_v26 = vpop.f32.mrf.mxu0  ;;  %v1576_v27 = vpop.f32.mrf.mxu1 }
  0xf5   : > { %v836_v32 = vmul.f32 %v512_v26, %v512_v26 }
  0xf6   : > { %v1330_v28 = vpop.f32.mrf.mxu0  ;;  %v1585_v29 = vpop.f32.mrf.mxu1 }
  0xf7   : > { %v1200_v30 = vpack.c.bf16 %v1330_v28, %v1329_v24  ;;  %v1240_v31 = vpack.c.bf16 %v1585_v29, %v1574_v25  ;;  %v839_v46 = vmul.f32 %v1330_v28, %v1330_v28 }
  0xf8   : > { %v515_v33 = vpop.f32.mrf.mxu0  ;;  %v1589_v34 = vpop.f32.mrf.mxu1 }
  0xf9   : > { %1272 = vst [vmem:[%s1583_s4 + $0x8] sm:$0xff] %v1200_v30   ;;  %v1195_v35 = vpack.c.bf16 %v515_v33, %v512_v26  ;;  %v799_v36 = vadd.f32 %v515_v33, %v512_v26  ;;  %v837_v37 = vmul.f32 %v515_v33, %v515_v33  ;;  %1280 = vst [vmem:[%s1583_s4 + $0x48] sm:$0xff] %v1240_v31  }
  0xfa   : > { %v1235_v38 = vpack.c.bf16 %v1589_v34, %v1576_v27  ;;  %v1333_v39 = vpop.f32.mrf.mxu0  ;;  %v1595_v40 = vpop.f32.mrf.mxu1 }
  0xfb   : > { %1196 = vst [vmem:[%s1583_s4] sm:$0xff] %v1195_v35   ;;  %v800_v42 = vadd.f32 %v1329_v24, %v799_v36  ;;  %v868_v43 = vadd.f32 %v837_v37, %v836_v32  ;;  %v842_v1 = vmul.f32 %v1333_v39, %v1333_v39 }
  0xfc   : > { %1279 = vst [vmem:[%s1583_s4 + $0x40] sm:$0xff] %v1235_v38   ;;  %v528_v44 = vpop.f32.mrf.mxu0  ;;  %v1599_v45 = vpop.f32.mrf.mxu1 }
  0xfd   : > { %v869_v47 = vadd.f32 %v868_v43, %v838_v41  ;;  %v801_v48 = vadd.f32 %v1330_v28, %v800_v42  ;;  %v840_v52 = vmul.f32 %v528_v44, %v528_v44 }
  0xfe   : > { %v1334_v49 = vpop.f32.mrf.mxu0  ;;  %v1601_v50 = vpop.f32.mrf.mxu1 }
  0xff   : > { %v802_v51 = vadd.f32 %v801_v48, %v528_v44  ;;  %v870_v53 = vadd.f32 %v869_v47, %v839_v46  ;;  %v1210_v54 = vpack.c.bf16 %v1334_v49, %v1333_v39  ;;  %v1250_v56 = vpack.c.bf16 %v1601_v50, %v1595_v40 }
 0x100   : > { %v531_v55 = vpop.f32.mrf.mxu0  ;;  %v1605_v57 = vpop.f32.mrf.mxu1  ;;  %v843_v6 = vmul.f32 %v1334_v49, %v1334_v49 }
 0x101   : > { %v871_v58 = vadd.f32 %v870_v53, %v840_v52  ;;  %1274 = vst [vmem:[%s1583_s4 + $0x18] sm:$0xff] %v1210_v54   ;;  %v1205_v59 = vpack.c.bf16 %v531_v55, %v528_v44  ;;  %v803_v60 = vadd.f32 %v802_v51, %v531_v55  ;;  %v841_v61 = vmul.f32 %v531_v55, %v531_v55 }
 0x102   : > { %v1337_v62 = vpop.f32.mrf.mxu0  ;;  %1282 = vst [vmem:[%s1583_s4 + $0x58] sm:$0xff] %v1250_v56   ;;  %v1245_v63 = vpack.c.bf16 %v1605_v57, %v1599_v45  ;;  %v1611_v0 = vpop.f32.mrf.mxu1 }
 0x103   : > { %1273 = vst [vmem:[%s1583_s4 + $0x10] sm:$0xff] %v1205_v59   ;;  %v804_v2 = vadd.f32 %v1333_v39, %v803_v60  ;;  %v872_v3 = vadd.f32 %v871_v58, %v841_v61  ;;  %v846_v26 = vmul.f32 %v1337_v62, %v1337_v62  ;;  %v852_v61 = vmul.f32 %v1576_v27, %v1576_v27 }
 0x104   : > { %v544_v4 = vpop.f32.mrf.mxu0  ;;  %1281 = vst [vmem:[%s1583_s4 + $0x50] sm:$0xff] %v1245_v63   ;;  %v1615_v5 = vpop.f32.mrf.mxu1 }
 0x105   : > { %v873_v7 = vadd.f32 %v872_v3, %v842_v1  ;;  %v805_v8 = vadd.f32 %v1334_v49, %v804_v2  ;;  %v844_v12 = vmul.f32 %v544_v4, %v544_v4  ;;  %v853_v2 = vmul.f32 %v1589_v34, %v1589_v34 }
 0x106   : > { %v1338_v9 = vpop.f32.mrf.mxu0  ;;  %v1617_v10 = vpop.f32.mrf.mxu1 }
 0x107   : > { %v806_v11 = vadd.f32 %v805_v8, %v544_v4  ;;  %v874_v13 = vadd.f32 %v873_v7, %v843_v6  ;;  %v1220_v14 = vpack.c.bf16 %v1338_v9, %v1337_v62  ;;  %v1260_v16 = vpack.c.bf16 %v1617_v10, %v1611_v0 }
 0x108   : > { %v547_v15 = vpop.f32.mrf.mxu0  ;;  %v1621_v17 = vpop.f32.mrf.mxu1  ;;  %v847_v33 = vmul.f32 %v1338_v9, %v1338_v9  ;;  %v855_v8 = vmul.f32 %v1585_v29, %v1585_v29 }
 0x109   : > { %v875_v18 = vadd.f32 %v874_v13, %v844_v12  ;;  %1276 = vst [vmem:[%s1583_s4 + $0x28] sm:$0xff] %v1220_v14   ;;  %v1215_v19 = vpack.c.bf16 %v547_v15, %v544_v4  ;;  %v807_v20 = vadd.f32 %v806_v11, %v547_v15  ;;  %v845_v21 = vmul.f32 %v547_v15, %v547_v15 }
 0x10a   : > { %v1341_v22 = vpop.f32.mrf.mxu0  ;;  %1284 = vst [vmem:[%s1583_s4 + $0x68] sm:$0xff] %v1260_v16   ;;  %v1255_v23 = vpack.c.bf16 %v1621_v17, %v1615_v5  ;;  %v1627_v24 = vpop.f32.mrf.mxu1  ;;  %v854_v4 = vmul.f32 %v1574_v25, %v1574_v25  ;;  %v856_v12 = vmul.f32 %v1599_v45, %v1599_v45  ;;  %v857_v15 = vmul.f32 %v1605_v57, %v1605_v57 }
 0x10b   : > { %1275 = vst [vmem:[%s1583_s4 + $0x20] sm:$0xff] %v1215_v19   ;;  %v808_v28 = vadd.f32 %v1337_v62, %v807_v20  ;;  %v876_v30 = vadd.f32 %v875_v18, %v845_v21  ;;  %v850_v54 = vmul.f32 %v1341_v22, %v1341_v22  ;;  %v860_v21 = vmul.f32 %v1615_v5, %v1615_v5 }
 0x10c   : > { %v560_v31 = vpop.f32.mrf.mxu0  ;;  %1283 = vst [vmem:[%s1583_s4 + $0x60] sm:$0xff] %v1255_v23   ;;  %v1631_v32 = vpop.f32.mrf.mxu1 }
 0x10d   : > { %v877_v35 = vadd.f32 %v876_v30, %v846_v26  ;;  %v809_v36 = vadd.f32 %v1338_v9, %v808_v28  ;;  %v848_v41 = vmul.f32 %v560_v31, %v560_v31  ;;  %v861_v26 = vmul.f32 %v1621_v17, %v1621_v17 }
 0x10e   : > { %v1342_v37 = vpop.f32.mrf.mxu0  ;;  %v1633_v38 = vpop.f32.mrf.mxu1 }
 0x10f   : > { %v810_v39 = vadd.f32 %v809_v36, %v560_v31  ;;  %v878_v42 = vadd.f32 %v877_v35, %v847_v33  ;;  %v1230_v43 = vpack.c.bf16 %v1342_v37, %v1341_v22  ;;  %v1270_v46 = vpack.c.bf16 %v1633_v38, %v1627_v24 }
 0x110   : > { %v563_v44 = vpop.f32.mrf.mxu0  ;;  %v627_v47 = vpop.f32.mrf.mxu1  ;;  %v851_v58 = vmul.f32 %v1342_v37, %v1342_v37  ;;  %v864_v35 = vmul.f32 %v1631_v32, %v1631_v32 }
 0x111   : > { %v879_v48 = vadd.f32 %v878_v42, %v848_v41  ;;  %1278 = vst [vmem:[%s1583_s4 + $0x38] sm:$0xff] %v1230_v43   ;;  %v1225_v49 = vpack.c.bf16 %v563_v44, %v560_v31  ;;  %v811_v51 = vadd.f32 %v810_v39, %v563_v44  ;;  %v849_v52 = vmul.f32 %v563_v44, %v563_v44 }
 0x112   : > { %1286 = vst [vmem:[%s1583_s4 + $0x78] sm:$0xff] %v1270_v46   ;;  %v1265_v53 = vpack.c.bf16 %v627_v47, %v1631_v32  ;;  %v865_v39 = vmul.f32 %v627_v47, %v627_v47 }
 0x113   : > { %1277 = vst [vmem:[%s1583_s4 + $0x30] sm:$0xff] %v1225_v49   ;;  %v812_v55 = vadd.f32 %v1341_v22, %v811_v51  ;;  %v880_v56 = vadd.f32 %v879_v48, %v849_v52 }
 0x114   : > { %1285 = vst [vmem:[%s1583_s4 + $0x70] sm:$0xff] %v1265_v53  }
 0x115   : > { %v813_v59 = vadd.f32 %v1342_v37, %v812_v55  ;;  %v881_v60 = vadd.f32 %v880_v56, %v850_v54 }
 0x117   : > { %v882_v62 = vadd.f32 %v881_v60, %v851_v58  ;;  %v814_v63 = vadd.f32 %v813_v59, %v1576_v27 }
 0x119   : > { %v815_v1 = vadd.f32 %v814_v63, %v1589_v34  ;;  %v883_v3 = vadd.f32 %v882_v62, %v852_v61 }
 0x11b   : > { %v816_v6 = vadd.f32 %v1574_v25, %v815_v1  ;;  %v884_v7 = vadd.f32 %v883_v3, %v853_v2  ;;  %v858_v25 = vmul.f32 %v1595_v40, %v1595_v40 }
 0x11d   : > { %v885_v9 = vadd.f32 %v884_v7, %v854_v4  ;;  %v817_v11 = vadd.f32 %v1585_v29, %v816_v6  ;;  %v859_v29 = vmul.f32 %v1601_v50, %v1601_v50 }
 0x11f   : > { %v818_v27 = vadd.f32 %v817_v11, %v1599_v45  ;;  %v886_v13 = vadd.f32 %v885_v9, %v855_v8 }
 0x121   : > { %v887_v34 = vadd.f32 %v886_v13, %v856_v12  ;;  %v819_v14 = vadd.f32 %v818_v27, %v1605_v57 }
 0x123   : > { %v820_v16 = vadd.f32 %v1595_v40, %v819_v14  ;;  %v888_v18 = vadd.f32 %v887_v34, %v857_v15  ;;  %v862_v40 = vmul.f32 %v1611_v0, %v1611_v0 }
 0x125   : > { %v889_v19 = vadd.f32 %v888_v18, %v858_v25  ;;  %v821_v20 = vadd.f32 %v1601_v50, %v820_v16  ;;  %v863_v50 = vmul.f32 %v1617_v10, %v1617_v10 }
 0x127   : > { %v822_v45 = vadd.f32 %v821_v20, %v1615_v5  ;;  %v890_v22 = vadd.f32 %v889_v19, %v859_v29 }
 0x129   : > { %v891_v23 = vadd.f32 %v890_v22, %v860_v21  ;;  %v823_v57 = vadd.f32 %v822_v45, %v1621_v17 }
 0x12b   : > { %v824_v28 = vadd.f32 %v1611_v0, %v823_v57  ;;  %v892_v30 = vadd.f32 %v891_v23, %v861_v26  ;;  %v866_v0 = vmul.f32 %v1627_v24, %v1627_v24 }
 0x12d   : > { %v893_v31 = vadd.f32 %v892_v30, %v862_v40  ;;  %v825_v5 = vadd.f32 %v1617_v10, %v824_v28  ;;  %v867_v10 = vmul.f32 %v1633_v38, %v1633_v38 }
 0x12f   : > { %v826_v33 = vadd.f32 %v825_v5, %v1631_v32  ;;  %v894_v17 = vadd.f32 %v893_v31, %v863_v50 }
 0x131   : > { %v895_v36 = vadd.f32 %v894_v17, %v864_v35  ;;  %v827_v37 = vadd.f32 %v826_v33, %v627_v47 }
 0x133   : > { %v828_v41 = vadd.f32 %v1627_v24, %v827_v37  ;;  %v896_v42 = vadd.f32 %v895_v36, %v865_v39 }
 0x135   : > { %v829_v43 = vadd.f32 %v1633_v38, %v828_v41  ;;  %v897_v44 = vadd.f32 %v896_v42, %v866_v0 }
 0x137   : > { %v830_v46 = vrot.slane %v829_v43, 4  ;;  %v898_v32 = vadd.f32 %v897_v44, %v867_v10 }
 0x139   : > { %v831_v48 = vadd.f32 %v830_v46, %v829_v43  ;;  %v899_v49 = vrot.slane %v898_v32, 4 }
 0x13b   : > { %v832_v47 = vrot.slane %v831_v48, 2  ;;  %v900_v51 = vadd.f32 %v899_v49, %v898_v32 }
 0x13d   : > { %v833_v52 = vadd.f32 %v832_v47, %v831_v48  ;;  %v901_v53 = vrot.slane %v900_v51, 2 }
 0x13f   : > { %v834_v24 = vrot.slane %v833_v52, 1  ;;  %v902_v54 = vadd.f32 %v901_v53, %v900_v51 }
 0x141   : > { %v903_v55 = vrot.slane %v902_v54, 1  ;;  %v835_v38 = vadd.f32 %v834_v24, %v833_v52 }
 0x143   : > { %v904_v56 = vadd.f32 %v903_v55, %v902_v54 }
 0x145   : > { %v906_v58 = vsel %vm905_vm0, %v835_v38, %v904_v56 }
 0x146   : > { %907 = vst [vmem:[%s284_s10] sm:$0x3] %v906_v58 }
 0x147 PF: > { %s14_s16 = sadd.s32 1, %s1477_s16   ;;  %s1712_s12 = smov %s1469_s14 }
 0x148   : > { %p11_p8 = scmp.ge.s32.totalorder %s14_s16, 10   ;;  %s1713_s13 = smov %s1473_s15 }
 0x149   : > { %s1714_s14 = smov %s1717_s17  ;;  %s1715_s15 = smov %s1721_s18 }
 0x14a   :  { %13 = sbr.rel (!%p11_p8) target bundleno = 3 (0x3), region = 73 }

// kernel: generator_forward.17
= control target key start
LH: loop header
LB: loop body
LE: loop exit
PB: predicated region body
PF: predicated region fallthrough
CT: control target
= control target key end

     0   :  { %s1411_s12 = smov 0   ;;  %s1641_s0 = inlined_call_operand.vmem [shape: bf16[2048,128], index: 0, kind: input, shape index: {}]   ;;  %s1642_s1 = inlined_call_operand.vmem [shape: f32[1,128], index: 1, kind: input, shape index: {}]   ;;  %s1643_s2 = inlined_call_operand.vmem [shape: f32[1,128], index: 2, kind: input, shape index: {}]   ;;  %s1644_s3 = inlined_call_operand.vmem [shape: bf16[2048,128], index: 3, kind: output, shape index: {}]  }
   0x1 LB: > { %s884_s13 = sadd.s32 4294967295, %s1389_s12   ;;  %p888_p0 = scmp.ge.s32.totalorder %s1389_s12, 1  ;;  %s1389_s12 = sphi %s1411_s12, %s13_s12  }
   0x2   : > { %p138_p1 = scmp.lt.s32.totalorder %s1389_s12, 5 }
   0x4   : > { %p139_p2 = pnand %p888_p0, %p138_p1 }
   0x5   : > { %s889_s14 = sshll.u32 (!%p139_p2), %s884_s13, 6 }
   0x6   : > { %142 = sbr.rel (%p139_p2) target bundleno = 93 (0x5d), region = 32  ;;  %p163_p3 = scmp.lt.s32.totalorder (!%p139_p2), %s889_s14, 255 }
   0xb   : > { %s1646_s14 = smov (!%p163_p3, %s889_s14), 255  ;;  %v1432_v0 = vld [vmem:[%s1642_s1] ss:$0 sm:$0xff] }
   0xc   : > { %s890_s15 = sshll.u32 %s1646_s14, 2  ;;  %v1441_v9 = vld [vmem:[%s1643_s2] ss:$0 sm:$0xff] }
   0xd   : > { %s1427_s18 = scalar_lea.vmem %s1641_s0, %s890_s15  ;;  %s1466_s25 = scalar_lea.vmem %s1644_s3, %s890_s15 }
   0xe   : > { %v1026_v1 = vld [vmem:[%s1427_s18] sm:$0xff]   ;;  %v1313_v2 = vld [vmem:[%s1427_s18 + $0x8] sm:$0xff]   ;;  %v1314_v3 = vld [vmem:[%s1427_s18 + $0x10] sm:$0xff]  }
   0xf   : > { %v1027_v4 = vunpack.c.l.bf16 %v1026_v1  ;;  %v1028_v5 = vunpack.c.h.bf16 %v1026_v1  ;;  %v1031_v6 = vunpack.c.l.bf16 %v1313_v2  ;;  %v1032_v7 = vunpack.c.h.bf16 %v1313_v2  ;;  %v1315_v8 = vld [vmem:[%s1427_s18 + $0x18] sm:$0xff]   ;;  %v1316_v30 = vld [vmem:[%s1427_s18 + $0x20] sm:$0xff]   ;;  %v1317_v35 = vld [vmem:[%s1427_s18 + $0x28] sm:$0xff]  }
  0x10   : > { %v1035_v10 = vunpack.c.l.bf16 %v1314_v3  ;;  %v1036_v11 = vunpack.c.h.bf16 %v1314_v3  ;;  %v1039_v12 = vunpack.c.l.bf16 %v1315_v8  ;;  %v1040_v13 = vunpack.c.h.bf16 %v1315_v8  ;;  %v1318_v40 = vld [vmem:[%s1427_s18 + $0x30] sm:$0xff]   ;;  %v1319_v45 = vld [vmem:[%s1427_s18 + $0x38] sm:$0xff]   ;;  %v1320_v3 = vld [vmem:[%s1427_s18 + $0x40] sm:$0xff]  }
  0x11   : > { %v309_v14 = vmul.f32 %v1027_v4, %v1432_v0  ;;  %v310_v15 = vmul.f32 %v1028_v5, %v1432_v0  ;;  %v311_v16 = vmul.f32 %v1031_v6, %v1432_v0  ;;  %v312_v17 = vmul.f32 %v1032_v7, %v1432_v0 }
  0x12   : > { %v313_v18 = vmul.f32 %v1035_v10, %v1432_v0  ;;  %v314_v19 = vmul.f32 %v1036_v11, %v1432_v0  ;;  %v315_v20 = vmul.f32 %v1039_v12, %v1432_v0  ;;  %v316_v21 = vmul.f32 %v1040_v13, %v1432_v0  ;;  %v1321_v13 = vld [vmem:[%s1427_s18 + $0x48] sm:$0xff]  }
  0x13   : > { %v380_v22 = vadd.f32 %v1441_v9, %v309_v14  ;;  %v381_v23 = vadd.f32 %v1441_v9, %v310_v15  ;;  %v382_v24 = vadd.f32 %v1441_v9, %v311_v16  ;;  %v383_v25 = vadd.f32 %v1441_v9, %v312_v17 }
  0x14   : > { %v384_v26 = vadd.f32 %v1441_v9, %v313_v18  ;;  %v385_v27 = vadd.f32 %v1441_v9, %v314_v19  ;;  %v386_v28 = vadd.f32 %v1441_v9, %v315_v20  ;;  %v387_v29 = vadd.f32 %v1441_v9, %v316_v21  ;;  %v1322_v18 = vld [vmem:[%s1427_s18 + $0x50] sm:$0xff]  }
  0x15   : > { %v444_v31 = vmax.f32 %v380_v22, 0.0  ;;  %v445_v32 = vmax.f32 %v381_v23, 0.0  ;;  %v446_v33 = vmax.f32 %v382_v24, 0.0  ;;  %v447_v34 = vmax.f32 %v383_v25, 0.0  ;;  %v1323_v23 = vld [vmem:[%s1427_s18 + $0x58] sm:$0xff]  }
  0x16   : > { %v448_v36 = vmax.f32 %v384_v26, 0.0  ;;  %v449_v37 = vmax.f32 %v385_v27, 0.0  ;;  %v450_v38 = vmax.f32 %v386_v28, 0.0  ;;  %v451_v39 = vmax.f32 %v387_v29, 0.0 }
  0x17   : > { %v1156_v41 = vpack.c.bf16 %v445_v32, %v444_v31  ;;  %v1161_v42 = vpack.c.bf16 %v447_v34, %v446_v33  ;;  %v1043_v43 = vunpack.c.l.bf16 %v1316_v30  ;;  %v1044_v44 = vunpack.c.h.bf16 %v1316_v30 }
  0x18   : > { %v1166_v46 = vpack.c.bf16 %v449_v37, %v448_v36  ;;  %v1171_v47 = vpack.c.bf16 %v451_v39, %v450_v38  ;;  %v1047_v48 = vunpack.c.l.bf16 %v1317_v35  ;;  %v1048_v49 = vunpack.c.h.bf16 %v1317_v35 }
  0x19   : > { %1157 = vst [vmem:[%s1466_s25] sm:$0xff] %v1156_v41   ;;  %1344 = vst [vmem:[%s1466_s25 + $0x8] sm:$0xff] %v1161_v42   ;;  %v317_v50 = vmul.f32 %v1043_v43, %v1432_v0  ;;  %v318_v51 = vmul.f32 %v1044_v44, %v1432_v0  ;;  %v1051_v52 = vunpack.c.l.bf16 %v1318_v40  ;;  %v1052_v53 = vunpack.c.h.bf16 %v1318_v40  ;;  %v1324_v40 = vld [vmem:[%s1427_s18 + $0x60] sm:$0xff]  }
  0x1a   : > { %1345 = vst [vmem:[%s1466_s25 + $0x10] sm:$0xff] %v1166_v46   ;;  %1346 = vst [vmem:[%s1466_s25 + $0x18] sm:$0xff] %v1171_v47   ;;  %v319_v54 = vmul.f32 %v1047_v48, %v1432_v0  ;;  %v320_v55 = vmul.f32 %v1048_v49, %v1432_v0  ;;  %v1055_v56 = vunpack.c.l.bf16 %v1319_v45  ;;  %v1056_v57 = vunpack.c.h.bf16 %v1319_v45 }
  0x1b   : > { %v388_v58 = vadd.f32 %v1441_v9, %v317_v50  ;;  %v389_v59 = vadd.f32 %v1441_v9, %v318_v51  ;;  %v321_v60 = vmul.f32 %v1051_v52, %v1432_v0  ;;  %v322_v61 = vmul.f32 %v1052_v53, %v1432_v0  ;;  %v1325_v53 = vld [vmem:[%s1427_s18 + $0x68] sm:$0xff]  }
  0x1c   : > { %v390_v62 = vadd.f32 %v1441_v9, %v319_v54  ;;  %v391_v63 = vadd.f32 %v1441_v9, %v320_v55  ;;  %v323_v1 = vmul.f32 %v1055_v56, %v1432_v0  ;;  %v324_v2 = vmul.f32 %v1056_v57, %v1432_v0 }
  0x1d   : > { %v452_v4 = vmax.f32 %v388_v58, 0.0  ;;  %v453_v5 = vmax.f32 %v389_v59, 0.0  ;;  %v392_v6 = vadd.f32 %v1441_v9, %v321_v60  ;;  %v393_v7 = vadd.f32 %v1441_v9, %v322_v61  ;;  %v1326_v58 = vld [vmem:[%s1427_s18 + $0x70] sm:$0xff]  }
  0x1e   : > { %v454_v8 = vmax.f32 %v390_v62, 0.0  ;;  %v455_v10 = vmax.f32 %v391_v63, 0.0  ;;  %v394_v11 = vadd.f32 %v1441_v9, %v323_v1  ;;  %v395_v12 = vadd.f32 %v1441_v9, %v324_v2  ;;  %v1327_v63 = vld [vmem:[%s1427_s18 + $0x78] sm:$0xff]  }
  0x1f   : > { %v1176_v14 = vpack.c.bf16 %v453_v5, %v452_v4  ;;  %v456_v15 = vmax.f32 %v392_v6, 0.0  ;;  %v457_v16 = vmax.f32 %v393_v7, 0.0  ;;  %v1059_v17 = vunpack.c.l.bf16 %v1320_v3 }
  0x20   : > { %v1181_v19 = vpack.c.bf16 %v455_v10, %v454_v8  ;;  %v458_v20 = vmax.f32 %v394_v11, 0.0  ;;  %v459_v21 = vmax.f32 %v395_v12, 0.0  ;;  %v1060_v22 = vunpack.c.h.bf16 %v1320_v3 }
  0x21   : > { %1347 = vst [vmem:[%s1466_s25 + $0x20] sm:$0xff] %v1176_v14   ;;  %v1186_v24 = vpack.c.bf16 %v457_v16, %v456_v15  ;;  %v325_v25 = vmul.f32 %v1059_v17, %v1432_v0  ;;  %v1063_v26 = vunpack.c.l.bf16 %v1321_v13  ;;  %v1064_v27 = vunpack.c.h.bf16 %v1321_v13  ;;  %v1328_v14 = vld [vmem:[%s1427_s18 + $0x80] sm:$0xff]  }
  0x22   : > { %1348 = vst [vmem:[%s1466_s25 + $0x28] sm:$0xff] %v1181_v19   ;;  %v1191_v28 = vpack.c.bf16 %v459_v21, %v458_v20  ;;  %v326_v29 = vmul.f32 %v1060_v22, %v1432_v0  ;;  %v1067_v30 = vunpack.c.l.bf16 %v1322_v18  ;;  %v1068_v31 = vunpack.c.h.bf16 %v1322_v18 }
  0x23   : > { %1349 = vst [vmem:[%s1466_s25 + $0x30] sm:$0xff] %v1186_v24   ;;  %v396_v32 = vadd.f32 %v1441_v9, %v325_v25  ;;  %v327_v33 = vmul.f32 %v1063_v26, %v1432_v0  ;;  %v328_v34 = vmul.f32 %v1064_v27, %v1432_v0  ;;  %v1071_v35 = vunpack.c.l.bf16 %v1323_v23 }
  0x24   : > { %1350 = vst [vmem:[%s1466_s25 + $0x38] sm:$0xff] %v1191_v28   ;;  %v397_v36 = vadd.f32 %v1441_v9, %v326_v29  ;;  %v329_v37 = vmul.f32 %v1067_v30, %v1432_v0  ;;  %v330_v38 = vmul.f32 %v1068_v31, %v1432_v0  ;;  %v1072_v39 = vunpack.c.h.bf16 %v1323_v23  ;;  %v1329_v31 = vld [vmem:[%s1427_s18 + $0x88] sm:$0xff]  }
  0x25   : > { %v460_v41 = vmax.f32 %v396_v32, 0.0  ;;  %v398_v42 = vadd.f32 %v1441_v9, %v327_v33  ;;  %v399_v43 = vadd.f32 %v1441_v9, %v328_v34  ;;  %v331_v44 = vmul.f32 %v1071_v35, %v1432_v0 }
  0x26   : > { %v461_v45 = vmax.f32 %v397_v36, 0.0  ;;  %v400_v46 = vadd.f32 %v1441_v9, %v329_v37  ;;  %v401_v47 = vadd.f32 %v1441_v9, %v330_v38  ;;  %v332_v48 = vmul.f32 %v1072_v39, %v1432_v0  ;;  %v1330_v36 = vld [vmem:[%s1427_s18 + $0x90] sm:$0xff]  }
  0x27   : > { %v462_v49 = vmax.f32 %v398_v42, 0.0  ;;  %v463_v50 = vmax.f32 %v399_v43, 0.0  ;;  %v402_v51 = vadd.f32 %v1441_v9, %v331_v44  ;;  %v1075_v52 = vunpack.c.l.bf16 %v1324_v40 }
  0x28   : > { %v1196_v54 = vpack.c.bf16 %v461_v45, %v460_v41  ;;  %v464_v55 = vmax.f32 %v400_v46, 0.0  ;;  %v465_v56 = vmax.f32 %v401_v47, 0.0  ;;  %v403_v57 = vadd.f32 %v1441_v9, %v332_v48  ;;  %v1331_v41 = vld [vmem:[%s1427_s18 + $0x98] sm:$0xff]  }
  0x29   : > { %v1201_v59 = vpack.c.bf16 %v463_v50, %v462_v49  ;;  %v466_v60 = vmax.f32 %v402_v51, 0.0  ;;  %v1076_v61 = vunpack.c.h.bf16 %v1324_v40  ;;  %v333_v62 = vmul.f32 %v1075_v52, %v1432_v0 }
  0x2a   : > { %1351 = vst [vmem:[%s1466_s25 + $0x40] sm:$0xff] %v1196_v54   ;;  %v1206_v1 = vpack.c.bf16 %v465_v56, %v464_v55  ;;  %v467_v2 = vmax.f32 %v403_v57, 0.0  ;;  %v1079_v3 = vunpack.c.l.bf16 %v1325_v53  ;;  %v1080_v4 = vunpack.c.h.bf16 %v1325_v53  ;;  %v1332_v54 = vld [vmem:[%s1427_s18 + $0xa0] sm:$0xff]  }
  0x2b   : > { %1352 = vst [vmem:[%s1466_s25 + $0x48] sm:$0xff] %v1201_v59   ;;  %v334_v5 = vmul.f32 %v1076_v61, %v1432_v0  ;;  %v404_v6 = vadd.f32 %v1441_v9, %v333_v62  ;;  %v1083_v7 = vunpack.c.l.bf16 %v1326_v58  ;;  %v1084_v8 = vunpack.c.h.bf16 %v1326_v58 }
  0x2c   : > { %1353 = vst [vmem:[%s1466_s25 + $0x50] sm:$0xff] %v1206_v1   ;;  %v1211_v10 = vpack.c.bf16 %v467_v2, %v466_v60  ;;  %v335_v11 = vmul.f32 %v1079_v3, %v1432_v0  ;;  %v336_v12 = vmul.f32 %v1080_v4, %v1432_v0  ;;  %v1087_v13 = vunpack.c.l.bf16 %v1327_v63  ;;  %v1333_v4 = vld [vmem:[%s1427_s18 + $0xa8] sm:$0xff]  }
  0x2d   : > { %v405_v15 = vadd.f32 %v1441_v9, %v334_v5  ;;  %v468_v16 = vmax.f32 %v404_v6, 0.0  ;;  %v337_v17 = vmul.f32 %v1083_v7, %v1432_v0  ;;  %v338_v18 = vmul.f32 %v1084_v8, %v1432_v0 }
  0x2e   : > { %1354 = vst [vmem:[%s1466_s25 + $0x58] sm:$0xff] %v1211_v10   ;;  %v406_v19 = vadd.f32 %v1441_v9, %v335_v11  ;;  %v407_v20 = vadd.f32 %v1441_v9, %v336_v12  ;;  %v1088_v21 = vunpack.c.h.bf16 %v1327_v63  ;;  %v339_v22 = vmul.f32 %v1087_v13, %v1432_v0 }
  0x2f   : > { %v469_v23 = vmax.f32 %v405_v15, 0.0  ;;  %v408_v24 = vadd.f32 %v1441_v9, %v337_v17  ;;  %v409_v25 = vadd.f32 %v1441_v9, %v338_v18  ;;  %v1091_v26 = vunpack.c.l.bf16 %v1328_v14 }
  0x30   : > { %v470_v27 = vmax.f32 %v406_v19, 0.0  ;;  %v471_v28 = vmax.f32 %v407_v20, 0.0  ;;  %v340_v29 = vmul.f32 %v1088_v21, %v1432_v0  ;;  %v410_v30 = vadd.f32 %v1441_v9, %v339_v22  ;;  %v1335_v19 = vld [vmem:[%s1427_s18 + $0xb8] sm:$0xff]  }
  0x31   : > { %v1216_v32 = vpack.c.bf16 %v469_v23, %v468_v16  ;;  %v472_v33 = vmax.f32 %v408_v24, 0.0  ;;  %v473_v34 = vmax.f32 %v409_v25, 0.0  ;;  %v1092_v35 = vunpack.c.h.bf16 %v1328_v14  ;;  %v1334_v14 = vld [vmem:[%s1427_s18 + $0xb0] sm:$0xff]  }
  0x32   : > { %v1221_v37 = vpack.c.bf16 %v471_v28, %v470_v27  ;;  %v411_v38 = vadd.f32 %v1441_v9, %v340_v29  ;;  %v474_v39 = vmax.f32 %v410_v30, 0.0  ;;  %v341_v40 = vmul.f32 %v1091_v26, %v1432_v0 }
  0x33   : > { %1355 = vst [vmem:[%s1466_s25 + $0x60] sm:$0xff] %v1216_v32   ;;  %v1226_v42 = vpack.c.bf16 %v473_v34, %v472_v33  ;;  %v342_v43 = vmul.f32 %v1092_v35, %v1432_v0  ;;  %v1095_v44 = vunpack.c.l.bf16 %v1329_v31  ;;  %v1096_v45 = vunpack.c.h.bf16 %v1329_v31  ;;  %v1336_v32 = vld [vmem:[%s1427_s18 + $0xc0] sm:$0xff]  }
  0x34   : > { %1356 = vst [vmem:[%s1466_s25 + $0x68] sm:$0xff] %v1221_v37   ;;  %v475_v46 = vmax.f32 %v411_v38, 0.0  ;;  %v412_v47 = vadd.f32 %v1441_v9, %v341_v40  ;;  %v1099_v48 = vunpack.c.l.bf16 %v1330_v36  ;;  %v1100_v49 = vunpack.c.h.bf16 %v1330_v36 }
  0x35   : > { %1357 = vst [vmem:[%s1466_s25 + $0x70] sm:$0xff] %v1226_v42   ;;  %v413_v50 = vadd.f32 %v1441_v9, %v342_v43  ;;  %v343_v51 = vmul.f32 %v1095_v44, %v1432_v0  ;;  %v344_v52 = vmul.f32 %v1096_v45, %v1432_v0  ;;  %v1103_v53 = vunpack.c.l.bf16 %v1331_v41  ;;  %v1337_v45 = vld [vmem:[%s1427_s18 + $0xc8] sm:$0xff]  }
  0x36   : > { %v1231_v55 = vpack.c.bf16 %v475_v46, %v474_v39  ;;  %v476_v56 = vmax.f32 %v412_v47, 0.0  ;;  %v345_v57 = vmul.f32 %v1099_v48, %v1432_v0  ;;  %v346_v58 = vmul.f32 %v1100_v49, %v1432_v0 }
  0x37   : > { %v477_v59 = vmax.f32 %v413_v50, 0.0  ;;  %v414_v60 = vadd.f32 %v1441_v9, %v343_v51  ;;  %v415_v61 = vadd.f32 %v1441_v9, %v344_v52  ;;  %v1104_v62 = vunpack.c.h.bf16 %v1331_v41 }
  0x38   : > { %1358 = vst [vmem:[%s1466_s25 + $0x78] sm:$0xff] %v1231_v55   ;;  %v416_v63 = vadd.f32 %v1441_v9, %v345_v57  ;;  %v417_v1 = vadd.f32 %v1441_v9, %v346_v58  ;;  %v347_v2 = vmul.f32 %v1103_v53, %v1432_v0  ;;  %v1107_v3 = vunpack.c.l.bf16 %v1332_v54 }
  0x39   : > { %v1236_v5 = vpack.c.bf16 %v477_v59, %v476_v56  ;;  %v478_v6 = vmax.f32 %v414_v60, 0.0  ;;  %v479_v7 = vmax.f32 %v415_v61, 0.0  ;;  %v348_v8 = vmul.f32 %v1104_v62, %v1432_v0 }
  0x3a   : > { %v480_v10 = vmax.f32 %v416_v63, 0.0  ;;  %v481_v11 = vmax.f32 %v417_v1, 0.0  ;;  %v418_v12 = vadd.f32 %v1441_v9, %v347_v2  ;;  %v1108_v13 = vunpack.c.h.bf16 %v1332_v54  ;;  %v1338_v54 = vld [vmem:[%s1427_s18 + $0xd0] sm:$0xff]   ;;  %v1339_v63 = vld [vmem:[%s1427_s18 + $0xd8] sm:$0xff]  }
  0x3b   : > { %1359 = vst [vmem:[%s1466_s25 + $0x80] sm:$0xff] %v1236_v5   ;;  %v1241_v15 = vpack.c.bf16 %v479_v7, %v478_v6  ;;  %v419_v16 = vadd.f32 %v1441_v9, %v348_v8  ;;  %v349_v17 = vmul.f32 %v1107_v3, %v1432_v0  ;;  %v1111_v18 = vunpack.c.l.bf16 %v1333_v4 }
  0x3c   : > { %v1246_v20 = vpack.c.bf16 %v481_v11, %v480_v10  ;;  %v482_v21 = vmax.f32 %v418_v12, 0.0  ;;  %v350_v22 = vmul.f32 %v1108_v13, %v1432_v0  ;;  %v1112_v23 = vunpack.c.h.bf16 %v1333_v4  ;;  %v1340_v10 = vld [vmem:[%s1427_s18 + $0xe0] sm:$0xff]  }
  0x3d   : > { %1360 = vst [vmem:[%s1466_s25 + $0x88] sm:$0xff] %v1241_v15   ;;  %v483_v24 = vmax.f32 %v419_v16, 0.0  ;;  %v420_v25 = vadd.f32 %v1441_v9, %v349_v17  ;;  %v351_v26 = vmul.f32 %v1111_v18, %v1432_v0  ;;  %v1115_v27 = vunpack.c.l.bf16 %v1334_v14 }
  0x3e   : > { %1361 = vst [vmem:[%s1466_s25 + $0x90] sm:$0xff] %v1246_v20   ;;  %v421_v28 = vadd.f32 %v1441_v9, %v350_v22  ;;  %v352_v29 = vmul.f32 %v1112_v23, %v1432_v0  ;;  %v1116_v30 = vunpack.c.h.bf16 %v1334_v14  ;;  %v1119_v31 = vunpack.c.l.bf16 %v1335_v19  ;;  %v1341_v23 = vld [vmem:[%s1427_s18 + $0xe8] sm:$0xff]  }
  0x3f   : > { %v1251_v33 = vpack.c.bf16 %v483_v24, %v482_v21  ;;  %v484_v34 = vmax.f32 %v420_v25, 0.0  ;;  %v422_v35 = vadd.f32 %v1441_v9, %v351_v26  ;;  %v353_v36 = vmul.f32 %v1115_v27, %v1432_v0 }
  0x40   : > { %v485_v37 = vmax.f32 %v421_v28, 0.0  ;;  %v423_v38 = vadd.f32 %v1441_v9, %v352_v29  ;;  %v354_v39 = vmul.f32 %v1116_v30, %v1432_v0  ;;  %v1120_v40 = vunpack.c.h.bf16 %v1335_v19 }
  0x41   : > { %1362 = vst [vmem:[%s1466_s25 + $0x98] sm:$0xff] %v1251_v33   ;;  %v486_v41 = vmax.f32 %v422_v35, 0.0  ;;  %v424_v42 = vadd.f32 %v1441_v9, %v353_v36  ;;  %v355_v43 = vmul.f32 %v1119_v31, %v1432_v0  ;;  %v1123_v44 = vunpack.c.l.bf16 %v1336_v32 }
  0x42   : > { %v1256_v46 = vpack.c.bf16 %v485_v37, %v484_v34  ;;  %v487_v47 = vmax.f32 %v423_v38, 0.0  ;;  %v425_v48 = vadd.f32 %v1441_v9, %v354_v39  ;;  %v356_v49 = vmul.f32 %v1120_v40, %v1432_v0 }
  0x43   : > { %v488_v50 = vmax.f32 %v424_v42, 0.0  ;;  %v426_v51 = vadd.f32 %v1441_v9, %v355_v43  ;;  %v1124_v52 = vunpack.c.h.bf16 %v1336_v32  ;;  %v357_v53 = vmul.f32 %v1123_v44, %v1432_v0  ;;  %v1342_v32 = vld [vmem:[%s1427_s18 + $0xf0] sm:$0xff]  }
  0x44   : > { %1363 = vst [vmem:[%s1466_s25 + $0xa0] sm:$0xff] %v1256_v46   ;;  %v1261_v55 = vpack.c.bf16 %v487_v47, %v486_v41  ;;  %v489_v56 = vmax.f32 %v425_v48, 0.0  ;;  %v427_v57 = vadd.f32 %v1441_v9, %v356_v49  ;;  %v1127_v58 = vunpack.c.l.bf16 %v1337_v45  ;;  %v1343_v41 = vld [vmem:[%s1427_s18 + $0xf8] sm:$0xff]  }
  0x45   : > { %v490_v59 = vmax.f32 %v426_v51, 0.0  ;;  %v358_v60 = vmul.f32 %v1124_v52, %v1432_v0  ;;  %v428_v61 = vadd.f32 %v1441_v9, %v357_v53  ;;  %v1128_v62 = vunpack.c.h.bf16 %v1337_v45 }
  0x46   : > { %1364 = vst [vmem:[%s1466_s25 + $0xa8] sm:$0xff] %v1261_v55   ;;  %v1266_v1 = vpack.c.bf16 %v489_v56, %v488_v50  ;;  %v491_v2 = vmax.f32 %v427_v57, 0.0  ;;  %v359_v3 = vmul.f32 %v1127_v58, %v1432_v0  ;;  %v1131_v4 = vunpack.c.l.bf16 %v1338_v54 }
  0x47   : > { %v429_v5 = vadd.f32 %v1441_v9, %v358_v60  ;;  %v492_v6 = vmax.f32 %v428_v61, 0.0  ;;  %v360_v7 = vmul.f32 %v1128_v62, %v1432_v0  ;;  %v1132_v8 = vunpack.c.h.bf16 %v1338_v54 }
  0x48   : > { %1365 = vst [vmem:[%s1466_s25 + $0xb0] sm:$0xff] %v1266_v1   ;;  %v1271_v11 = vpack.c.bf16 %v491_v2, %v490_v59  ;;  %v430_v12 = vadd.f32 %v1441_v9, %v359_v3  ;;  %v361_v13 = vmul.f32 %v1131_v4, %v1432_v0  ;;  %v1135_v14 = vunpack.c.l.bf16 %v1339_v63 }
  0x49   : > { %v493_v15 = vmax.f32 %v429_v5, 0.0  ;;  %v431_v16 = vadd.f32 %v1441_v9, %v360_v7  ;;  %v362_v17 = vmul.f32 %v1132_v8, %v1432_v0  ;;  %v1136_v18 = vunpack.c.h.bf16 %v1339_v63 }
  0x4a   : > { %1366 = vst [vmem:[%s1466_s25 + $0xb8] sm:$0xff] %v1271_v11   ;;  %v494_v19 = vmax.f32 %v430_v12, 0.0  ;;  %v432_v20 = vadd.f32 %v1441_v9, %v361_v13  ;;  %v363_v21 = vmul.f32 %v1135_v14, %v1432_v0  ;;  %v1139_v22 = vunpack.c.l.bf16 %v1340_v10 }
  0x4b   : > { %v1276_v24 = vpack.c.bf16 %v493_v15, %v492_v6  ;;  %v495_v25 = vmax.f32 %v431_v16, 0.0  ;;  %v433_v26 = vadd.f32 %v1441_v9, %v362_v17  ;;  %v364_v27 = vmul.f32 %v1136_v18, %v1432_v0 }
  0x4c   : > { %v496_v28 = vmax.f32 %v432_v20, 0.0  ;;  %v434_v29 = vadd.f32 %v1441_v9, %v363_v21  ;;  %v1140_v30 = vunpack.c.h.bf16 %v1340_v10  ;;  %v365_v31 = vmul.f32 %v1139_v22, %v1432_v0 }
  0x4d   : > { %1367 = vst [vmem:[%s1466_s25 + $0xc0] sm:$0xff] %v1276_v24   ;;  %v1281_v33 = vpack.c.bf16 %v495_v25, %v494_v19  ;;  %v497_v34 = vmax.f32 %v433_v26, 0.0  ;;  %v435_v35 = vadd.f32 %v1441_v9, %v364_v27  ;;  %v1143_v36 = vunpack.c.l.bf16 %v1341_v23 }
  0x4e   : > { %v498_v37 = vmax.f32 %v434_v29, 0.0  ;;  %v366_v38 = vmul.f32 %v1140_v30, %v1432_v0  ;;  %v436_v39 = vadd.f32 %v1441_v9, %v365_v31  ;;  %v1144_v40 = vunpack.c.h.bf16 %v1341_v23 }
  0x4f   : > { %1368 = vst [vmem:[%s1466_s25 + $0xc8] sm:$0xff] %v1281_v33   ;;  %v1286_v42 = vpack.c.bf16 %v497_v34, %v496_v28  ;;  %v499_v43 = vmax.f32 %v435_v35, 0.0  ;;  %v367_v44 = vmul.f32 %v1143_v36, %v1432_v0  ;;  %v1147_v45 = vunpack.c.l.bf16 %v1342_v32 }
  0x50   : > { %v437_v46 = vadd.f32 %v1441_v9, %v366_v38  ;;  %v500_v47 = vmax.f32 %v436_v39, 0.0  ;;  %v368_v48 = vmul.f32 %v1144_v40, %v1432_v0  ;;  %v1148_v49 = vunpack.c.h.bf16 %v1342_v32 }
  0x51   : > { %1369 = vst [vmem:[%s1466_s25 + $0xd0] sm:$0xff] %v1286_v42   ;;  %v1291_v50 = vpack.c.bf16 %v499_v43, %v498_v37  ;;  %v438_v51 = vadd.f32 %v1441_v9, %v367_v44  ;;  %v369_v52 = vmul.f32 %v1147_v45, %v1432_v0  ;;  %v1151_v53 = vunpack.c.l.bf16 %v1343_v41 }
  0x52   : > { %v501_v54 = vmax.f32 %v437_v46, 0.0  ;;  %v439_v55 = vadd.f32 %v1441_v9, %v368_v48  ;;  %v370_v56 = vmul.f32 %v1148_v49, %v1432_v0  ;;  %v1152_v57 = vunpack.c.h.bf16 %v1343_v41 }
  0x53   : > { %1370 = vst [vmem:[%s1466_s25 + $0xd8] sm:$0xff] %v1291_v50   ;;  %v502_v58 = vmax.f32 %v438_v51, 0.0  ;;  %v440_v59 = vadd.f32 %v1441_v9, %v369_v52  ;;  %v371_v60 = vmul.f32 %v1151_v53, %v1432_v0 }
  0x54   : > { %v1296_v61 = vpack.c.bf16 %v501_v54, %v500_v47  ;;  %v503_v62 = vmax.f32 %v439_v55, 0.0  ;;  %v441_v63 = vadd.f32 %v1441_v9, %v370_v56  ;;  %v372_v1 = vmul.f32 %v1152_v57, %v1432_v0 }
  0x55   : > { %v504_v2 = vmax.f32 %v440_v59, 0.0  ;;  %v442_v3 = vadd.f32 %v1441_v9, %v371_v60 }
  0x56   : > { %1371 = vst [vmem:[%s1466_s25 + $0xe0] sm:$0xff] %v1296_v61   ;;  %v1301_v4 = vpack.c.bf16 %v503_v62, %v502_v58  ;;  %v505_v5 = vmax.f32 %v441_v63, 0.0  ;;  %v443_v6 = vadd.f32 %v1441_v9, %v372_v1 }
  0x57   : > { %v506_v7 = vmax.f32 %v442_v3, 0.0 }
  0x58   : > { %1372 = vst [vmem:[%s1466_s25 + $0xe8] sm:$0xff] %v1301_v4   ;;  %v1306_v8 = vpack.c.bf16 %v505_v5, %v504_v2  ;;  %v507_v10 = vmax.f32 %v443_v6, 0.0 }
  0x5a   : > { %1373 = vst [vmem:[%s1466_s25 + $0xf0] sm:$0xff] %v1306_v8   ;;  %v1311_v11 = vpack.c.bf16 %v507_v10, %v506_v7 }
  0x5c   : > { %1374 = vst [vmem:[%s1466_s25 + $0xf8] sm:$0xff] %v1311_v11  }
  0x5d PF: > { %s13_s12 = sadd.s32 1, %s1389_s12  }
  0x5e   : > { %p10_p4 = scmp.ge.s32.totalorder %s13_s12, 6  }
  0x60   :  { %12 = sbr.rel (!%p10_p4) target bundleno = 1 (0x1), region = 62 }

// kernel: generator_forward.18
= control target key start
LH: loop header
LB: loop body
LE: loop exit
PB: predicated region body
PF: predicated region fallthrough
CT: control target
= control target key end

     0   :  { %9 = vsyncpa [#allocation3], 0  ;;  %s1850_s0 = inlined_call_operand.vmem [shape: bf16[4,2048,128], index: 0, kind: input, shape index: {}]   ;;  %s1851_s1 = inlined_call_operand.vmem [shape: bf16[4,128,128], index: 1, kind: input, shape index: {}]   ;;  %s1852_s2 = inlined_call_operand.vmem [shape: bf16[4,2048,128], index: 2, kind: output, shape index: {0}]   ;;  %s1853_s3 = inlined_call_operand.hbm [shape: f32[4,8,2,128], index: 3, kind: output, shape index: {1}]  }
   0x1   :  { %11 = vsyncpa [#allocation3 + $0x1], 0  ;;  %s1572_s12 = smov 0   ;;  %s1574_s13 = smov 0  }
   0x2   :  { %s1576_s14 = smov 0   ;;  %s1578_s15 = smov 0  }
   0x3   :  { %s1580_s16 = smov 0   ;;  %s1582_s17 = smov 0  }
   0x4   :  { %s1584_s18 = smov 0   ;;  %s1586_s19 = smov 0  }
   0x5 LB: > { %s1071_s20 = sadd.s32 4294967295, %s1549_s19   ;;  %s1072_s21 = sadd.s32 4294967294, %s1549_s19   ;;  %s1549_s19 = sphi %s1586_s19, %s17_s19   ;;  %s1545_s18 = sphi %s1584_s18, %s1862_s18   ;;  %s1541_s17 = sphi %s1582_s17, %s1861_s17   ;;  %s1537_s16 = sphi %s1580_s16, %s1860_s16   ;;  %s1533_s15 = sphi %s1578_s15, %s1859_s15   ;;  %s1529_s14 = sphi %s1576_s14, %s1858_s14   ;;  %s1525_s13 = sphi %s1574_s13, %s1857_s13   ;;  %s1521_s12 = sphi %s1572_s12, %s1856_s12  }
   0x6   : > { %s32_s22 = sadd.s32 1, %s1541_s17  ;;  %s36_s23 = sadd.s32 1, %s1545_s18 }
   0x7   : > { %p34_p0 = scmp.ge.s32.totalorder %s32_s22, 8  ;;  %p143_p1 = scmp.ne.s32.totalorder %s1529_s14, %s1525_s13 }
   0x8   : > { %p144_p2 = scmp.eq.s32.totalorder %s1071_s20, 31  ;;  %p149_p5 = scmp.ne.s32.totalorder %s1525_s13, %s1521_s12 }
   0x9   : > { %s1864_s22 = smov (%p34_p0, %s32_s22), 0  ;;  %s1866_s23 = smov (!%p34_p0, %s36_s23), %s1545_s18 }
   0xa   : > { %s127_s24 = ssub.s32 %s1541_s17, %s1864_s22  ;;  %p1623_p3 = por %p144_p2, %p143_p1 }
   0xb   : > { %p38_p4 = scmp.ge.s32.totalorder %s1866_s23, 4  ;;  %p150_p6 = scmp.eq.s32.totalorder %s1072_s21, 31 }
   0xc   : > { %p1075_p7 = scmp.ge.s32.totalorder %s1549_s19, 1  ;;  %p192_p9 = scmp.lt.s32.totalorder %s1549_s19, 33 }
   0xd   : > { %s1868_s23 = smov (%p38_p4, %s1866_s23), 0  ;;  %p1632_p8 = por %p150_p6, %p149_p5 }
   0xe   : > { %s126_s27 = ssub.s32 %s1545_s18, %s1868_s23  ;;  %s133_s28 = sadd.s32 1, %s1529_s14 }
   0xf   : > { %s128_s29 = sor.u32 %s127_s24, %s126_s27  ;;  %p193_p10 = pnand %p1075_p7, %p192_p9 }
  0x10   : > { %p131_p11 = scmp.eq.s32.totalorder %s128_s29, 0  ;;  %s1077_s4 = sshll.u32 (!%p193_p10), %s1533_s15, 5 }
  0x11   : > { %196 = sbr.rel (%p193_p10) target bundleno = 348 (0x15c), region = 28  ;;  %p241_p12 = scmp.lt.s32.totalorder (!%p193_p10), %s1537_s16, 3 }
  0x12   : > { %s1641_s30 = scalar_select %p131_p11, %s1529_s14, %s133_s28  }
  0x13   : > { %p243_p13 = scmp.lt.s32.totalorder (!%p193_p10), %s1077_s4, 255 }
  0x16   : > { %s242_s5 = scalar_select %p241_p12, %s1537_s16, 3  ;;  %vm891_vm0 = vcmask 1040384  }
  0x17   : > { %s1870_s4 = smov (!%p243_p13, %s1077_s4), 255 }
  0x18   : > { %s1078_s6 = sshll.u32 %s242_s5, 8  ;;  %s1146_s7 = sshll.u32 %s242_s5, 6 }
  0x19   : > { %s1646_s8 = sadd.s32 %s1078_s6, %s1870_s4  ;;  %s1651_s11 = scalar_lea.vmem %s1851_s1, %s1146_s7 }
  0x1a   : > { %v1433_v0 = vld [vmem:[%s1651_s11 + $0x38] sm:$0xff]   ;;  %v1434_v1 = vld [vmem:[%s1651_s11 + $0x30] sm:$0xff]   ;;  %s1079_s20 = sshll.u32 %s1646_s8, 2  ;;  %v1435_v2 = vld [vmem:[%s1651_s11 + $0x28] sm:$0xff]   ;;  %s237_s5 = sand.u32 1, %s1525_s13  }
  0x1b   : > { %1298 = vmatprep.subr.bf16.mxu0 %v1433_v0  ;;  %1346 = vmatprep.subr.bf16.mxu1 %v1433_v0  ;;  %s1662_s27 = scalar_lea.vmem %s1850_s0, %s1079_s20  ;;  %v1436_v3 = vld [vmem:[%s1651_s11 + $0x20] sm:$0xff]   ;;  %v1437_v5 = vld [vmem:[%s1651_s11 + $0x18] sm:$0xff]   ;;  %v1438_v6 = vld [vmem:[%s1651_s11 + $0x10] sm:$0xff]   ;;  %s1694_s4 = scalar_lea.vmem %s1852_s2, %s1079_s20 }
  0x1c   : > { %1299 = vmatpush3.bf16.msra.mxu0 %v1433_v0  ;;  %1354 = vmatpush3.bf16.msra.mxu1 %v1433_v0  ;;  %v1441_v4 = vld [vmem:[%s1662_s27] sm:$0xff]   ;;  %v1439_v8 = vld [vmem:[%s1651_s11 + $0x8] sm:$0xff]   ;;  %v1443_v12 = vld [vmem:[%s1662_s27 + $0x10] sm:$0xff]   ;;  %s1076_s6 = sshll.u32 %s237_s5, 1  ;;  %s1142_s7 = sshll.u32 %s1537_s16, 3 }
  0x1d   : > { %1300 = vmatprep.subr.bf16.mxu0 %v1434_v1  ;;  %1347 = vmatprep.subr.bf16.mxu1 %v1434_v1  ;;  %v1449_v7 = vld [vmem:[%s1662_s27 + $0x40] sm:$0xff]   ;;  %v1442_v10 = vld [vmem:[%s1662_s27 + $0x8] sm:$0xff]   ;;  %v1451_v13 = vld [vmem:[%s1662_s27 + $0x50] sm:$0xff]   ;;  %s923_s8 = sadd.s32 %s1533_s15, %s1142_s7  ;;  %s239_s10 = scalar_lea.vmem [#allocation2], %s1076_s6 }
  0x1e   : > { %1314 = vmatprep.mubr.bf16.mxu0 %v1441_v4  ;;  %1330 = vmatprep.mubr.bf16.mxu1 %v1449_v7  ;;  %v1440_v9 = vld [vmem:[%s1651_s11] sm:$0xff]   ;;  %v1450_v11 = vld [vmem:[%s1662_s27 + $0x48] sm:$0xff]   ;;  %v1444_v14 = vld [vmem:[%s1662_s27 + $0x18] sm:$0xff]   ;;  %s1143_s9 = sshll.u32 %s923_s8, 5  ;;  %s927_s11 = sshll.u32 %s239_s10, 4  ;;  %s928_s11 = int_to_ptr.vmem [resolvable:$true] %s927_s11 }
  0x1f   : > { %v1452_v15 = vld [vmem:[%s1662_s27 + $0x58] sm:$0xff]   ;;  %v1445_v16 = vld [vmem:[%s1662_s27 + $0x20] sm:$0xff]   ;;  %v1446_v18 = vld [vmem:[%s1662_s27 + $0x28] sm:$0xff]   ;;  %s1804_s24 = scalar_lea.hbm %s1853_s3, %s1143_s9  ;;  %s907_s16 = scalar_lea.sflag [#allocation3], %s237_s5 }
  0x20   : > { %1301 = vmatpush3.bf16.msra.mxu0 %v1434_v1  ;;  %1355 = vmatpush3.bf16.msra.mxu1 %v1434_v1  ;;  %v1453_v17 = vld [vmem:[%s1662_s27 + $0x60] sm:$0xff]   ;;  %v1454_v19 = vld [vmem:[%s1662_s27 + $0x68] sm:$0xff]   ;;  %v1447_v20 = vld [vmem:[%s1662_s27 + $0x30] sm:$0xff]   ;;  %s1457_s15 = scalar_lea.vmem %s928_s11, 32 }
  0x21   : > { %1302 = vmatprep.subr.bf16.mxu0 %v1435_v2  ;;  %1348 = vmatprep.subr.bf16.mxu1 %v1435_v2  ;;  %v1455_v21 = vld [vmem:[%s1662_s27 + $0x70] sm:$0xff]   ;;  %v1448_v22 = vld [vmem:[%s1662_s27 + $0x38] sm:$0xff]   ;;  %p1458_p0 = scmp.ne.s32.totalorder %s928_s11, %s1457_s15 }
  0x22   : > { %v1456_v23 = vld [vmem:[%s1662_s27 + $0x78] sm:$0xff]   ;;  %s1551_s27 = smov [#allocation2]  }
  0x23   : > { %p1459_p1 = pnand %p1458_p0, %p1623_p3  ;;  %s1461_s28 = sshll.u32 %s1551_s27, 4  ;;  %s1462_s28 = int_to_ptr.vmem [resolvable:$false] %s1461_s28 }
  0x24   : > { %1303 = vmatpush3.bf16.msra.mxu0 %v1435_v2  ;;  %1356 = vmatpush3.bf16.msra.mxu1 %v1435_v2  ;;  %s1463_s29 = scalar_lea.vmem %s1462_s28, 64  ;;  %p1464_p4 = scmp.lt.s32.totalorder %s928_s11, %s1462_s28 }
  0x25   : > { %1304 = vmatprep.subr.bf16.mxu0 %v1436_v3  ;;  %1349 = vmatprep.subr.bf16.mxu1 %v1436_v3  ;;  %p1460_p2 = pneg %p1459_p1  ;;  %p1465_p5 = scmp.lt.s32.totalorder %s1463_s29, %s1457_s15 }
  0x27   : > { %p1466_p6 = por %p1465_p5, %p1464_p4 }
  0x28   : > { %1305 = vmatpush3.bf16.msra.mxu0 %v1436_v3  ;;  %1357 = vmatpush3.bf16.msra.mxu1 %v1436_v3 }
  0x29   : > { %1306 = vmatprep.subr.bf16.mxu0 %v1437_v5  ;;  %1350 = vmatprep.subr.bf16.mxu1 %v1437_v5  ;;  %p1467_p7 = pnand %p1466_p6, %p1460_p2 }
  0x2c   : > { %1307 = vmatpush3.bf16.msra.mxu0 %v1437_v5  ;;  %1358 = vmatpush3.bf16.msra.mxu1 %v1437_v5 }
  0x2d   : > { %1308 = vmatprep.subr.bf16.mxu0 %v1438_v6  ;;  %1351 = vmatprep.subr.bf16.mxu1 %v1438_v6 }
  0x30   : > { %1309 = vmatpush3.bf16.msra.mxu0 %v1438_v6  ;;  %1359 = vmatpush3.bf16.msra.mxu1 %v1438_v6 }
  0x31   : > { %1310 = vmatprep.subr.bf16.mxu0 %v1439_v8  ;;  %1352 = vmatprep.subr.bf16.mxu1 %v1439_v8 }
  0x34   : > { %1311 = vmatpush3.bf16.msra.mxu0 %v1439_v8  ;;  %1360 = vmatpush3.bf16.msra.mxu1 %v1439_v8 }
  0x35   : > { %1312 = vmatprep.subr.bf16.mxu0 %v1440_v9  ;;  %1353 = vmatprep.subr.bf16.mxu1 %v1440_v9 }
  0x38   : > { %1313 = vmatpush3.bf16.msra.mxu0 %v1440_v9  ;;  %1361 = vmatpush3.bf16.msra.mxu1 %v1440_v9 }
  0x3b   : > { %1315 = vmatmul.mubr.bf16.vlgmr.msra.gmra.mxu0 %v1442_v10  ;;  %1331 = vmatmul.mubr.bf16.vlgmr.msra.gmra.mxu1 %v1450_v11 }
  0x3c   : > { %1318 = vmatprep.mubr.bf16.mxu0 %v1443_v12  ;;  %1334 = vmatprep.mubr.bf16.mxu1 %v1451_v13 }
  0x43   : > { %1319 = vmatmul.mubr.bf16.gmra.mxu0 %v1444_v14  ;;  %1335 = vmatmul.mubr.bf16.gmra.mxu1 %v1452_v15 }
  0x44   : > { %1322 = vmatprep.mubr.bf16.mxu0 %v1445_v16  ;;  %1338 = vmatprep.mubr.bf16.mxu1 %v1453_v17 }
  0x4b   : > { %1323 = vmatmul.mubr.bf16.gmra.mxu0 %v1446_v18  ;;  %1339 = vmatmul.mubr.bf16.gmra.mxu1 %v1454_v19 }
  0x4c   : > { %1326 = vmatprep.mubr.bf16.mxu0 %v1447_v20  ;;  %1342 = vmatprep.mubr.bf16.mxu1 %v1455_v21 }
  0x53   : > { %1327 = vmatmul.mubr.bf16.gmra.mxu0 %v1448_v22  ;;  %1343 = vmatmul.mubr.bf16.gmra.mxu1 %v1456_v23 }
  0xfb   : > { %v1316_v24 = vpop.f32.mrf.mxu0  ;;  %v1685_v25 = vpop.f32.mrf.mxu1 }
  0xfc   : > { %v824_v41 = vmul.f32 %v1316_v24, %v1316_v24 }
  0xfd   : > { %v498_v26 = vpop.f32.mrf.mxu0  ;;  %v1687_v27 = vpop.f32.mrf.mxu1 }
  0xfe   : > { %v822_v32 = vmul.f32 %v498_v26, %v498_v26 }
  0xff   : > { %v1317_v28 = vpop.f32.mrf.mxu0  ;;  %v1696_v29 = vpop.f32.mrf.mxu1 }
 0x100   : > { %v1187_v30 = vpack.c.bf16 %v1317_v28, %v1316_v24  ;;  %v1227_v31 = vpack.c.bf16 %v1696_v29, %v1685_v25  ;;  %v825_v46 = vmul.f32 %v1317_v28, %v1317_v28 }
 0x101   : > { %v501_v33 = vpop.f32.mrf.mxu0  ;;  %v1700_v34 = vpop.f32.mrf.mxu1 }
 0x102   : > { %1259 = vst [vmem:[%s1694_s4 + $0x8] sm:$0xff] %v1187_v30   ;;  %v1182_v35 = vpack.c.bf16 %v501_v33, %v498_v26  ;;  %v785_v36 = vadd.f32 %v501_v33, %v498_v26  ;;  %v823_v37 = vmul.f32 %v501_v33, %v501_v33  ;;  %1267 = vst [vmem:[%s1694_s4 + $0x48] sm:$0xff] %v1227_v31  }
 0x103   : > { %v1222_v38 = vpack.c.bf16 %v1700_v34, %v1687_v27  ;;  %v1320_v39 = vpop.f32.mrf.mxu0  ;;  %v1706_v40 = vpop.f32.mrf.mxu1 }
 0x104   : > { %1183 = vst [vmem:[%s1694_s4] sm:$0xff] %v1182_v35   ;;  %v786_v42 = vadd.f32 %v1316_v24, %v785_v36  ;;  %v854_v43 = vadd.f32 %v823_v37, %v822_v32  ;;  %v828_v1 = vmul.f32 %v1320_v39, %v1320_v39 }
 0x105   : > { %1266 = vst [vmem:[%s1694_s4 + $0x40] sm:$0xff] %v1222_v38   ;;  %v514_v44 = vpop.f32.mrf.mxu0  ;;  %v1710_v45 = vpop.f32.mrf.mxu1 }
 0x106   : > { %v855_v47 = vadd.f32 %v854_v43, %v824_v41  ;;  %v787_v48 = vadd.f32 %v1317_v28, %v786_v42  ;;  %v826_v52 = vmul.f32 %v514_v44, %v514_v44 }
 0x107   : > { %v1321_v49 = vpop.f32.mrf.mxu0  ;;  %v1712_v50 = vpop.f32.mrf.mxu1 }
 0x108   : > { %v788_v51 = vadd.f32 %v787_v48, %v514_v44  ;;  %v856_v53 = vadd.f32 %v855_v47, %v825_v46  ;;  %v1197_v54 = vpack.c.bf16 %v1321_v49, %v1320_v39  ;;  %v1237_v56 = vpack.c.bf16 %v1712_v50, %v1706_v40 }
 0x109   : > { %v517_v55 = vpop.f32.mrf.mxu0  ;;  %v1716_v57 = vpop.f32.mrf.mxu1  ;;  %v829_v6 = vmul.f32 %v1321_v49, %v1321_v49 }
 0x10a   : > { %v857_v58 = vadd.f32 %v856_v53, %v826_v52  ;;  %1261 = vst [vmem:[%s1694_s4 + $0x18] sm:$0xff] %v1197_v54   ;;  %v1192_v59 = vpack.c.bf16 %v517_v55, %v514_v44  ;;  %v789_v60 = vadd.f32 %v788_v51, %v517_v55  ;;  %v827_v61 = vmul.f32 %v517_v55, %v517_v55 }
 0x10b   : > { %v1324_v62 = vpop.f32.mrf.mxu0  ;;  %1269 = vst [vmem:[%s1694_s4 + $0x58] sm:$0xff] %v1237_v56   ;;  %v1232_v63 = vpack.c.bf16 %v1716_v57, %v1710_v45  ;;  %v1722_v0 = vpop.f32.mrf.mxu1 }
 0x10c   : > { %1260 = vst [vmem:[%s1694_s4 + $0x10] sm:$0xff] %v1192_v59   ;;  %v790_v2 = vadd.f32 %v1320_v39, %v789_v60  ;;  %v858_v3 = vadd.f32 %v857_v58, %v827_v61  ;;  %v832_v26 = vmul.f32 %v1324_v62, %v1324_v62  ;;  %v838_v61 = vmul.f32 %v1687_v27, %v1687_v27 }
 0x10d   : > { %v530_v4 = vpop.f32.mrf.mxu0  ;;  %1268 = vst [vmem:[%s1694_s4 + $0x50] sm:$0xff] %v1232_v63   ;;  %v1726_v5 = vpop.f32.mrf.mxu1 }
 0x10e   : > { %v859_v7 = vadd.f32 %v858_v3, %v828_v1  ;;  %v791_v8 = vadd.f32 %v1321_v49, %v790_v2  ;;  %v830_v12 = vmul.f32 %v530_v4, %v530_v4  ;;  %v839_v2 = vmul.f32 %v1700_v34, %v1700_v34 }
 0x10f   : > { %v1325_v9 = vpop.f32.mrf.mxu0  ;;  %v1728_v10 = vpop.f32.mrf.mxu1 }
 0x110   : > { %v792_v11 = vadd.f32 %v791_v8, %v530_v4  ;;  %v860_v13 = vadd.f32 %v859_v7, %v829_v6  ;;  %v1207_v14 = vpack.c.bf16 %v1325_v9, %v1324_v62  ;;  %v1247_v16 = vpack.c.bf16 %v1728_v10, %v1722_v0 }
 0x111   : > { %v533_v15 = vpop.f32.mrf.mxu0  ;;  %v1732_v17 = vpop.f32.mrf.mxu1  ;;  %v833_v33 = vmul.f32 %v1325_v9, %v1325_v9  ;;  %v841_v8 = vmul.f32 %v1696_v29, %v1696_v29 }
 0x112   : > { %v861_v18 = vadd.f32 %v860_v13, %v830_v12  ;;  %1263 = vst [vmem:[%s1694_s4 + $0x28] sm:$0xff] %v1207_v14   ;;  %v1202_v19 = vpack.c.bf16 %v533_v15, %v530_v4  ;;  %v793_v20 = vadd.f32 %v792_v11, %v533_v15  ;;  %v831_v21 = vmul.f32 %v533_v15, %v533_v15 }
 0x113   : > { %v1328_v22 = vpop.f32.mrf.mxu0  ;;  %1271 = vst [vmem:[%s1694_s4 + $0x68] sm:$0xff] %v1247_v16   ;;  %v1242_v23 = vpack.c.bf16 %v1732_v17, %v1726_v5  ;;  %v1738_v24 = vpop.f32.mrf.mxu1  ;;  %v840_v4 = vmul.f32 %v1685_v25, %v1685_v25  ;;  %v842_v12 = vmul.f32 %v1710_v45, %v1710_v45  ;;  %v843_v15 = vmul.f32 %v1716_v57, %v1716_v57 }
 0x114   : > { %1262 = vst [vmem:[%s1694_s4 + $0x20] sm:$0xff] %v1202_v19   ;;  %v794_v28 = vadd.f32 %v1324_v62, %v793_v20  ;;  %v862_v30 = vadd.f32 %v861_v18, %v831_v21  ;;  %v836_v54 = vmul.f32 %v1328_v22, %v1328_v22  ;;  %v846_v21 = vmul.f32 %v1726_v5, %v1726_v5 }
 0x115   : > { %v546_v31 = vpop.f32.mrf.mxu0  ;;  %1270 = vst [vmem:[%s1694_s4 + $0x60] sm:$0xff] %v1242_v23   ;;  %v1742_v32 = vpop.f32.mrf.mxu1 }
 0x116   : > { %v863_v35 = vadd.f32 %v862_v30, %v832_v26  ;;  %v795_v36 = vadd.f32 %v1325_v9, %v794_v28  ;;  %v834_v41 = vmul.f32 %v546_v31, %v546_v31  ;;  %v847_v26 = vmul.f32 %v1732_v17, %v1732_v17 }
 0x117   : > { %v1329_v37 = vpop.f32.mrf.mxu0  ;;  %v1744_v38 = vpop.f32.mrf.mxu1 }
 0x118   : > { %v796_v39 = vadd.f32 %v795_v36, %v546_v31  ;;  %v864_v42 = vadd.f32 %v863_v35, %v833_v33  ;;  %v1217_v43 = vpack.c.bf16 %v1329_v37, %v1328_v22  ;;  %v1257_v46 = vpack.c.bf16 %v1744_v38, %v1738_v24 }
 0x119   : > { %v549_v44 = vpop.f32.mrf.mxu0  ;;  %v613_v47 = vpop.f32.mrf.mxu1  ;;  %v837_v58 = vmul.f32 %v1329_v37, %v1329_v37  ;;  %v850_v35 = vmul.f32 %v1742_v32, %v1742_v32 }
 0x11a   : > { %v865_v48 = vadd.f32 %v864_v42, %v834_v41  ;;  %1265 = vst [vmem:[%s1694_s4 + $0x38] sm:$0xff] %v1217_v43   ;;  %v1212_v49 = vpack.c.bf16 %v549_v44, %v546_v31  ;;  %v797_v51 = vadd.f32 %v796_v39, %v549_v44  ;;  %v835_v52 = vmul.f32 %v549_v44, %v549_v44 }
 0x11b   : > { %1273 = vst [vmem:[%s1694_s4 + $0x78] sm:$0xff] %v1257_v46   ;;  %v1252_v53 = vpack.c.bf16 %v613_v47, %v1742_v32  ;;  %v851_v39 = vmul.f32 %v613_v47, %v613_v47 }
 0x11c   : > { %1264 = vst [vmem:[%s1694_s4 + $0x30] sm:$0xff] %v1212_v49   ;;  %v798_v55 = vadd.f32 %v1328_v22, %v797_v51  ;;  %v866_v56 = vadd.f32 %v865_v48, %v835_v52 }
 0x11d   : > { %1272 = vst [vmem:[%s1694_s4 + $0x70] sm:$0xff] %v1252_v53  }
 0x11e   : > { %v799_v59 = vadd.f32 %v1329_v37, %v798_v55  ;;  %v867_v60 = vadd.f32 %v866_v56, %v836_v54 }
 0x120   : > { %v868_v62 = vadd.f32 %v867_v60, %v837_v58  ;;  %v800_v63 = vadd.f32 %v799_v59, %v1687_v27 }
 0x122   : > { %v801_v1 = vadd.f32 %v800_v63, %v1700_v34  ;;  %v869_v3 = vadd.f32 %v868_v62, %v838_v61 }
 0x124   : > { %v802_v6 = vadd.f32 %v1685_v25, %v801_v1  ;;  %v870_v7 = vadd.f32 %v869_v3, %v839_v2  ;;  %v844_v25 = vmul.f32 %v1706_v40, %v1706_v40 }
 0x126   : > { %v871_v9 = vadd.f32 %v870_v7, %v840_v4  ;;  %v803_v11 = vadd.f32 %v1696_v29, %v802_v6  ;;  %v845_v29 = vmul.f32 %v1712_v50, %v1712_v50 }
 0x128   : > { %v804_v27 = vadd.f32 %v803_v11, %v1710_v45  ;;  %v872_v13 = vadd.f32 %v871_v9, %v841_v8 }
 0x12a   : > { %v873_v34 = vadd.f32 %v872_v13, %v842_v12  ;;  %v805_v14 = vadd.f32 %v804_v27, %v1716_v57 }
 0x12c   : > { %v806_v16 = vadd.f32 %v1706_v40, %v805_v14  ;;  %v874_v18 = vadd.f32 %v873_v34, %v843_v15  ;;  %v848_v40 = vmul.f32 %v1722_v0, %v1722_v0 }
 0x12e   : > { %v875_v19 = vadd.f32 %v874_v18, %v844_v25  ;;  %v807_v20 = vadd.f32 %v1712_v50, %v806_v16  ;;  %v849_v50 = vmul.f32 %v1728_v10, %v1728_v10 }
 0x130   : > { %v808_v45 = vadd.f32 %v807_v20, %v1726_v5  ;;  %v876_v22 = vadd.f32 %v875_v19, %v845_v29 }
 0x132   : > { %v877_v23 = vadd.f32 %v876_v22, %v846_v21  ;;  %v809_v57 = vadd.f32 %v808_v45, %v1732_v17 }
 0x134   : > { %v810_v28 = vadd.f32 %v1722_v0, %v809_v57  ;;  %v878_v30 = vadd.f32 %v877_v23, %v847_v26  ;;  %v852_v0 = vmul.f32 %v1738_v24, %v1738_v24 }
 0x136   : > { %v879_v31 = vadd.f32 %v878_v30, %v848_v40  ;;  %v811_v5 = vadd.f32 %v1728_v10, %v810_v28  ;;  %v853_v10 = vmul.f32 %v1744_v38, %v1744_v38 }
 0x138   : > { %v812_v33 = vadd.f32 %v811_v5, %v1742_v32  ;;  %v880_v36 = vadd.f32 %v879_v31, %v849_v50 }
 0x13a   : > { %v881_v17 = vadd.f32 %v880_v36, %v850_v35  ;;  %v813_v37 = vadd.f32 %v812_v33, %v613_v47 }
 0x13c   : > { %v814_v41 = vadd.f32 %v1738_v24, %v813_v37  ;;  %v882_v42 = vadd.f32 %v881_v17, %v851_v39 }
 0x13e   : > { %v815_v43 = vadd.f32 %v1744_v38, %v814_v41  ;;  %v883_v44 = vadd.f32 %v882_v42, %v852_v0 }
 0x140   : > { %v816_v46 = vrot.slane %v815_v43, 4  ;;  %v884_v32 = vadd.f32 %v883_v44, %v853_v10 }
 0x142   : > { %v817_v48 = vadd.f32 %v816_v46, %v815_v43  ;;  %v885_v49 = vrot.slane %v884_v32, 4 }
 0x144   : > { %v818_v51 = vrot.slane %v817_v48, 2  ;;  %v886_v47 = vadd.f32 %v885_v49, %v884_v32 }
 0x146   : > { %v819_v52 = vadd.f32 %v818_v51, %v817_v48  ;;  %v887_v53 = vrot.slane %v886_v47, 2 }
 0x148   : > { %v820_v24 = vrot.slane %v819_v52, 1  ;;  %v888_v54 = vadd.f32 %v887_v53, %v886_v47 }
 0x14a   : > { %v889_v55 = vrot.slane %v888_v54, 1  ;;  %v821_v38 = vadd.f32 %v820_v24, %v819_v52 }
 0x14c   : > { %v890_v56 = vadd.f32 %v889_v55, %v888_v54 }
 0x14e   : > { %v892_v58 = vsel %vm891_vm0, %v821_v38, %v890_v56 }
 0x14f   : > { %893 = vst [vmem:[%s239_s10] sm:$0x3] %v892_v58 }
 0x150   : > { %1470 = shalt.err (!%p1467_p7)
}
 0x151   : > { %s1471_s4 = scalar_lea.hbm %s1804_s24, 32  ;;  %s1475_s7 = scalar_lea.hbm %s1853_s3, 1024 }
 0x152   : > { %p1472_p9 = scmp.ne.s32.totalorder %s1804_s24, %s1471_s4  ;;  %p1476_p12 = scmp.lt.s32.totalorder %s1804_s24, %s1853_s3 }
 0x153   : > { %p1477_p13 = scmp.lt.s32.totalorder %s1475_s7, %s1471_s4 }
 0x154   : > { %p1473_p10 = pnand %p1472_p9, %p1623_p3 }
 0x155   : > { %p1478_p0 = por %p1477_p13, %p1476_p12 }
 0x156   : > { %p1474_p11 = pneg %p1473_p10 }
 0x158   : > { %p1479_p1 = pnand %p1478_p0, %p1474_p11 }
 0x15a   : > { %1482 = shalt.err (!%p1479_p1)
}
 0x15b   : > { %1362 = dma.vmem_to_hbm [thread:$0]  (%p1623_p3), %s928_s11, 32, %s1804_s24, %s907_s16  }
 0x15c PF: > { %p1368_p2 = scmp.ge.s32.totalorder %s1549_s19, 2  ;;  %s954_s10 = sand.u32 1, %s1521_s12  }
 0x15d   : > { %s955_s20 = scalar_lea.sflag [#allocation3], %s954_s10 }
 0x15e   : > { %p1365_p4 = pnand %p1368_p2, %p1632_p8 }
 0x160   : > { %p1366_p5 = pneg %p1365_p4 }
 0x162   : > { %1516 = dma.done.wait (%p1366_p5), %s955_s20, 32  }
 0x163   : > { %1518 = vsyncadd (%p1366_p5), %s955_s20, 4294967264  ;;  %s17_s19 = sadd.s32 1, %s1549_s19   ;;  %s1856_s12 = smov %s1525_s13 }
 0x164   : > { %p14_p6 = scmp.ge.s32.totalorder %s17_s19, 34   ;;  %s1857_s13 = smov %s1529_s14 }
 0x165   : > { %s1858_s14 = smov %s1641_s30  ;;  %s1859_s15 = smov %s1541_s17 }
 0x166   : > { %s1860_s16 = smov %s1545_s18  ;;  %s1861_s17 = smov %s1864_s22 }
 0x167   : > { %s1862_s18 = smov %s1868_s23  ;;  %16 = sbr.rel (!%p14_p6) target bundleno = 5 (0x5), region = 78 }
 0x16c   :  { %960 = vsyncpa [#allocation3], 1 }
 0x16d   :  { %962 = vsyncpa [#allocation3 + $0x1], 1 }

// kernel: generator_forward.19
= control target key start
LH: loop header
LB: loop body
LE: loop exit
PB: predicated region body
PF: predicated region fallthrough
CT: control target
= control target key end

     0   :  { %v52_v0 = vlaneseq  ;;  %s440_s0 = inlined_call_operand.vmem [shape: bf16[48,512], index: 0, kind: input, shape index: {}]   ;;  %s441_s1 = inlined_call_operand.vmem [shape: f32[1,512], index: 1, kind: input, shape index: {}]   ;;  %s442_s2 = inlined_call_operand.vmem [shape: f32[1,512], index: 2, kind: input, shape index: {}]   ;;  %s443_s3 = inlined_call_operand.vmem [shape: f32[48,512], index: 3, kind: output, shape index: {}]  }
   0x1   :  { %v14_v1 = vld [vmem:[%s440_s0] sm:$0xff]  ;;  %v15_v5 = vld [vmem:[%s440_s0 + $0x8] sm:$0xff]  ;;  %v16_v6 = vld [vmem:[%s440_s0 + $0x10] sm:$0xff] }
   0x2   :  { %v26_v2 = vunpack.c.l.bf16 %v14_v1  ;;  %v53_v3 = vshrl.u32 %v52_v0, 7  ;;  %v27_v4 = vunpack.c.h.bf16 %v14_v1  ;;  %v17_v7 = vld [vmem:[%s440_s0 + $0x18] sm:$0xff]  ;;  %v50_v8 = vld [vmem:[%s441_s1] sm:$0xf]  ;;  %v28_v10 = vunpack.c.l.bf16 %v15_v5  ;;  %v19_v37 = vld [vmem:[%s440_s0 + $0x28] sm:$0xff] }
   0x3   :  { %v96_v9 = vld [vmem:[%s442_s2] sm:$0xf]  ;;  %v29_v11 = vunpack.c.h.bf16 %v15_v5  ;;  %v30_v12 = vunpack.c.l.bf16 %v16_v6  ;;  %v31_v13 = vunpack.c.h.bf16 %v16_v6  ;;  %v32_v19 = vunpack.c.l.bf16 %v17_v7  ;;  %v20_v42 = vld [vmem:[%s440_s0 + $0x30] sm:$0xff]  ;;  %v21_v53 = vld [vmem:[%s440_s0 + $0x38] sm:$0xff] }
   0x4   :  { %v18_v14 = vld [vmem:[%s440_s0 + $0x20] sm:$0xff]  ;;  %v54_v15 = vsub.s32 0, %v53_v3  ;;  %v58_v16 = vsub.s32 1, %v53_v3  ;;  %v62_v17 = vsub.s32 2, %v53_v3  ;;  %v66_v18 = vsub.s32 3, %v53_v3  ;;  %v23_v0 = vld [vmem:[%s440_s0 + $0x48] sm:$0xff] }
   0x5   :  { %v33_v20 = vunpack.c.h.bf16 %v17_v7  ;;  %v34_v21 = vunpack.c.l.bf16 %v18_v14  ;;  %v35_v22 = vunpack.c.h.bf16 %v18_v14  ;;  %v36_v49 = vunpack.c.l.bf16 %v19_v37  ;;  %v22_v60 = vld [vmem:[%s440_s0 + $0x40] sm:$0xff] }
   0x6   :  { %v283_v23 = vrot.slane %v50_v8, %v54_v15  ;;  %v285_v24 = vrot.slane %v96_v9, %v54_v15  ;;  %v287_v25 = vrot.slane %v50_v8, %v58_v16  ;;  %v289_v26 = vrot.slane %v96_v9, %v58_v16  ;;  %v25_v16 = vld [vmem:[%s440_s0 + $0x58] sm:$0xff] }
   0x7   :  { %v291_v27 = vrot.slane %v50_v8, %v62_v17  ;;  %v293_v28 = vrot.slane %v96_v9, %v62_v17  ;;  %v295_v29 = vrot.slane %v50_v8, %v66_v18  ;;  %v297_v30 = vrot.slane %v96_v9, %v66_v18 }
   0x8   :  { %v72_v31 = vmul.f32 %v283_v23, %v26_v2  ;;  %v73_v32 = vmul.f32 %v287_v25, %v27_v4  ;;  %v76_v33 = vmul.f32 %v283_v23, %v30_v12  ;;  %v77_v34 = vmul.f32 %v287_v25, %v31_v13 }
   0x9   :  { %v74_v35 = vmul.f32 %v291_v27, %v28_v10  ;;  %v75_v36 = vmul.f32 %v295_v29, %v29_v11  ;;  %v78_v40 = vmul.f32 %v291_v27, %v32_v19  ;;  %v79_v41 = vmul.f32 %v295_v29, %v33_v20  ;;  %v24_v10 = vld [vmem:[%s440_s0 + $0x50] sm:$0xff] }
   0xa   :  { %v118_v38 = vadd.f32 %v285_v24, %v72_v31  ;;  %v119_v39 = vadd.f32 %v289_v26, %v73_v32  ;;  %v122_v45 = vadd.f32 %v285_v24, %v76_v33  ;;  %v123_v46 = vadd.f32 %v289_v26, %v77_v34 }
   0xb   :  { %v120_v43 = vadd.f32 %v293_v28, %v74_v35  ;;  %v121_v44 = vadd.f32 %v297_v30, %v75_v36  ;;  %v80_v47 = vmul.f32 %v283_v23, %v34_v21  ;;  %v81_v48 = vmul.f32 %v287_v25, %v35_v22 }
   0xc   :  { %194 = vtanh.f32 %v118_v38  ;;  %v37_v50 = vunpack.c.h.bf16 %v19_v37  ;;  %v38_v51 = vunpack.c.l.bf16 %v20_v42  ;;  %v39_v52 = vunpack.c.h.bf16 %v20_v42 }
   0xd   :  { %196 = vtanh.f32 %v119_v39  ;;  %v124_v54 = vadd.f32 %v293_v28, %v78_v40  ;;  %v125_v55 = vadd.f32 %v297_v30, %v79_v41  ;;  %v82_v56 = vmul.f32 %v291_v27, %v36_v49 }
   0xe   :  { %198 = vtanh.f32 %v120_v43  ;;  %v126_v57 = vadd.f32 %v285_v24, %v80_v47  ;;  %v127_v58 = vadd.f32 %v289_v26, %v81_v48  ;;  %v83_v59 = vmul.f32 %v295_v29, %v37_v50 }
   0xf   :  { %200 = vtanh.f32 %v121_v44  ;;  %v84_v61 = vmul.f32 %v283_v23, %v38_v51  ;;  %v40_v62 = vunpack.c.l.bf16 %v21_v53  ;;  %v41_v63 = vunpack.c.h.bf16 %v21_v53 }
  0x10   :  { %202 = vtanh.f32 %v122_v45  ;;  %v128_v1 = vadd.f32 %v293_v28, %v82_v56  ;;  %v129_v2 = vadd.f32 %v297_v30, %v83_v59  ;;  %v85_v3 = vmul.f32 %v287_v25, %v39_v52 }
  0x11   :  { %204 = vtanh.f32 %v123_v46  ;;  %v86_v4 = vmul.f32 %v291_v27, %v40_v62  ;;  %v87_v5 = vmul.f32 %v295_v29, %v41_v63  ;;  %v42_v6 = vunpack.c.l.bf16 %v22_v60 }
  0x12   :  { %206 = vtanh.f32 %v124_v54  ;;  %v43_v7 = vunpack.c.h.bf16 %v22_v60  ;;  %v44_v8 = vunpack.c.l.bf16 %v23_v0  ;;  %v45_v9 = vunpack.c.h.bf16 %v23_v0 }
  0x13   :  { %208 = vtanh.f32 %v125_v55  ;;  %v130_v11 = vadd.f32 %v285_v24, %v84_v61  ;;  %v88_v12 = vmul.f32 %v283_v23, %v42_v6  ;;  %v131_v13 = vadd.f32 %v289_v26, %v85_v3 }
  0x14   :  { %210 = vtanh.f32 %v126_v57  ;;  %v132_v14 = vadd.f32 %v293_v28, %v86_v4  ;;  %v89_v15 = vmul.f32 %v287_v25, %v43_v7  ;;  %v90_v17 = vmul.f32 %v291_v27, %v44_v8 }
  0x15   :  { %212 = vtanh.f32 %v127_v58  ;;  %v46_v18 = vunpack.c.l.bf16 %v24_v10  ;;  %v47_v19 = vunpack.c.h.bf16 %v24_v10  ;;  %v133_v20 = vadd.f32 %v297_v30, %v87_v5 }
  0x16   :  { %214 = vtanh.f32 %v128_v1  ;;  %v91_v21 = vmul.f32 %v295_v29, %v45_v9  ;;  %v134_v22 = vadd.f32 %v285_v24, %v88_v12  ;;  %v48_v32 = vunpack.c.l.bf16 %v25_v16 }
  0x17   :  { %216 = vtanh.f32 %v129_v2  ;;  %v92_v31 = vmul.f32 %v283_v23, %v46_v18  ;;  %v135_v34 = vadd.f32 %v289_v26, %v89_v15  ;;  %v93_v35 = vmul.f32 %v287_v25, %v47_v19 }
  0x18   :  { %218 = vtanh.f32 %v130_v11  ;;  %v49_v36 = vunpack.c.h.bf16 %v25_v16  ;;  %v136_v38 = vadd.f32 %v293_v28, %v90_v17  ;;  %v94_v39 = vmul.f32 %v291_v27, %v48_v32 }
  0x19   :  { %v195_v33 = vpop.eup %194  ;;  %220 = vtanh.f32 %v131_v13  ;;  %v137_v23 = vadd.f32 %v297_v30, %v91_v21  ;;  %v138_v42 = vadd.f32 %v285_v24, %v92_v31  ;;  %v139_v27 = vadd.f32 %v289_v26, %v93_v35 }
  0x1a   :  { %v197_v37 = vpop.eup %196  ;;  %166 = vst [vmem:[%s443_s3] sm:$0xff] %v195_v33  ;;  %222 = vtanh.f32 %v132_v14  ;;  %v95_v25 = vmul.f32 %v295_v29, %v49_v36  ;;  %v140_v29 = vadd.f32 %v293_v28, %v94_v39 }
  0x1b   :  { %v199_v40 = vpop.eup %198  ;;  %167 = vst [vmem:[%s443_s3 + $0x8] sm:$0xff] %v197_v37  ;;  %224 = vtanh.f32 %v133_v20 }
  0x1c   :  { %v201_v41 = vpop.eup %200  ;;  %168 = vst [vmem:[%s443_s3 + $0x10] sm:$0xff] %v199_v40  ;;  %226 = vtanh.f32 %v134_v22  ;;  %v141_v24 = vadd.f32 %v297_v30, %v95_v25 }
  0x1d   :  { %v203_v43 = vpop.eup %202  ;;  %169 = vst [vmem:[%s443_s3 + $0x18] sm:$0xff] %v201_v41  ;;  %228 = vtanh.f32 %v135_v34 }
  0x1e   :  { %v205_v44 = vpop.eup %204  ;;  %170 = vst [vmem:[%s443_s3 + $0x20] sm:$0xff] %v203_v43  ;;  %230 = vtanh.f32 %v136_v38 }
  0x1f   :  { %v207_v45 = vpop.eup %206  ;;  %171 = vst [vmem:[%s443_s3 + $0x28] sm:$0xff] %v205_v44  ;;  %232 = vtanh.f32 %v137_v23 }
  0x20   :  { %v209_v46 = vpop.eup %208  ;;  %172 = vst [vmem:[%s443_s3 + $0x30] sm:$0xff] %v207_v45  ;;  %234 = vtanh.f32 %v138_v42 }
  0x21   :  { %v211_v26 = vpop.eup %210  ;;  %173 = vst [vmem:[%s443_s3 + $0x38] sm:$0xff] %v209_v46  ;;  %236 = vtanh.f32 %v139_v27 }
  0x22   :  { %v213_v28 = vpop.eup %212  ;;  %174 = vst [vmem:[%s443_s3 + $0x40] sm:$0xff] %v211_v26  ;;  %238 = vtanh.f32 %v140_v29 }
  0x23   :  { %v215_v47 = vpop.eup %214  ;;  %175 = vst [vmem:[%s443_s3 + $0x48] sm:$0xff] %v213_v28  ;;  %240 = vtanh.f32 %v141_v24 }
  0x24   :  { %v217_v30 = vpop.eup %216  ;;  %176 = vst [vmem:[%s443_s3 + $0x50] sm:$0xff] %v215_v47 }
  0x25   :  { %v219_v48 = vpop.eup %218  ;;  %177 = vst [vmem:[%s443_s3 + $0x58] sm:$0xff] %v217_v30 }
  0x26   :  { %v221_v49 = vpop.eup %220  ;;  %178 = vst [vmem:[%s443_s3 + $0x60] sm:$0xff] %v219_v48 }
  0x27   :  { %v223_v50 = vpop.eup %222  ;;  %179 = vst [vmem:[%s443_s3 + $0x68] sm:$0xff] %v221_v49 }
  0x28   :  { %v225_v51 = vpop.eup %224  ;;  %180 = vst [vmem:[%s443_s3 + $0x70] sm:$0xff] %v223_v50 }
  0x29   :  { %v227_v52 = vpop.eup %226  ;;  %181 = vst [vmem:[%s443_s3 + $0x78] sm:$0xff] %v225_v51 }
  0x2a   :  { %v229_v53 = vpop.eup %228  ;;  %182 = vst [vmem:[%s443_s3 + $0x80] sm:$0xff] %v227_v52 }
  0x2b   :  { %v231_v54 = vpop.eup %230  ;;  %183 = vst [vmem:[%s443_s3 + $0x88] sm:$0xff] %v229_v53 }
  0x2c   :  { %v233_v55 = vpop.eup %232  ;;  %184 = vst [vmem:[%s443_s3 + $0x90] sm:$0xff] %v231_v54 }
  0x2d   :  { %v235_v56 = vpop.eup %234  ;;  %185 = vst [vmem:[%s443_s3 + $0x98] sm:$0xff] %v233_v55 }
  0x2e   :  { %v237_v57 = vpop.eup %236  ;;  %186 = vst [vmem:[%s443_s3 + $0xa0] sm:$0xff] %v235_v56 }
  0x2f   :  { %v239_v58 = vpop.eup %238  ;;  %187 = vst [vmem:[%s443_s3 + $0xa8] sm:$0xff] %v237_v57 }
  0x30   :  { %v241_v59 = vpop.eup %240  ;;  %188 = vst [vmem:[%s443_s3 + $0xb0] sm:$0xff] %v239_v58 }
  0x31   :  { %189 = vst [vmem:[%s443_s3 + $0xb8] sm:$0xff] %v241_v59 }

</bundles_post_ra>
